<compile_context>
chip_gen: v6e
topology: v6e:2x2x1
jax: 0.10.0
libtpu: 0.0.40
codegen_flags: <defaults>
</compile_context>

<pallas_src>
import functools

import jax
import jax.numpy as jnp
from jax.experimental import pallas as pl
from jax.experimental.pallas import tpu as pltpu


# ----------------------------------------------------------------------------
# Tiling helpers
# ----------------------------------------------------------------------------
def _choose_row_tile(h, per_row_bytes, budget_bytes=4 << 20):
    """Tile height: multiple of 8 dividing h, >=2 tiles when possible (keeps both v7x
    TensorCores busy at small batch), block kept under a small VMEM budget."""
    cands = [t for t in range(8, h + 1, 8) if h % t == 0]
    if not cands:
        return h
    pref = [t for t in cands if t <= max(8, h // 2)] or cands
    good = [t for t in pref if (t + 2) * per_row_bytes <= budget_bytes]
    return max(good) if good else min(pref)


def _shingle_rows(xp, th):
    """(N, H+2, W+2, C) padded image -> (N*T, th+2, W+2, C) overlapping row tiles.

    Only the 2 halo rows per tile are duplicated (vs. the previous 9x im2col copy)."""
    n, hp2, wp2, c = xp.shape
    h = hp2 - 2
    t = h // th
    if t == 1:
        return xp
    tiles = [xp[:, r * th:r * th + th + 2] for r in range(t)]
    return jnp.stack(tiles, axis=1).reshape(n * t, th + 2, wp2, c)


# ----------------------------------------------------------------------------
# Pallas kernels
# ----------------------------------------------------------------------------
def _conv3x3_relu_kernel(*refs, n_in, th, w):
    """3x3 conv (stride 1, pad 1) + bias + ReLU on one padded row tile.

    refs = x_refs: n_in of (1, th+2, w+2, Cin_i)  bf16 halo tiles
         + w_refs: n_in of (9, Cin_i, Cout)       bf16 weights (one matrix per tap)
         + b_ref : (1, Cout) f32
         + o_ref : (1, th*w, Cout)
    The 9 taps (x n_in inputs) are formed in VMEM from the halo tile and accumulated
    in f32 on the MXU — no im2col and no channel-concat ever hit HBM.
    """
    x_refs = refs[:n_in]
    w_refs = refs[n_in:2 * n_in]
    b_ref = refs[2 * n_in]
    o_ref = refs[2 * n_in + 1]

    acc = jnp.zeros(o_ref.shape[1:], jnp.float32)          # (th*w, Cout)
    for x_ref, w_ref in zip(x_refs, w_refs):
        cin = x_ref.shape[-1]
        xt = x_ref[0]                                       # (th+2, w+2, cin)
        for t in range(9):                                  # statically unrolled taps
            dy, dx = divmod(t, 3)
            patch = xt[dy:dy + th, dx:dx + w, :].reshape(th * w, cin)
            acc = acc + jnp.dot(patch, w_ref[t],
                                preferred_element_type=jnp.float32)
    acc = acc + b_ref[...]                                  # (1, Cout) broadcast
    o_ref[0] = jnp.maximum(acc, 0.0).astype(o_ref.dtype)    # ReLU


def _bilerp_nchw_kernel(x00_ref, x01_ref, x10_ref, x11_ref,
                        w00_ref, w01_ref, w10_ref, w11_ref, o_ref):
    """Fused bilinear combine on a channels-first tile.

    x*: (1, C, THo, Wo) f32 neighbour tiles; w*: (THo, Wo) f32 weight planes that are
    broadcast over the channel axis in-register (no (N,Ho,Wo,C) weights in HBM)."""
    w00 = w00_ref[...][None, None]
    w01 = w01_ref[...][None, None]
    w10 = w10_ref[...][None, None]
    w11 = w11_ref[...][None, None]
    o_ref[...] = (x00_ref[...] * w00 + x01_ref[...] * w01
                  + x10_ref[...] * w10 + x11_ref[...] * w11).astype(o_ref.dtype)


# ----------------------------------------------------------------------------
# Wrappers
# ----------------------------------------------------------------------------
def conv3x3_relu(inputs, bias, out_dtype=jnp.bfloat16):
    """ConvBlock(k=3, s=1, p=1, norm=None, act=ReLU) over the (virtual) channel-concat
    of `inputs` = [(x_nhwc (N,H,W,Cin_i), w (3,3,Cin_i,Cout)), ...]."""
    n, h, wd, _ = inputs[0][0].shape
    cout = inputs[0][1].shape[-1]
    cin_total = sum(int(x.shape[-1]) for x, _ in inputs)

    per_row_bytes = (wd + 2) * cin_total * 2 + wd * cout * jnp.dtype(out_dtype).itemsize
    th = _choose_row_tile(h, per_row_bytes)
    t = h // th
    nt = n * t

    xs, ws = [], []
    for x, w in inputs:
        xp = jnp.pad(x.astype(jnp.bfloat16), ((0, 0), (1, 1), (1, 1), (0, 0)))
        xs.append(_shingle_rows(xp, th))
        ws.append(w.reshape(9, w.shape[2], cout).astype(jnp.bfloat16))
    b2 = bias.reshape(1, cout).astype(jnp.float32)

    x_specs = [pl.BlockSpec((1, th + 2, wd + 2, int(x.shape[-1])),
                            lambda i: (i, 0, 0, 0)) for x in xs]
    w_specs = [pl.BlockSpec((9, int(w.shape[1]), cout),
                            lambda i: (0, 0, 0)) for w in ws]
    b_spec = pl.BlockSpec((1, cout), lambda i: (0, 0))

    out = pl.pallas_call(
        functools.partial(_conv3x3_relu_kernel, n_in=len(inputs), th=th, w=wd),
        out_shape=jax.ShapeDtypeStruct((nt, th * wd, cout), out_dtype),
        grid=(nt,),
        in_specs=x_specs + w_specs + [b_spec],
        out_specs=pl.BlockSpec((1, th * wd, cout), lambda i: (i, 0, 0)),
        compiler_params=pltpu.CompilerParams(dimension_semantics=("parallel",)),
    )(*xs, *ws, b2)
    return out.reshape(n, h, wd, cout)


def upsample2x_bilinear_align_corners(x_nchw, out_dtype=jnp.bfloat16):
    """nn.Upsample(scale_factor=2, mode='bilinear', align_corners=True), NCHW."""
    n, c, h, w = x_nchw.shape
    ho, wo = 2 * h, 2 * w

    def coords(n_in, n_out):
        src = jnp.arange(n_out, dtype=jnp.float32) * (n_in - 1) / (n_out - 1)
        i0 = jnp.clip(jnp.floor(src).astype(jnp.int32), 0, n_in - 1)
        i1 = jnp.clip(i0 + 1, 0, n_in - 1)
        return i0, i1, src - i0.astype(jnp.float32)

    h0, h1, fh = coords(h, ho)
    w0, w1, fw = coords(w, wo)

    # 4 neighbour grids (gather glue); the fused weighted combine runs in Pallas.
    x = x_nchw.astype(jnp.float32)
    xh0 = jnp.take(x, h0, axis=2)
    xh1 = jnp.take(x, h1, axis=2)
    x00 = jnp.take(xh0, w0, axis=3)
    x01 = jnp.take(xh0, w1, axis=3)
    x10 = jnp.take(xh1, w0, axis=3)
    x11 = jnp.take(xh1, w1, axis=3)

    # Small (Ho, Wo) f32 weight planes — no full-channel broadcast tensors in HBM.
    wh = fh[:, None]
    ww = fw[None, :]
    w00 = (1.0 - wh) * (1.0 - ww)
    w01 = (1.0 - wh) * ww
    w10 = wh * (1.0 - ww)
    w11 = wh * ww

    tho = _choose_row_tile(ho, wo * c * 4 * 5)
    t = ho // tho

    img_spec = pl.BlockSpec((1, c, tho, wo), lambda i, r: (i, 0, r, 0))
    wt_spec = pl.BlockSpec((tho, wo), lambda i, r: (r, 0))
    return pl.pallas_call(
        _bilerp_nchw_kernel,
        out_shape=jax.ShapeDtypeStruct((n, c, ho, wo), out_dtype),
        grid=(n, t),
        in_specs=[img_spec] * 4 + [wt_spec] * 4,
        out_specs=img_spec,
        compiler_params=pltpu.CompilerParams(
            dimension_semantics=("parallel", "parallel")),
    )(x00, x01, x10, x11, w00, w01, w10, w11)


# ----------------------------------------------------------------------------
# Parameters + full forward
# ----------------------------------------------------------------------------
def init_params(key, in_ch_decoder, in_ch_encoder, out_ch):
    ks = jax.random.split(key, 6)

    def conv_w(k, cin, cout):
        return jax.random.normal(k, (3, 3, cin, cout), jnp.float32) / jnp.sqrt(9.0 * cin)

    def conv_b(k, cout):
        return jax.random.normal(k, (cout,), jnp.float32) * 0.01

    return {
        # upconv: Upsample + ConvBlock(in_ch_decoder -> out_ch, norm=None)
        "up_w": conv_w(ks[0], in_ch_decoder, out_ch),
        "up_b": conv_b(ks[1], out_ch),
        # convs: UNetDoubleConv(in_ch_encoder + out_ch -> out_ch)
        "c1_w": conv_w(ks[2], in_ch_encoder + out_ch, out_ch),
        "c1_b": conv_b(ks[3], out_ch),
        "c2_w": conv_w(ks[4], out_ch, out_ch),
        "c2_b": conv_b(ks[5], out_ch),
    }


def unet_up_block(params, x_nchw, encoder_out_nchw):
    """UNetUpBlock.forward(x, encoder_out, mask=None). Inputs/outputs are NCHW."""
    n_enc_ch = encoder_out_nchw.shape[1]

    # self.upconv[0]: bilinear 2x upsample (channels-first fused lerp, bf16 store)
    up_nchw = upsample2x_bilinear_align_corners(x_nchw, out_dtype=jnp.bfloat16)

    # NHWC for the tap-structured conv kernels
    up = jnp.transpose(up_nchw, (0, 2, 3, 1))
    enc = jnp.transpose(encoder_out_nchw, (0, 2, 3, 1))

    # self.upconv[1]: ConvBlock(in_ch_decoder -> out_ch, norm=None, ReLU)
    up = conv3x3_relu([(up, params["up_w"])], params["up_b"], out_dtype=jnp.bfloat16)

    # torch.cat([encoder_out, upsample_x], dim=1) fused into the first DoubleConv conv
    # by splitting its weights along the input-channel axis (concat never hits HBM).
    w_enc = params["c1_w"][:, :, :n_enc_ch, :]
    w_up = params["c1_w"][:, :, n_enc_ch:, :]
    y = conv3x3_relu([(enc, w_enc), (up, w_up)], params["c1_b"],
                     out_dtype=jnp.bfloat16)

    # self.attention is None in this instantiation.

    # second ConvBlock of UNetDoubleConv; final output back in f32
    y = conv3x3_relu([(y, params["c2_w"])], params["c2_b"], out_dtype=jnp.float32)
    return jnp.transpose(y, (0, 3, 1, 2))                    # NHWC -> NCHW


if __name__ == "__main__":
    key = jax.random.PRNGKey(0)
    k_x, k_e, k_p = jax.random.split(key, 3)

    n = 2
    in_ch_decoder = 8      # decoder feature channels (x)
    in_ch_encoder = 4      # skip-connection channels (encoder_out)
    out_ch = 8
    h = w = 8              # decoder spatial; encoder/skip is 2x larger

    x = jax.random.normal(k_x, (n, in_ch_decoder, h, w), jnp.float32)
    encoder_out = jax.random.normal(k_e, (n, in_ch_encoder, 2 * h, 2 * w), jnp.float32)
    params = init_params(k_p, in_ch_decoder, in_ch_encoder, out_ch)

    fwd = jax.jit(functools.partial(unet_up_block, params))
    out = fwd(x, encoder_out)
    jax.block_until_ready(out)

    assert out.shape == (n, out_ch, 2 * h, 2 * w), out.shape
    assert out.dtype == jnp.float32
    assert bool(jnp.isfinite(out).all())
    print("KERNEL_OK")
</pallas_src>

<mosaic_0001>
module attributes {stable_mosaic.version = 11 : i64} {
  func.func @_bilerp_nchw_kernel(%arg0: i32, %arg1: i32, %arg2: memref<1x8x8x16xf32, #tpu.memory_space<vmem>>, %arg3: memref<1x8x8x16xf32, #tpu.memory_space<vmem>>, %arg4: memref<1x8x8x16xf32, #tpu.memory_space<vmem>>, %arg5: memref<1x8x8x16xf32, #tpu.memory_space<vmem>>, %arg6: memref<8x16xf32, #tpu.memory_space<vmem>>, %arg7: memref<8x16xf32, #tpu.memory_space<vmem>>, %arg8: memref<8x16xf32, #tpu.memory_space<vmem>>, %arg9: memref<8x16xf32, #tpu.memory_space<vmem>>, %arg10: memref<1x8x8x16xbf16, #tpu.memory_space<vmem>>) attributes {dimension_semantics = [#tpu.dimension_semantics<parallel>, #tpu.dimension_semantics<parallel>], iteration_bounds = array<i64: 2, 2>, scalar_prefetch = 0 : i64, scratch_operands = 0 : i64, tpu.core_type = #tpu.core_type<tc>, window_params = [{transform_indices = @transform_0, window_bounds = array<i64: 1, 8, 8, 16>}, {transform_indices = @transform_1, window_bounds = array<i64: 1, 8, 8, 16>}, {transform_indices = @transform_2, window_bounds = array<i64: 1, 8, 8, 16>}, {transform_indices = @transform_3, window_bounds = array<i64: 1, 8, 8, 16>}, {transform_indices = @transform_4, window_bounds = array<i64: 8, 16>}, {transform_indices = @transform_5, window_bounds = array<i64: 8, 16>}, {transform_indices = @transform_6, window_bounds = array<i64: 8, 16>}, {transform_indices = @transform_7, window_bounds = array<i64: 8, 16>}, {transform_indices = @transform_8, window_bounds = array<i64: 1, 8, 8, 16>}]} {
    %c0 = arith.constant 0 : index
    %c0_0 = arith.constant 0 : index
    %0 = vector.load %arg6[%c0, %c0_0] : memref<8x16xf32, #tpu.memory_space<vmem>>, vector<8x16xf32>
    %1 = vector.shape_cast %0 : vector<8x16xf32> to vector<1x1x8x16xf32>
    %c0_1 = arith.constant 0 : index
    %c0_2 = arith.constant 0 : index
    %2 = vector.load %arg7[%c0_1, %c0_2] : memref<8x16xf32, #tpu.memory_space<vmem>>, vector<8x16xf32>
    %3 = vector.shape_cast %2 : vector<8x16xf32> to vector<1x1x8x16xf32>
    %c0_3 = arith.constant 0 : index
    %c0_4 = arith.constant 0 : index
    %4 = vector.load %arg8[%c0_3, %c0_4] : memref<8x16xf32, #tpu.memory_space<vmem>>, vector<8x16xf32>
    %5 = vector.shape_cast %4 : vector<8x16xf32> to vector<1x1x8x16xf32>
    %c0_5 = arith.constant 0 : index
    %c0_6 = arith.constant 0 : index
    %6 = vector.load %arg9[%c0_5, %c0_6] : memref<8x16xf32, #tpu.memory_space<vmem>>, vector<8x16xf32>
    %7 = vector.shape_cast %6 : vector<8x16xf32> to vector<1x1x8x16xf32>
    %c0_7 = arith.constant 0 : index
    %c0_8 = arith.constant 0 : index
    %c0_9 = arith.constant 0 : index
    %c0_10 = arith.constant 0 : index
    %8 = vector.load %arg2[%c0_7, %c0_8, %c0_9, %c0_10] : memref<1x8x8x16xf32, #tpu.memory_space<vmem>>, vector<1x8x8x16xf32>
    %9 = vector.broadcast %1 : vector<1x1x8x16xf32> to vector<1x8x8x16xf32>
    %10 = arith.mulf %8, %9 : vector<1x8x8x16xf32>
    %c0_11 = arith.constant 0 : index
    %c0_12 = arith.constant 0 : index
    %c0_13 = arith.constant 0 : index
    %c0_14 = arith.constant 0 : index
    %11 = vector.load %arg3[%c0_11, %c0_12, %c0_13, %c0_14] : memref<1x8x8x16xf32, #tpu.memory_space<vmem>>, vector<1x8x8x16xf32>
    %12 = vector.broadcast %3 : vector<1x1x8x16xf32> to vector<1x8x8x16xf32>
    %13 = arith.mulf %11, %12 : vector<1x8x8x16xf32>
    %14 = arith.addf %10, %13 : vector<1x8x8x16xf32>
    %c0_15 = arith.constant 0 : index
    %c0_16 = arith.constant 0 : index
    %c0_17 = arith.constant 0 : index
    %c0_18 = arith.constant 0 : index
    %15 = vector.load %arg4[%c0_15, %c0_16, %c0_17, %c0_18] : memref<1x8x8x16xf32, #tpu.memory_space<vmem>>, vector<1x8x8x16xf32>
    %16 = vector.broadcast %5 : vector<1x1x8x16xf32> to vector<1x8x8x16xf32>
    %17 = arith.mulf %15, %16 : vector<1x8x8x16xf32>
    %18 = arith.addf %14, %17 : vector<1x8x8x16xf32>
    %c0_19 = arith.constant 0 : index
    %c0_20 = arith.constant 0 : index
    %c0_21 = arith.constant 0 : index
    %c0_22 = arith.constant 0 : index
    %19 = vector.load %arg5[%c0_19, %c0_20, %c0_21, %c0_22] : memref<1x8x8x16xf32, #tpu.memory_space<vmem>>, vector<1x8x8x16xf32>
    %20 = vector.broadcast %7 : vector<1x1x8x16xf32> to vector<1x8x8x16xf32>
    %21 = arith.mulf %19, %20 : vector<1x8x8x16xf32>
    %22 = arith.addf %18, %21 : vector<1x8x8x16xf32>
    %23 = arith.truncf %22 : vector<1x8x8x16xf32> to vector<1x8x8x16xbf16>
    %c0_23 = arith.constant 0 : index
    %c0_24 = arith.constant 0 : index
    %c0_25 = arith.constant 0 : index
    %c0_26 = arith.constant 0 : index
    %24 = vector.load %arg10[%c0_23, %c0_24, %c0_25, %c0_26] : memref<1x8x8x16xbf16, #tpu.memory_space<vmem>>, vector<1x8x8x16xbf16>
    tpu.vector_store %arg10[%c0_23, %c0_24, %c0_25, %c0_26], %23 {strides = array<i32>} : memref<1x8x8x16xbf16, #tpu.memory_space<vmem>>, vector<1x8x8x16xbf16>,
    return
  }
  func.func @transform_0(%arg0: i32, %arg1: i32) -> (i32, i32, i32, i32) {
    %c0_i32 = arith.constant 0 : i32
    %c0_i32_0 = arith.constant 0 : i32
    %c0_i32_1 = arith.constant 0 : i32
    return %arg0, %c0_i32, %arg1, %c0_i32_0 : i32, i32, i32, i32
  }
  func.func @transform_1(%arg0: i32, %arg1: i32) -> (i32, i32, i32, i32) {
    %c0_i32 = arith.constant 0 : i32
    %c0_i32_0 = arith.constant 0 : i32
    %c0_i32_1 = arith.constant 0 : i32
    return %arg0, %c0_i32, %arg1, %c0_i32_0 : i32, i32, i32, i32
  }
  func.func @transform_2(%arg0: i32, %arg1: i32) -> (i32, i32, i32, i32) {
    %c0_i32 = arith.constant 0 : i32
    %c0_i32_0 = arith.constant 0 : i32
    %c0_i32_1 = arith.constant 0 : i32
    return %arg0, %c0_i32, %arg1, %c0_i32_0 : i32, i32, i32, i32
  }
  func.func @transform_3(%arg0: i32, %arg1: i32) -> (i32, i32, i32, i32) {
    %c0_i32 = arith.constant 0 : i32
    %c0_i32_0 = arith.constant 0 : i32
    %c0_i32_1 = arith.constant 0 : i32
    return %arg0, %c0_i32, %arg1, %c0_i32_0 : i32, i32, i32, i32
  }
  func.func @transform_4(%arg0: i32, %arg1: i32) -> (i32, i32) {
    %c0_i32 = arith.constant 0 : i32
    %c0_i32_0 = arith.constant 0 : i32
    return %arg1, %c0_i32 : i32, i32
  }
  func.func @transform_5(%arg0: i32, %arg1: i32) -> (i32, i32) {
    %c0_i32 = arith.constant 0 : i32
    %c0_i32_0 = arith.constant 0 : i32
    return %arg1, %c0_i32 : i32, i32
  }
  func.func @transform_6(%arg0: i32, %arg1: i32) -> (i32, i32) {
    %c0_i32 = arith.constant 0 : i32
    %c0_i32_0 = arith.constant 0 : i32
    return %arg1, %c0_i32 : i32, i32
  }
  func.func @transform_7(%arg0: i32, %arg1: i32) -> (i32, i32) {
    %c0_i32 = arith.constant 0 : i32
    %c0_i32_0 = arith.constant 0 : i32
    return %arg1, %c0_i32 : i32, i32
  }
  func.func @transform_8(%arg0: i32, %arg1: i32) -> (i32, i32, i32, i32) {
    %c0_i32 = arith.constant 0 : i32
    %c0_i32_0 = arith.constant 0 : i32
    %c0_i32_1 = arith.constant 0 : i32
    return %arg0, %c0_i32, %arg1, %c0_i32_0 : i32, i32, i32, i32
  }
}

module attributes {stable_mosaic.version = 11 : i64} {
  func.func @_conv3x3_relu_kernel(%arg0: i32, %arg1: memref<1x10x18x8xbf16, #tpu.memory_space<vmem>>, %arg2: memref<9x8x8xbf16, #tpu.memory_space<vmem>>, %arg3: memref<1x8xf32, #tpu.memory_space<vmem>>, %arg4: memref<1x128x8xbf16, #tpu.memory_space<vmem>>) attributes {dimension_semantics = [#tpu.dimension_semantics<parallel>], iteration_bounds = array<i64: 4>, scalar_prefetch = 0 : i64, scratch_operands = 0 : i64, tpu.core_type = #tpu.core_type<tc>, window_params = [{transform_indices = @transform_0, window_bounds = array<i64: 1, 10, 18, 8>}, {pipeline_mode = #tpu.pipeline_mode<synchronous>, transform_indices = @transform_1, window_bounds = array<i64: 9, 8, 8>}, {pipeline_mode = #tpu.pipeline_mode<synchronous>, transform_indices = @transform_2, window_bounds = array<i64: 1, 8>}, {transform_indices = @transform_3, window_bounds = array<i64: 1, 128, 8>}]} {
    %cst = arith.constant 0.000000e+00 : f32
    %0 = vector.broadcast %cst : f32 to vector<128x8xf32>
    %c0 = arith.constant 0 : index
    %c0_0 = arith.constant 0 : index
    %c0_1 = arith.constant 0 : index
    %c0_2 = arith.constant 0 : index
    %1 = vector.load %arg1[%c0, %c0_0, %c0_1, %c0_2] : memref<1x10x18x8xbf16, #tpu.memory_space<vmem>>, vector<1x10x18x8xbf16>
    %2 = vector.shape_cast %1 : vector<1x10x18x8xbf16> to vector<10x18x8xbf16>
    %3 = vector.extract_strided_slice %2 {offsets = [0, 0, 0], sizes = [8, 16, 8], strides = [1, 1, 1]} : vector<10x18x8xbf16> to vector<8x16x8xbf16>
    %4 = vector.shape_cast %3 : vector<8x16x8xbf16> to vector<128x8xbf16>
    %c0_3 = arith.constant 0 : index
    %c0_4 = arith.constant 0 : index
    %c0_5 = arith.constant 0 : index
    %5 = vector.load %arg2[%c0_3, %c0_4, %c0_5] : memref<9x8x8xbf16, #tpu.memory_space<vmem>>, vector<1x8x8xbf16>
    %6 = vector.shape_cast %5 : vector<1x8x8xbf16> to vector<8x8xbf16>
    %cst_6 = arith.constant dense<0.000000e+00> : vector<128x8xf32>
    %7 = tpu.matmul %4, %6, %cst_6 {dimension_numbers = #tpu.dot_dimension_numbers<[1], [0], [0], [1], [0, 0, 1, 1], [], []>} : vector<128x8xbf16>, vector<8x8xbf16>, vector<128x8xf32> -> vector<128x8xf32>
    %8 = arith.addf %0, %7 : vector<128x8xf32>
    %9 = vector.extract_strided_slice %2 {offsets = [0, 1, 0], sizes = [8, 16, 8], strides = [1, 1, 1]} : vector<10x18x8xbf16> to vector<8x16x8xbf16>
    %10 = vector.shape_cast %9 : vector<8x16x8xbf16> to vector<128x8xbf16>
    %c1 = arith.constant 1 : index
    %c0_7 = arith.constant 0 : index
    %c0_8 = arith.constant 0 : index
    %11 = vector.load %arg2[%c1, %c0_7, %c0_8] : memref<9x8x8xbf16, #tpu.memory_space<vmem>>, vector<1x8x8xbf16>
    %12 = vector.shape_cast %11 : vector<1x8x8xbf16> to vector<8x8xbf16>
    %cst_9 = arith.constant dense<0.000000e+00> : vector<128x8xf32>
    %13 = tpu.matmul %10, %12, %cst_9 {dimension_numbers = #tpu.dot_dimension_numbers<[1], [0], [0], [1], [0, 0, 1, 1], [], []>} : vector<128x8xbf16>, vector<8x8xbf16>, vector<128x8xf32> -> vector<128x8xf32>
    %14 = arith.addf %8, %13 : vector<128x8xf32>
    %15 = vector.extract_strided_slice %2 {offsets = [0, 2, 0], sizes = [8, 16, 8], strides = [1, 1, 1]} : vector<10x18x8xbf16> to vector<8x16x8xbf16>
    %16 = vector.shape_cast %15 : vector<8x16x8xbf16> to vector<128x8xbf16>
    %c2 = arith.constant 2 : index
    %c0_10 = arith.constant 0 : index
    %c0_11 = arith.constant 0 : index
    %17 = vector.load %arg2[%c2, %c0_10, %c0_11] : memref<9x8x8xbf16, #tpu.memory_space<vmem>>, vector<1x8x8xbf16>
    %18 = vector.shape_cast %17 : vector<1x8x8xbf16> to vector<8x8xbf16>
    %cst_12 = arith.constant dense<0.000000e+00> : vector<128x8xf32>
    %19 = tpu.matmul %16, %18, %cst_12 {dimension_numbers = #tpu.dot_dimension_numbers<[1], [0], [0], [1], [0, 0, 1, 1], [], []>} : vector<128x8xbf16>, vector<8x8xbf16>, vector<128x8xf32> -> vector<128x8xf32>
    %20 = arith.addf %14, %19 : vector<128x8xf32>
    %21 = vector.extract_strided_slice %2 {offsets = [1, 0, 0], sizes = [8, 16, 8], strides = [1, 1, 1]} : vector<10x18x8xbf16> to vector<8x16x8xbf16>
    %22 = vector.shape_cast %21 : vector<8x16x8xbf16> to vector<128x8xbf16>
    %c3 = arith.constant 3 : index
    %c0_13 = arith.constant 0 : index
    %c0_14 = arith.constant 0 : index
    %23 = vector.load %arg2[%c3, %c0_13, %c0_14] : memref<9x8x8xbf16, #tpu.memory_space<vmem>>, vector<1x8x8xbf16>
    %24 = vector.shape_cast %23 : vector<1x8x8xbf16> to vector<8x8xbf16>
    %cst_15 = arith.constant dense<0.000000e+00> : vector<128x8xf32>
    %25 = tpu.matmul %22, %24, %cst_15 {dimension_numbers = #tpu.dot_dimension_numbers<[1], [0], [0], [1], [0, 0, 1, 1], [], []>} : vector<128x8xbf16>, vector<8x8xbf16>, vector<128x8xf32> -> vector<128x8xf32>
    %26 = arith.addf %20, %25 : vector<128x8xf32>
    %27 = vector.extract_strided_slice %2 {offsets = [1, 1, 0], sizes = [8, 16, 8], strides = [1, 1, 1]} : vector<10x18x8xbf16> to vector<8x16x8xbf16>
    %28 = vector.shape_cast %27 : vector<8x16x8xbf16> to vector<128x8xbf16>
    %c4 = arith.constant 4 : index
    %c0_16 = arith.constant 0 : index
    %c0_17 = arith.constant 0 : index
    %29 = vector.load %arg2[%c4, %c0_16, %c0_17] : memref<9x8x8xbf16, #tpu.memory_space<vmem>>, vector<1x8x8xbf16>
    %30 = vector.shape_cast %29 : vector<1x8x8xbf16> to vector<8x8xbf16>
    %cst_18 = arith.constant dense<0.000000e+00> : vector<128x8xf32>
    %31 = tpu.matmul %28, %30, %cst_18 {dimension_numbers = #tpu.dot_dimension_numbers<[1], [0], [0], [1], [0, 0, 1, 1], [], []>} : vector<128x8xbf16>, vector<8x8xbf16>, vector<128x8xf32> -> vector<128x8xf32>
    %32 = arith.addf %26, %31 : vector<128x8xf32>
    %33 = vector.extract_strided_slice %2 {offsets = [1, 2, 0], sizes = [8, 16, 8], strides = [1, 1, 1]} : vector<10x18x8xbf16> to vector<8x16x8xbf16>
    %34 = vector.shape_cast %33 : vector<8x16x8xbf16> to vector<128x8xbf16>
    %c5 = arith.constant 5 : index
    %c0_19 = arith.constant 0 : index
    %c0_20 = arith.constant 0 : index
    %35 = vector.load %arg2[%c5, %c0_19, %c0_20] : memref<9x8x8xbf16, #tpu.memory_space<vmem>>, vector<1x8x8xbf16>
    %36 = vector.shape_cast %35 : vector<1x8x8xbf16> to vector<8x8xbf16>
    %cst_21 = arith.constant dense<0.000000e+00> : vector<128x8xf32>
    %37 = tpu.matmul %34, %36, %cst_21 {dimension_numbers = #tpu.dot_dimension_numbers<[1], [0], [0], [1], [0, 0, 1, 1], [], []>} : vector<128x8xbf16>, vector<8x8xbf16>, vector<128x8xf32> -> vector<128x8xf32>
    %38 = arith.addf %32, %37 : vector<128x8xf32>
    %39 = vector.extract_strided_slice %2 {offsets = [2, 0, 0], sizes = [8, 16, 8], strides = [1, 1, 1]} : vector<10x18x8xbf16> to vector<8x16x8xbf16>
    %40 = vector.shape_cast %39 : vector<8x16x8xbf16> to vector<128x8xbf16>
    %c6 = arith.constant 6 : index
    %c0_22 = arith.constant 0 : index
    %c0_23 = arith.constant 0 : index
    %41 = vector.load %arg2[%c6, %c0_22, %c0_23] : memref<9x8x8xbf16, #tpu.memory_space<vmem>>, vector<1x8x8xbf16>
    %42 = vector.shape_cast %41 : vector<1x8x8xbf16> to vector<8x8xbf16>
    %cst_24 = arith.constant dense<0.000000e+00> : vector<128x8xf32>
    %43 = tpu.matmul %40, %42, %cst_24 {dimension_numbers = #tpu.dot_dimension_numbers<[1], [0], [0], [1], [0, 0, 1, 1], [], []>} : vector<128x8xbf16>, vector<8x8xbf16>, vector<128x8xf32> -> vector<128x8xf32>
    %44 = arith.addf %38, %43 : vector<128x8xf32>
    %45 = vector.extract_strided_slice %2 {offsets = [2, 1, 0], sizes = [8, 16, 8], strides = [1, 1, 1]} : vector<10x18x8xbf16> to vector<8x16x8xbf16>
    %46 = vector.shape_cast %45 : vector<8x16x8xbf16> to vector<128x8xbf16>
    %c7 = arith.constant 7 : index
    %c0_25 = arith.constant 0 : index
    %c0_26 = arith.constant 0 : index
    %47 = vector.load %arg2[%c7, %c0_25, %c0_26] : memref<9x8x8xbf16, #tpu.memory_space<vmem>>, vector<1x8x8xbf16>
    %48 = vector.shape_cast %47 : vector<1x8x8xbf16> to vector<8x8xbf16>
    %cst_27 = arith.constant dense<0.000000e+00> : vector<128x8xf32>
    %49 = tpu.matmul %46, %48, %cst_27 {dimension_numbers = #tpu.dot_dimension_numbers<[1], [0], [0], [1], [0, 0, 1, 1], [], []>} : vector<128x8xbf16>, vector<8x8xbf16>, vector<128x8xf32> -> vector<128x8xf32>
    %50 = arith.addf %44, %49 : vector<128x8xf32>
    %51 = vector.extract_strided_slice %2 {offsets = [2, 2, 0], sizes = [8, 16, 8], strides = [1, 1, 1]} : vector<10x18x8xbf16> to vector<8x16x8xbf16>
    %52 = vector.shape_cast %51 : vector<8x16x8xbf16> to vector<128x8xbf16>
    %c8 = arith.constant 8 : index
    %c0_28 = arith.constant 0 : index
    %c0_29 = arith.constant 0 : index
    %53 = vector.load %arg2[%c8, %c0_28, %c0_29] : memref<9x8x8xbf16, #tpu.memory_space<vmem>>, vector<1x8x8xbf16>
    %54 = vector.shape_cast %53 : vector<1x8x8xbf16> to vector<8x8xbf16>
    %cst_30 = arith.constant dense<0.000000e+00> : vector<128x8xf32>
    %55 = tpu.matmul %52, %54, %cst_30 {dimension_numbers = #tpu.dot_dimension_numbers<[1], [0], [0], [1], [0, 0, 1, 1], [], []>} : vector<128x8xbf16>, vector<8x8xbf16>, vector<128x8xf32> -> vector<128x8xf32>
    %56 = arith.addf %50, %55 : vector<128x8xf32>
    %c0_31 = arith.constant 0 : index
    %c0_32 = arith.constant 0 : index
    %57 = vector.load %arg3[%c0_31, %c0_32] : memref<1x8xf32, #tpu.memory_space<vmem>>, vector<1x8xf32>
    %58 = vector.broadcast %57 : vector<1x8xf32> to vector<128x8xf32>
    %59 = arith.addf %56, %58 : vector<128x8xf32>
    %cst_33 = arith.constant 0.000000e+00 : f32
    %60 = vector.broadcast %cst_33 : f32 to vector<128x8xf32>
    %61 = arith.maximumf %59, %60 : vector<128x8xf32>
    %62 = arith.truncf %61 : vector<128x8xf32> to vector<128x8xbf16>
    %c0_34 = arith.constant 0 : index
    %c0_35 = arith.constant 0 : index
    %c0_36 = arith.constant 0 : index
    %63 = vector.load %arg4[%c0_34, %c0_35, %c0_36] : memref<1x128x8xbf16, #tpu.memory_space<vmem>>, vector<1x128x8xbf16>
    %64 = vector.shape_cast %63 : vector<1x128x8xbf16> to vector<128x8xbf16>
    %65 = vector.shape_cast %62 : vector<128x8xbf16> to vector<1x128x8xbf16>
    tpu.vector_store %arg4[%c0_34, %c0_35, %c0_36], %65 {strides = array<i32>} : memref<1x128x8xbf16, #tpu.memory_space<vmem>>, vector<1x128x8xbf16>,
    return
  }
  func.func @transform_0(%arg0: i32) -> (i32, i32, i32, i32) {
    %c0_i32 = arith.constant 0 : i32
    %c0_i32_0 = arith.constant 0 : i32
    %c0_i32_1 = arith.constant 0 : i32
    %c0_i32_2 = arith.constant 0 : i32
    return %arg0, %c0_i32, %c0_i32_0, %c0_i32_1 : i32, i32, i32, i32
  }
  func.func @transform_1(%arg0: i32) -> (i32, i32, i32) {
    %c0_i32 = arith.constant 0 : i32
    %c0_i32_0 = arith.constant 0 : i32
    %c0_i32_1 = arith.constant 0 : i32
    %c0_i32_2 = arith.constant 0 : i32
    return %c0_i32, %c0_i32_0, %c0_i32_1 : i32, i32, i32
  }
  func.func @transform_2(%arg0: i32) -> (i32, i32) {
    %c0_i32 = arith.constant 0 : i32
    %c0_i32_0 = arith.constant 0 : i32
    %c0_i32_1 = arith.constant 0 : i32
    return %c0_i32, %c0_i32_0 : i32, i32
  }
  func.func @transform_3(%arg0: i32) -> (i32, i32, i32) {
    %c0_i32 = arith.constant 0 : i32
    %c0_i32_0 = arith.constant 0 : i32
    %c0_i32_1 = arith.constant 0 : i32
    return %arg0, %c0_i32, %c0_i32_0 : i32, i32, i32
  }
}

module attributes {stable_mosaic.version = 11 : i64} {
  func.func @_conv3x3_relu_kernel(%arg0: i32, %arg1: memref<1x10x18x8xbf16, #tpu.memory_space<vmem>>, %arg2: memref<9x8x8xbf16, #tpu.memory_space<vmem>>, %arg3: memref<1x8xf32, #tpu.memory_space<vmem>>, %arg4: memref<1x128x8xf32, #tpu.memory_space<vmem>>) attributes {dimension_semantics = [#tpu.dimension_semantics<parallel>], iteration_bounds = array<i64: 4>, scalar_prefetch = 0 : i64, scratch_operands = 0 : i64, tpu.core_type = #tpu.core_type<tc>, window_params = [{transform_indices = @transform_0, window_bounds = array<i64: 1, 10, 18, 8>}, {pipeline_mode = #tpu.pipeline_mode<synchronous>, transform_indices = @transform_1, window_bounds = array<i64: 9, 8, 8>}, {pipeline_mode = #tpu.pipeline_mode<synchronous>, transform_indices = @transform_2, window_bounds = array<i64: 1, 8>}, {transform_indices = @transform_3, window_bounds = array<i64: 1, 128, 8>}]} {
    %cst = arith.constant 0.000000e+00 : f32
    %0 = vector.broadcast %cst : f32 to vector<128x8xf32>
    %c0 = arith.constant 0 : index
    %c0_0 = arith.constant 0 : index
    %c0_1 = arith.constant 0 : index
    %c0_2 = arith.constant 0 : index
    %1 = vector.load %arg1[%c0, %c0_0, %c0_1, %c0_2] : memref<1x10x18x8xbf16, #tpu.memory_space<vmem>>, vector<1x10x18x8xbf16>
    %2 = vector.shape_cast %1 : vector<1x10x18x8xbf16> to vector<10x18x8xbf16>
    %3 = vector.extract_strided_slice %2 {offsets = [0, 0, 0], sizes = [8, 16, 8], strides = [1, 1, 1]} : vector<10x18x8xbf16> to vector<8x16x8xbf16>
    %4 = vector.shape_cast %3 : vector<8x16x8xbf16> to vector<128x8xbf16>
    %c0_3 = arith.constant 0 : index
    %c0_4 = arith.constant 0 : index
    %c0_5 = arith.constant 0 : index
    %5 = vector.load %arg2[%c0_3, %c0_4, %c0_5] : memref<9x8x8xbf16, #tpu.memory_space<vmem>>, vector<1x8x8xbf16>
    %6 = vector.shape_cast %5 : vector<1x8x8xbf16> to vector<8x8xbf16>
    %cst_6 = arith.constant dense<0.000000e+00> : vector<128x8xf32>
    %7 = tpu.matmul %4, %6, %cst_6 {dimension_numbers = #tpu.dot_dimension_numbers<[1], [0], [0], [1], [0, 0, 1, 1], [], []>} : vector<128x8xbf16>, vector<8x8xbf16>, vector<128x8xf32> -> vector<128x8xf32>
    %8 = arith.addf %0, %7 : vector<128x8xf32>
    %9 = vector.extract_strided_slice %2 {offsets = [0, 1, 0], sizes = [8, 16, 8], strides = [1, 1, 1]} : vector<10x18x8xbf16> to vector<8x16x8xbf16>
    %10 = vector.shape_cast %9 : vector<8x16x8xbf16> to vector<128x8xbf16>
    %c1 = arith.constant 1 : index
    %c0_7 = arith.constant 0 : index
    %c0_8 = arith.constant 0 : index
    %11 = vector.load %arg2[%c1, %c0_7, %c0_8] : memref<9x8x8xbf16, #tpu.memory_space<vmem>>, vector<1x8x8xbf16>
    %12 = vector.shape_cast %11 : vector<1x8x8xbf16> to vector<8x8xbf16>
    %cst_9 = arith.constant dense<0.000000e+00> : vector<128x8xf32>
    %13 = tpu.matmul %10, %12, %cst_9 {dimension_numbers = #tpu.dot_dimension_numbers<[1], [0], [0], [1], [0, 0, 1, 1], [], []>} : vector<128x8xbf16>, vector<8x8xbf16>, vector<128x8xf32> -> vector<128x8xf32>
    %14 = arith.addf %8, %13 : vector<128x8xf32>
    %15 = vector.extract_strided_slice %2 {offsets = [0, 2, 0], sizes = [8, 16, 8], strides = [1, 1, 1]} : vector<10x18x8xbf16> to vector<8x16x8xbf16>
    %16 = vector.shape_cast %15 : vector<8x16x8xbf16> to vector<128x8xbf16>
    %c2 = arith.constant 2 : index
    %c0_10 = arith.constant 0 : index
    %c0_11 = arith.constant 0 : index
    %17 = vector.load %arg2[%c2, %c0_10, %c0_11] : memref<9x8x8xbf16, #tpu.memory_space<vmem>>, vector<1x8x8xbf16>
    %18 = vector.shape_cast %17 : vector<1x8x8xbf16> to vector<8x8xbf16>
    %cst_12 = arith.constant dense<0.000000e+00> : vector<128x8xf32>
    %19 = tpu.matmul %16, %18, %cst_12 {dimension_numbers = #tpu.dot_dimension_numbers<[1], [0], [0], [1], [0, 0, 1, 1], [], []>} : vector<128x8xbf16>, vector<8x8xbf16>, vector<128x8xf32> -> vector<128x8xf32>
    %20 = arith.addf %14, %19 : vector<128x8xf32>
    %21 = vector.extract_strided_slice %2 {offsets = [1, 0, 0], sizes = [8, 16, 8], strides = [1, 1, 1]} : vector<10x18x8xbf16> to vector<8x16x8xbf16>
    %22 = vector.shape_cast %21 : vector<8x16x8xbf16> to vector<128x8xbf16>
    %c3 = arith.constant 3 : index
    %c0_13 = arith.constant 0 : index
    %c0_14 = arith.constant 0 : index
    %23 = vector.load %arg2[%c3, %c0_13, %c0_14] : memref<9x8x8xbf16, #tpu.memory_space<vmem>>, vector<1x8x8xbf16>
    %24 = vector.shape_cast %23 : vector<1x8x8xbf16> to vector<8x8xbf16>
    %cst_15 = arith.constant dense<0.000000e+00> : vector<128x8xf32>
    %25 = tpu.matmul %22, %24, %cst_15 {dimension_numbers = #tpu.dot_dimension_numbers<[1], [0], [0], [1], [0, 0, 1, 1], [], []>} : vector<128x8xbf16>, vector<8x8xbf16>, vector<128x8xf32> -> vector<128x8xf32>
    %26 = arith.addf %20, %25 : vector<128x8xf32>
    %27 = vector.extract_strided_slice %2 {offsets = [1, 1, 0], sizes = [8, 16, 8], strides = [1, 1, 1]} : vector<10x18x8xbf16> to vector<8x16x8xbf16>
    %28 = vector.shape_cast %27 : vector<8x16x8xbf16> to vector<128x8xbf16>
    %c4 = arith.constant 4 : index
    %c0_16 = arith.constant 0 : index
    %c0_17 = arith.constant 0 : index
    %29 = vector.load %arg2[%c4, %c0_16, %c0_17] : memref<9x8x8xbf16, #tpu.memory_space<vmem>>, vector<1x8x8xbf16>
    %30 = vector.shape_cast %29 : vector<1x8x8xbf16> to vector<8x8xbf16>
    %cst_18 = arith.constant dense<0.000000e+00> : vector<128x8xf32>
    %31 = tpu.matmul %28, %30, %cst_18 {dimension_numbers = #tpu.dot_dimension_numbers<[1], [0], [0], [1], [0, 0, 1, 1], [], []>} : vector<128x8xbf16>, vector<8x8xbf16>, vector<128x8xf32> -> vector<128x8xf32>
    %32 = arith.addf %26, %31 : vector<128x8xf32>
    %33 = vector.extract_strided_slice %2 {offsets = [1, 2, 0], sizes = [8, 16, 8], strides = [1, 1, 1]} : vector<10x18x8xbf16> to vector<8x16x8xbf16>
    %34 = vector.shape_cast %33 : vector<8x16x8xbf16> to vector<128x8xbf16>
    %c5 = arith.constant 5 : index
    %c0_19 = arith.constant 0 : index
    %c0_20 = arith.constant 0 : index
    %35 = vector.load %arg2[%c5, %c0_19, %c0_20] : memref<9x8x8xbf16, #tpu.memory_space<vmem>>, vector<1x8x8xbf16>
    %36 = vector.shape_cast %35 : vector<1x8x8xbf16> to vector<8x8xbf16>
    %cst_21 = arith.constant dense<0.000000e+00> : vector<128x8xf32>
    %37 = tpu.matmul %34, %36, %cst_21 {dimension_numbers = #tpu.dot_dimension_numbers<[1], [0], [0], [1], [0, 0, 1, 1], [], []>} : vector<128x8xbf16>, vector<8x8xbf16>, vector<128x8xf32> -> vector<128x8xf32>
    %38 = arith.addf %32, %37 : vector<128x8xf32>
    %39 = vector.extract_strided_slice %2 {offsets = [2, 0, 0], sizes = [8, 16, 8], strides = [1, 1, 1]} : vector<10x18x8xbf16> to vector<8x16x8xbf16>
    %40 = vector.shape_cast %39 : vector<8x16x8xbf16> to vector<128x8xbf16>
    %c6 = arith.constant 6 : index
    %c0_22 = arith.constant 0 : index
    %c0_23 = arith.constant 0 : index
    %41 = vector.load %arg2[%c6, %c0_22, %c0_23] : memref<9x8x8xbf16, #tpu.memory_space<vmem>>, vector<1x8x8xbf16>
    %42 = vector.shape_cast %41 : vector<1x8x8xbf16> to vector<8x8xbf16>
    %cst_24 = arith.constant dense<0.000000e+00> : vector<128x8xf32>
    %43 = tpu.matmul %40, %42, %cst_24 {dimension_numbers = #tpu.dot_dimension_numbers<[1], [0], [0], [1], [0, 0, 1, 1], [], []>} : vector<128x8xbf16>, vector<8x8xbf16>, vector<128x8xf32> -> vector<128x8xf32>
    %44 = arith.addf %38, %43 : vector<128x8xf32>
    %45 = vector.extract_strided_slice %2 {offsets = [2, 1, 0], sizes = [8, 16, 8], strides = [1, 1, 1]} : vector<10x18x8xbf16> to vector<8x16x8xbf16>
    %46 = vector.shape_cast %45 : vector<8x16x8xbf16> to vector<128x8xbf16>
    %c7 = arith.constant 7 : index
    %c0_25 = arith.constant 0 : index
    %c0_26 = arith.constant 0 : index
    %47 = vector.load %arg2[%c7, %c0_25, %c0_26] : memref<9x8x8xbf16, #tpu.memory_space<vmem>>, vector<1x8x8xbf16>
    %48 = vector.shape_cast %47 : vector<1x8x8xbf16> to vector<8x8xbf16>
    %cst_27 = arith.constant dense<0.000000e+00> : vector<128x8xf32>
    %49 = tpu.matmul %46, %48, %cst_27 {dimension_numbers = #tpu.dot_dimension_numbers<[1], [0], [0], [1], [0, 0, 1, 1], [], []>} : vector<128x8xbf16>, vector<8x8xbf16>, vector<128x8xf32> -> vector<128x8xf32>
    %50 = arith.addf %44, %49 : vector<128x8xf32>
    %51 = vector.extract_strided_slice %2 {offsets = [2, 2, 0], sizes = [8, 16, 8], strides = [1, 1, 1]} : vector<10x18x8xbf16> to vector<8x16x8xbf16>
    %52 = vector.shape_cast %51 : vector<8x16x8xbf16> to vector<128x8xbf16>
    %c8 = arith.constant 8 : index
    %c0_28 = arith.constant 0 : index
    %c0_29 = arith.constant 0 : index
    %53 = vector.load %arg2[%c8, %c0_28, %c0_29] : memref<9x8x8xbf16, #tpu.memory_space<vmem>>, vector<1x8x8xbf16>
    %54 = vector.shape_cast %53 : vector<1x8x8xbf16> to vector<8x8xbf16>
    %cst_30 = arith.constant dense<0.000000e+00> : vector<128x8xf32>
    %55 = tpu.matmul %52, %54, %cst_30 {dimension_numbers = #tpu.dot_dimension_numbers<[1], [0], [0], [1], [0, 0, 1, 1], [], []>} : vector<128x8xbf16>, vector<8x8xbf16>, vector<128x8xf32> -> vector<128x8xf32>
    %56 = arith.addf %50, %55 : vector<128x8xf32>
    %c0_31 = arith.constant 0 : index
    %c0_32 = arith.constant 0 : index
    %57 = vector.load %arg3[%c0_31, %c0_32] : memref<1x8xf32, #tpu.memory_space<vmem>>, vector<1x8xf32>
    %58 = vector.broadcast %57 : vector<1x8xf32> to vector<128x8xf32>
    %59 = arith.addf %56, %58 : vector<128x8xf32>
    %cst_33 = arith.constant 0.000000e+00 : f32
    %60 = vector.broadcast %cst_33 : f32 to vector<128x8xf32>
    %61 = arith.maximumf %59, %60 : vector<128x8xf32>
    %c0_34 = arith.constant 0 : index
    %c0_35 = arith.constant 0 : index
    %c0_36 = arith.constant 0 : index
    %62 = vector.load %arg4[%c0_34, %c0_35, %c0_36] : memref<1x128x8xf32, #tpu.memory_space<vmem>>, vector<1x128x8xf32>
    %63 = vector.shape_cast %62 : vector<1x128x8xf32> to vector<128x8xf32>
    %64 = vector.shape_cast %61 : vector<128x8xf32> to vector<1x128x8xf32>
    tpu.vector_store %arg4[%c0_34, %c0_35, %c0_36], %64 {strides = array<i32>} : memref<1x128x8xf32, #tpu.memory_space<vmem>>, vector<1x128x8xf32>,
    return
  }
  func.func @transform_0(%arg0: i32) -> (i32, i32, i32, i32) {
    %c0_i32 = arith.constant 0 : i32
    %c0_i32_0 = arith.constant 0 : i32
    %c0_i32_1 = arith.constant 0 : i32
    %c0_i32_2 = arith.constant 0 : i32
    return %arg0, %c0_i32, %c0_i32_0, %c0_i32_1 : i32, i32, i32, i32
  }
  func.func @transform_1(%arg0: i32) -> (i32, i32, i32) {
    %c0_i32 = arith.constant 0 : i32
    %c0_i32_0 = arith.constant 0 : i32
    %c0_i32_1 = arith.constant 0 : i32
    %c0_i32_2 = arith.constant 0 : i32
    return %c0_i32, %c0_i32_0, %c0_i32_1 : i32, i32, i32
  }
  func.func @transform_2(%arg0: i32) -> (i32, i32) {
    %c0_i32 = arith.constant 0 : i32
    %c0_i32_0 = arith.constant 0 : i32
    %c0_i32_1 = arith.constant 0 : i32
    return %c0_i32, %c0_i32_0 : i32, i32
  }
  func.func @transform_3(%arg0: i32) -> (i32, i32, i32) {
    %c0_i32 = arith.constant 0 : i32
    %c0_i32_0 = arith.constant 0 : i32
    %c0_i32_1 = arith.constant 0 : i32
    return %arg0, %c0_i32, %c0_i32_0 : i32, i32, i32
  }
}

module attributes {stable_mosaic.version = 11 : i64} {
  func.func @_conv3x3_relu_kernel(%arg0: i32, %arg1: memref<1x10x18x4xbf16, #tpu.memory_space<vmem>>, %arg2: memref<1x10x18x8xbf16, #tpu.memory_space<vmem>>, %arg3: memref<9x4x8xbf16, #tpu.memory_space<vmem>>, %arg4: memref<9x8x8xbf16, #tpu.memory_space<vmem>>, %arg5: memref<1x8xf32, #tpu.memory_space<vmem>>, %arg6: memref<1x128x8xbf16, #tpu.memory_space<vmem>>) attributes {dimension_semantics = [#tpu.dimension_semantics<parallel>], iteration_bounds = array<i64: 4>, scalar_prefetch = 0 : i64, scratch_operands = 0 : i64, tpu.core_type = #tpu.core_type<tc>, window_params = [{transform_indices = @transform_0, window_bounds = array<i64: 1, 10, 18, 4>}, {transform_indices = @transform_1, window_bounds = array<i64: 1, 10, 18, 8>}, {pipeline_mode = #tpu.pipeline_mode<synchronous>, transform_indices = @transform_2, window_bounds = array<i64: 9, 4, 8>}, {pipeline_mode = #tpu.pipeline_mode<synchronous>, transform_indices = @transform_3, window_bounds = array<i64: 9, 8, 8>}, {pipeline_mode = #tpu.pipeline_mode<synchronous>, transform_indices = @transform_4, window_bounds = array<i64: 1, 8>}, {transform_indices = @transform_5, window_bounds = array<i64: 1, 128, 8>}]} {
    %cst = arith.constant 0.000000e+00 : f32
    %0 = vector.broadcast %cst : f32 to vector<128x8xf32>
    %c0 = arith.constant 0 : index
    %c0_0 = arith.constant 0 : index
    %c0_1 = arith.constant 0 : index
    %c0_2 = arith.constant 0 : index
    %1 = vector.load %arg1[%c0, %c0_0, %c0_1, %c0_2] : memref<1x10x18x4xbf16, #tpu.memory_space<vmem>>, vector<1x10x18x4xbf16>
    %2 = vector.shape_cast %1 : vector<1x10x18x4xbf16> to vector<10x18x4xbf16>
    %3 = vector.extract_strided_slice %2 {offsets = [0, 0, 0], sizes = [8, 16, 4], strides = [1, 1, 1]} : vector<10x18x4xbf16> to vector<8x16x4xbf16>
    %4 = vector.shape_cast %3 : vector<8x16x4xbf16> to vector<128x4xbf16>
    %c0_3 = arith.constant 0 : index
    %c0_4 = arith.constant 0 : index
    %c0_5 = arith.constant 0 : index
    %5 = vector.load %arg3[%c0_3, %c0_4, %c0_5] : memref<9x4x8xbf16, #tpu.memory_space<vmem>>, vector<1x4x8xbf16>
    %6 = vector.shape_cast %5 : vector<1x4x8xbf16> to vector<4x8xbf16>
    %cst_6 = arith.constant dense<0.000000e+00> : vector<128x8xf32>
    %7 = tpu.matmul %4, %6, %cst_6 {dimension_numbers = #tpu.dot_dimension_numbers<[1], [0], [0], [1], [0, 0, 1, 1], [], []>} : vector<128x4xbf16>, vector<4x8xbf16>, vector<128x8xf32> -> vector<128x8xf32>
    %8 = arith.addf %0, %7 : vector<128x8xf32>
    %9 = vector.extract_strided_slice %2 {offsets = [0, 1, 0], sizes = [8, 16, 4], strides = [1, 1, 1]} : vector<10x18x4xbf16> to vector<8x16x4xbf16>
    %10 = vector.shape_cast %9 : vector<8x16x4xbf16> to vector<128x4xbf16>
    %c1 = arith.constant 1 : index
    %c0_7 = arith.constant 0 : index
    %c0_8 = arith.constant 0 : index
    %11 = vector.load %arg3[%c1, %c0_7, %c0_8] : memref<9x4x8xbf16, #tpu.memory_space<vmem>>, vector<1x4x8xbf16>
    %12 = vector.shape_cast %11 : vector<1x4x8xbf16> to vector<4x8xbf16>
    %cst_9 = arith.constant dense<0.000000e+00> : vector<128x8xf32>
    %13 = tpu.matmul %10, %12, %cst_9 {dimension_numbers = #tpu.dot_dimension_numbers<[1], [0], [0], [1], [0, 0, 1, 1], [], []>} : vector<128x4xbf16>, vector<4x8xbf16>, vector<128x8xf32> -> vector<128x8xf32>
    %14 = arith.addf %8, %13 : vector<128x8xf32>
    %15 = vector.extract_strided_slice %2 {offsets = [0, 2, 0], sizes = [8, 16, 4], strides = [1, 1, 1]} : vector<10x18x4xbf16> to vector<8x16x4xbf16>
    %16 = vector.shape_cast %15 : vector<8x16x4xbf16> to vector<128x4xbf16>
    %c2 = arith.constant 2 : index
    %c0_10 = arith.constant 0 : index
    %c0_11 = arith.constant 0 : index
    %17 = vector.load %arg3[%c2, %c0_10, %c0_11] : memref<9x4x8xbf16, #tpu.memory_space<vmem>>, vector<1x4x8xbf16>
    %18 = vector.shape_cast %17 : vector<1x4x8xbf16> to vector<4x8xbf16>
    %cst_12 = arith.constant dense<0.000000e+00> : vector<128x8xf32>
    %19 = tpu.matmul %16, %18, %cst_12 {dimension_numbers = #tpu.dot_dimension_numbers<[1], [0], [0], [1], [0, 0, 1, 1], [], []>} : vector<128x4xbf16>, vector<4x8xbf16>, vector<128x8xf32> -> vector<128x8xf32>
    %20 = arith.addf %14, %19 : vector<128x8xf32>
    %21 = vector.extract_strided_slice %2 {offsets = [1, 0, 0], sizes = [8, 16, 4], strides = [1, 1, 1]} : vector<10x18x4xbf16> to vector<8x16x4xbf16>
    %22 = vector.shape_cast %21 : vector<8x16x4xbf16> to vector<128x4xbf16>
    %c3 = arith.constant 3 : index
    %c0_13 = arith.constant 0 : index
    %c0_14 = arith.constant 0 : index
    %23 = vector.load %arg3[%c3, %c0_13, %c0_14] : memref<9x4x8xbf16, #tpu.memory_space<vmem>>, vector<1x4x8xbf16>
    %24 = vector.shape_cast %23 : vector<1x4x8xbf16> to vector<4x8xbf16>
    %cst_15 = arith.constant dense<0.000000e+00> : vector<128x8xf32>
    %25 = tpu.matmul %22, %24, %cst_15 {dimension_numbers = #tpu.dot_dimension_numbers<[1], [0], [0], [1], [0, 0, 1, 1], [], []>} : vector<128x4xbf16>, vector<4x8xbf16>, vector<128x8xf32> -> vector<128x8xf32>
    %26 = arith.addf %20, %25 : vector<128x8xf32>
    %27 = vector.extract_strided_slice %2 {offsets = [1, 1, 0], sizes = [8, 16, 4], strides = [1, 1, 1]} : vector<10x18x4xbf16> to vector<8x16x4xbf16>
    %28 = vector.shape_cast %27 : vector<8x16x4xbf16> to vector<128x4xbf16>
    %c4 = arith.constant 4 : index
    %c0_16 = arith.constant 0 : index
    %c0_17 = arith.constant 0 : index
    %29 = vector.load %arg3[%c4, %c0_16, %c0_17] : memref<9x4x8xbf16, #tpu.memory_space<vmem>>, vector<1x4x8xbf16>
    %30 = vector.shape_cast %29 : vector<1x4x8xbf16> to vector<4x8xbf16>
    %cst_18 = arith.constant dense<0.000000e+00> : vector<128x8xf32>
    %31 = tpu.matmul %28, %30, %cst_18 {dimension_numbers = #tpu.dot_dimension_numbers<[1], [0], [0], [1], [0, 0, 1, 1], [], []>} : vector<128x4xbf16>, vector<4x8xbf16>, vector<128x8xf32> -> vector<128x8xf32>
    %32 = arith.addf %26, %31 : vector<128x8xf32>
    %33 = vector.extract_strided_slice %2 {offsets = [1, 2, 0], sizes = [8, 16, 4], strides = [1, 1, 1]} : vector<10x18x4xbf16> to vector<8x16x4xbf16>
    %34 = vector.shape_cast %33 : vector<8x16x4xbf16> to vector<128x4xbf16>
    %c5 = arith.constant 5 : index
    %c0_19 = arith.constant 0 : index
    %c0_20 = arith.constant 0 : index
    %35 = vector.load %arg3[%c5, %c0_19, %c0_20] : memref<9x4x8xbf16, #tpu.memory_space<vmem>>, vector<1x4x8xbf16>
    %36 = vector.shape_cast %35 : vector<1x4x8xbf16> to vector<4x8xbf16>
    %cst_21 = arith.constant dense<0.000000e+00> : vector<128x8xf32>
    %37 = tpu.matmul %34, %36, %cst_21 {dimension_numbers = #tpu.dot_dimension_numbers<[1], [0], [0], [1], [0, 0, 1, 1], [], []>} : vector<128x4xbf16>, vector<4x8xbf16>, vector<128x8xf32> -> vector<128x8xf32>
    %38 = arith.addf %32, %37 : vector<128x8xf32>
    %39 = vector.extract_strided_slice %2 {offsets = [2, 0, 0], sizes = [8, 16, 4], strides = [1, 1, 1]} : vector<10x18x4xbf16> to vector<8x16x4xbf16>
    %40 = vector.shape_cast %39 : vector<8x16x4xbf16> to vector<128x4xbf16>
    %c6 = arith.constant 6 : index
    %c0_22 = arith.constant 0 : index
    %c0_23 = arith.constant 0 : index
    %41 = vector.load %arg3[%c6, %c0_22, %c0_23] : memref<9x4x8xbf16, #tpu.memory_space<vmem>>, vector<1x4x8xbf16>
    %42 = vector.shape_cast %41 : vector<1x4x8xbf16> to vector<4x8xbf16>
    %cst_24 = arith.constant dense<0.000000e+00> : vector<128x8xf32>
    %43 = tpu.matmul %40, %42, %cst_24 {dimension_numbers = #tpu.dot_dimension_numbers<[1], [0], [0], [1], [0, 0, 1, 1], [], []>} : vector<128x4xbf16>, vector<4x8xbf16>, vector<128x8xf32> -> vector<128x8xf32>
    %44 = arith.addf %38, %43 : vector<128x8xf32>
    %45 = vector.extract_strided_slice %2 {offsets = [2, 1, 0], sizes = [8, 16, 4], strides = [1, 1, 1]} : vector<10x18x4xbf16> to vector<8x16x4xbf16>
    %46 = vector.shape_cast %45 : vector<8x16x4xbf16> to vector<128x4xbf16>
    %c7 = arith.constant 7 : index
    %c0_25 = arith.constant 0 : index
    %c0_26 = arith.constant 0 : index
    %47 = vector.load %arg3[%c7, %c0_25, %c0_26] : memref<9x4x8xbf16, #tpu.memory_space<vmem>>, vector<1x4x8xbf16>
    %48 = vector.shape_cast %47 : vector<1x4x8xbf16> to vector<4x8xbf16>
    %cst_27 = arith.constant dense<0.000000e+00> : vector<128x8xf32>
    %49 = tpu.matmul %46, %48, %cst_27 {dimension_numbers = #tpu.dot_dimension_numbers<[1], [0], [0], [1], [0, 0, 1, 1], [], []>} : vector<128x4xbf16>, vector<4x8xbf16>, vector<128x8xf32> -> vector<128x8xf32>
    %50 = arith.addf %44, %49 : vector<128x8xf32>
    %51 = vector.extract_strided_slice %2 {offsets = [2, 2, 0], sizes = [8, 16, 4], strides = [1, 1, 1]} : vector<10x18x4xbf16> to vector<8x16x4xbf16>
    %52 = vector.shape_cast %51 : vector<8x16x4xbf16> to vector<128x4xbf16>
    %c8 = arith.constant 8 : index
    %c0_28 = arith.constant 0 : index
    %c0_29 = arith.constant 0 : index
    %53 = vector.load %arg3[%c8, %c0_28, %c0_29] : memref<9x4x8xbf16, #tpu.memory_space<vmem>>, vector<1x4x8xbf16>
    %54 = vector.shape_cast %53 : vector<1x4x8xbf16> to vector<4x8xbf16>
    %cst_30 = arith.constant dense<0.000000e+00> : vector<128x8xf32>
    %55 = tpu.matmul %52, %54, %cst_30 {dimension_numbers = #tpu.dot_dimension_numbers<[1], [0], [0], [1], [0, 0, 1, 1], [], []>} : vector<128x4xbf16>, vector<4x8xbf16>, vector<128x8xf32> -> vector<128x8xf32>
    %56 = arith.addf %50, %55 : vector<128x8xf32>
    %c0_31 = arith.constant 0 : index
    %c0_32 = arith.constant 0 : index
    %c0_33 = arith.constant 0 : index
    %c0_34 = arith.constant 0 : index
    %57 = vector.load %arg2[%c0_31, %c0_32, %c0_33, %c0_34] : memref<1x10x18x8xbf16, #tpu.memory_space<vmem>>, vector<1x10x18x8xbf16>
    %58 = vector.shape_cast %57 : vector<1x10x18x8xbf16> to vector<10x18x8xbf16>
    %59 = vector.extract_strided_slice %58 {offsets = [0, 0, 0], sizes = [8, 16, 8], strides = [1, 1, 1]} : vector<10x18x8xbf16> to vector<8x16x8xbf16>
    %60 = vector.shape_cast %59 : vector<8x16x8xbf16> to vector<128x8xbf16>
    %c0_35 = arith.constant 0 : index
    %c0_36 = arith.constant 0 : index
    %c0_37 = arith.constant 0 : index
    %61 = vector.load %arg4[%c0_35, %c0_36, %c0_37] : memref<9x8x8xbf16, #tpu.memory_space<vmem>>, vector<1x8x8xbf16>
    %62 = vector.shape_cast %61 : vector<1x8x8xbf16> to vector<8x8xbf16>
    %cst_38 = arith.constant dense<0.000000e+00> : vector<128x8xf32>
    %63 = tpu.matmul %60, %62, %cst_38 {dimension_numbers = #tpu.dot_dimension_numbers<[1], [0], [0], [1], [0, 0, 1, 1], [], []>} : vector<128x8xbf16>, vector<8x8xbf16>, vector<128x8xf32> -> vector<128x8xf32>
    %64 = arith.addf %56, %63 : vector<128x8xf32>
    %65 = vector.extract_strided_slice %58 {offsets = [0, 1, 0], sizes = [8, 16, 8], strides = [1, 1, 1]} : vector<10x18x8xbf16> to vector<8x16x8xbf16>
    %66 = vector.shape_cast %65 : vector<8x16x8xbf16> to vector<128x8xbf16>
    %c1_39 = arith.constant 1 : index
    %c0_40 = arith.constant 0 : index
    %c0_41 = arith.constant 0 : index
    %67 = vector.load %arg4[%c1_39, %c0_40, %c0_41] : memref<9x8x8xbf16, #tpu.memory_space<vmem>>, vector<1x8x8xbf16>
    %68 = vector.shape_cast %67 : vector<1x8x8xbf16> to vector<8x8xbf16>
    %cst_42 = arith.constant dense<0.000000e+00> : vector<128x8xf32>
    %69 = tpu.matmul %66, %68, %cst_42 {dimension_numbers = #tpu.dot_dimension_numbers<[1], [0], [0], [1], [0, 0, 1, 1], [], []>} : vector<128x8xbf16>, vector<8x8xbf16>, vector<128x8xf32> -> vector<128x8xf32>
    %70 = arith.addf %64, %69 : vector<128x8xf32>
    %71 = vector.extract_strided_slice %58 {offsets = [0, 2, 0], sizes = [8, 16, 8], strides = [1, 1, 1]} : vector<10x18x8xbf16> to vector<8x16x8xbf16>
    %72 = vector.shape_cast %71 : vector<8x16x8xbf16> to vector<128x8xbf16>
    %c2_43 = arith.constant 2 : index
    %c0_44 = arith.constant 0 : index
    %c0_45 = arith.constant 0 : index
    %73 = vector.load %arg4[%c2_43, %c0_44, %c0_45] : memref<9x8x8xbf16, #tpu.memory_space<vmem>>, vector<1x8x8xbf16>
    %74 = vector.shape_cast %73 : vector<1x8x8xbf16> to vector<8x8xbf16>
    %cst_46 = arith.constant dense<0.000000e+00> : vector<128x8xf32>
    %75 = tpu.matmul %72, %74, %cst_46 {dimension_numbers = #tpu.dot_dimension_numbers<[1], [0], [0], [1], [0, 0, 1, 1], [], []>} : vector<128x8xbf16>, vector<8x8xbf16>, vector<128x8xf32> -> vector<128x8xf32>
    %76 = arith.addf %70, %75 : vector<128x8xf32>
    %77 = vector.extract_strided_slice %58 {offsets = [1, 0, 0], sizes = [8, 16, 8], strides = [1, 1, 1]} : vector<10x18x8xbf16> to vector<8x16x8xbf16>
    %78 = vector.shape_cast %77 : vector<8x16x8xbf16> to vector<128x8xbf16>
    %c3_47 = arith.constant 3 : index
    %c0_48 = arith.constant 0 : index
    %c0_49 = arith.constant 0 : index
    %79 = vector.load %arg4[%c3_47, %c0_48, %c0_49] : memref<9x8x8xbf16, #tpu.memory_space<vmem>>, vector<1x8x8xbf16>
    %80 = vector.shape_cast %79 : vector<1x8x8xbf16> to vector<8x8xbf16>
    %cst_50 = arith.constant dense<0.000000e+00> : vector<128x8xf32>
    %81 = tpu.matmul %78, %80, %cst_50 {dimension_numbers = #tpu.dot_dimension_numbers<[1], [0], [0], [1], [0, 0, 1, 1], [], []>} : vector<128x8xbf16>, vector<8x8xbf16>, vector<128x8xf32> -> vector<128x8xf32>
    %82 = arith.addf %76, %81 : vector<128x8xf32>
    %83 = vector.extract_strided_slice %58 {offsets = [1, 1, 0], sizes = [8, 16, 8], strides = [1, 1, 1]} : vector<10x18x8xbf16> to vector<8x16x8xbf16>
    %84 = vector.shape_cast %83 : vector<8x16x8xbf16> to vector<128x8xbf16>
    %c4_51 = arith.constant 4 : index
    %c0_52 = arith.constant 0 : index
    %c0_53 = arith.constant 0 : index
    %85 = vector.load %arg4[%c4_51, %c0_52, %c0_53] : memref<9x8x8xbf16, #tpu.memory_space<vmem>>, vector<1x8x8xbf16>
    %86 = vector.shape_cast %85 : vector<1x8x8xbf16> to vector<8x8xbf16>
    %cst_54 = arith.constant dense<0.000000e+00> : vector<128x8xf32>
    %87 = tpu.matmul %84, %86, %cst_54 {dimension_numbers = #tpu.dot_dimension_numbers<[1], [0], [0], [1], [0, 0, 1, 1], [], []>} : vector<128x8xbf16>, vector<8x8xbf16>, vector<128x8xf32> -> vector<128x8xf32>
    %88 = arith.addf %82, %87 : vector<128x8xf32>
    %89 = vector.extract_strided_slice %58 {offsets = [1, 2, 0], sizes = [8, 16, 8], strides = [1, 1, 1]} : vector<10x18x8xbf16> to vector<8x16x8xbf16>
    %90 = vector.shape_cast %89 : vector<8x16x8xbf16> to vector<128x8xbf16>
    %c5_55 = arith.constant 5 : index
    %c0_56 = arith.constant 0 : index
    %c0_57 = arith.constant 0 : index
    %91 = vector.load %arg4[%c5_55, %c0_56, %c0_57] : memref<9x8x8xbf16, #tpu.memory_space<vmem>>, vector<1x8x8xbf16>
    %92 = vector.shape_cast %91 : vector<1x8x8xbf16> to vector<8x8xbf16>
    %cst_58 = arith.constant dense<0.000000e+00> : vector<128x8xf32>
    %93 = tpu.matmul %90, %92, %cst_58 {dimension_numbers = #tpu.dot_dimension_numbers<[1], [0], [0], [1], [0, 0, 1, 1], [], []>} : vector<128x8xbf16>, vector<8x8xbf16>, vector<128x8xf32> -> vector<128x8xf32>
    %94 = arith.addf %88, %93 : vector<128x8xf32>
    %95 = vector.extract_strided_slice %58 {offsets = [2, 0, 0], sizes = [8, 16, 8], strides = [1, 1, 1]} : vector<10x18x8xbf16> to vector<8x16x8xbf16>
    %96 = vector.shape_cast %95 : vector<8x16x8xbf16> to vector<128x8xbf16>
    %c6_59 = arith.constant 6 : index
    %c0_60 = arith.constant 0 : index
    %c0_61 = arith.constant 0 : index
    %97 = vector.load %arg4[%c6_59, %c0_60, %c0_61] : memref<9x8x8xbf16, #tpu.memory_space<vmem>>, vector<1x8x8xbf16>
    %98 = vector.shape_cast %97 : vector<1x8x8xbf16> to vector<8x8xbf16>
    %cst_62 = arith.constant dense<0.000000e+00> : vector<128x8xf32>
    %99 = tpu.matmul %96, %98, %cst_62 {dimension_numbers = #tpu.dot_dimension_numbers<[1], [0], [0], [1], [0, 0, 1, 1], [], []>} : vector<128x8xbf16>, vector<8x8xbf16>, vector<128x8xf32> -> vector<128x8xf32>
    %100 = arith.addf %94, %99 : vector<128x8xf32>
    %101 = vector.extract_strided_slice %58 {offsets = [2, 1, 0], sizes = [8, 16, 8], strides = [1, 1, 1]} : vector<10x18x8xbf16> to vector<8x16x8xbf16>
    %102 = vector.shape_cast %101 : vector<8x16x8xbf16> to vector<128x8xbf16>
    %c7_63 = arith.constant 7 : index
    %c0_64 = arith.constant 0 : index
    %c0_65 = arith.constant 0 : index
    %103 = vector.load %arg4[%c7_63, %c0_64, %c0_65] : memref<9x8x8xbf16, #tpu.memory_space<vmem>>, vector<1x8x8xbf16>
    %104 = vector.shape_cast %103 : vector<1x8x8xbf16> to vector<8x8xbf16>
    %cst_66 = arith.constant dense<0.000000e+00> : vector<128x8xf32>
    %105 = tpu.matmul %102, %104, %cst_66 {dimension_numbers = #tpu.dot_dimension_numbers<[1], [0], [0], [1], [0, 0, 1, 1], [], []>} : vector<128x8xbf16>, vector<8x8xbf16>, vector<128x8xf32> -> vector<128x8xf32>
    %106 = arith.addf %100, %105 : vector<128x8xf32>
    %107 = vector.extract_strided_slice %58 {offsets = [2, 2, 0], sizes = [8, 16, 8], strides = [1, 1, 1]} : vector<10x18x8xbf16> to vector<8x16x8xbf16>
    %108 = vector.shape_cast %107 : vector<8x16x8xbf16> to vector<128x8xbf16>
    %c8_67 = arith.constant 8 : index
    %c0_68 = arith.constant 0 : index
    %c0_69 = arith.constant 0 : index
    %109 = vector.load %arg4[%c8_67, %c0_68, %c0_69] : memref<9x8x8xbf16, #tpu.memory_space<vmem>>, vector<1x8x8xbf16>
    %110 = vector.shape_cast %109 : vector<1x8x8xbf16> to vector<8x8xbf16>
    %cst_70 = arith.constant dense<0.000000e+00> : vector<128x8xf32>
    %111 = tpu.matmul %108, %110, %cst_70 {dimension_numbers = #tpu.dot_dimension_numbers<[1], [0], [0], [1], [0, 0, 1, 1], [], []>} : vector<128x8xbf16>, vector<8x8xbf16>, vector<128x8xf32> -> vector<128x8xf32>
    %112 = arith.addf %106, %111 : vector<128x8xf32>
    %c0_71 = arith.constant 0 : index
    %c0_72 = arith.constant 0 : index
    %113 = vector.load %arg5[%c0_71, %c0_72] : memref<1x8xf32, #tpu.memory_space<vmem>>, vector<1x8xf32>
    %114 = vector.broadcast %113 : vector<1x8xf32> to vector<128x8xf32>
    %115 = arith.addf %112, %114 : vector<128x8xf32>
    %cst_73 = arith.constant 0.000000e+00 : f32
    %116 = vector.broadcast %cst_73 : f32 to vector<128x8xf32>
    %117 = arith.maximumf %115, %116 : vector<128x8xf32>
    %118 = arith.truncf %117 : vector<128x8xf32> to vector<128x8xbf16>
    %c0_74 = arith.constant 0 : index
    %c0_75 = arith.constant 0 : index
    %c0_76 = arith.constant 0 : index
    %119 = vector.load %arg6[%c0_74, %c0_75, %c0_76] : memref<1x128x8xbf16, #tpu.memory_space<vmem>>, vector<1x128x8xbf16>
    %120 = vector.shape_cast %119 : vector<1x128x8xbf16> to vector<128x8xbf16>
    %121 = vector.shape_cast %118 : vector<128x8xbf16> to vector<1x128x8xbf16>
    tpu.vector_store %arg6[%c0_74, %c0_75, %c0_76], %121 {strides = array<i32>} : memref<1x128x8xbf16, #tpu.memory_space<vmem>>, vector<1x128x8xbf16>,
    return
  }
  func.func @transform_0(%arg0: i32) -> (i32, i32, i32, i32) {
    %c0_i32 = arith.constant 0 : i32
    %c0_i32_0 = arith.constant 0 : i32
    %c0_i32_1 = arith.constant 0 : i32
    %c0_i32_2 = arith.constant 0 : i32
    return %arg0, %c0_i32, %c0_i32_0, %c0_i32_1 : i32, i32, i32, i32
  }
  func.func @transform_1(%arg0: i32) -> (i32, i32, i32, i32) {
    %c0_i32 = arith.constant 0 : i32
    %c0_i32_0 = arith.constant 0 : i32
    %c0_i32_1 = arith.constant 0 : i32
    %c0_i32_2 = arith.constant 0 : i32
    return %arg0, %c0_i32, %c0_i32_0, %c0_i32_1 : i32, i32, i32, i32
  }
  func.func @transform_2(%arg0: i32) -> (i32, i32, i32) {
    %c0_i32 = arith.constant 0 : i32
    %c0_i32_0 = arith.constant 0 : i32
    %c0_i32_1 = arith.constant 0 : i32
    %c0_i32_2 = arith.constant 0 : i32
    return %c0_i32, %c0_i32_0, %c0_i32_1 : i32, i32, i32
  }
  func.func @transform_3(%arg0: i32) -> (i32, i32, i32) {
    %c0_i32 = arith.constant 0 : i32
    %c0_i32_0 = arith.constant 0 : i32
    %c0_i32_1 = arith.constant 0 : i32
    %c0_i32_2 = arith.constant 0 : i32
    return %c0_i32, %c0_i32_0, %c0_i32_1 : i32, i32, i32
  }
  func.func @transform_4(%arg0: i32) -> (i32, i32) {
    %c0_i32 = arith.constant 0 : i32
    %c0_i32_0 = arith.constant 0 : i32
    %c0_i32_1 = arith.constant 0 : i32
    return %c0_i32, %c0_i32_0 : i32, i32
  }
  func.func @transform_5(%arg0: i32) -> (i32, i32, i32) {
    %c0_i32 = arith.constant 0 : i32
    %c0_i32_0 = arith.constant 0 : i32
    %c0_i32_1 = arith.constant 0 : i32
    return %arg0, %c0_i32, %c0_i32_0 : i32, i32, i32
  }
}

</mosaic_0001>

<bundles_post_ra>
// kernel: unet_up_block.4
= control target key start
LH: loop header
LB: loop body
LE: loop exit
PB: predicated region body
PF: predicated region fallthrough
CT: control target
= control target key end

     0   :  { %s1520_s0 = inlined_call_operand.vmem [shape: f32[2,8,16,16], index: 0, kind: input, shape index: {}]   ;;  %s1521_s1 = inlined_call_operand.vmem [shape: f32[2,8,16,16], index: 1, kind: input, shape index: {}]   ;;  %s1522_s2 = inlined_call_operand.vmem [shape: f32[2,8,16,16], index: 2, kind: input, shape index: {}]   ;;  %s1523_s3 = inlined_call_operand.vmem [shape: f32[2,8,16,16], index: 3, kind: input, shape index: {}]   ;;  %s1524_s4 = inlined_call_operand.vmem [shape: f32[16,16], index: 4, kind: input, shape index: {}]   ;;  %s1525_s5 = inlined_call_operand.vmem [shape: f32[16,16], index: 5, kind: input, shape index: {}]   ;;  %s1526_s6 = inlined_call_operand.vmem [shape: f32[16,16], index: 6, kind: input, shape index: {}]   ;;  %s1527_s7 = inlined_call_operand.vmem [shape: f32[16,16], index: 7, kind: input, shape index: {}]   ;;  %s1528_s8 = inlined_call_operand.vmem [shape: bf16[2,8,16,16], index: 8, kind: output, shape index: {}]  }
   0x1   :  { %1532 = sst [smem:[#allocation9_spill]] %s1520_s0 }
   0x2   :  { %1533 = sst [smem:[#allocation10_spill]] %s1521_s1 }
   0x3   :  { %1534 = sst [smem:[#allocation11_spill]] %s1522_s2 }
   0x4   :  { %1535 = sst [smem:[#allocation12_spill]] %s1523_s3 }
   0x5   :  { %s1267_s27 = smov 0   ;;  %s1269_s28 = smov 0  }
   0x6   :  { %s1271_s29 = smov 0   ;;  %s1273_s30 = smov 0  }
   0x7   :  { %s1275_s9 = smov 0   ;;  %s1277_s10 = smov 0  }
   0x8   :  { %s1279_s11 = smov 0  }
   0x9 LB: > { %s27_s12 = sadd.s32 1, %s1212_s9  ;;  %s30_s13 = sadd.s32 1, %s1216_s10  ;;  %s1220_s11 = sphi %s1279_s11, %s18_s11   ;;  %s1216_s10 = sphi %s1277_s10, %s1552_s10   ;;  %s1212_s9 = sphi %s1275_s9, %s1551_s9   ;;  %s1208_s30 = sphi %s1273_s30, %s1550_s30   ;;  %s1204_s29 = sphi %s1271_s29, %s1549_s29   ;;  %s1200_s28 = sphi %s1269_s28, %s1548_s28   ;;  %s1196_s27 = sphi %s1267_s27, %s1547_s27  }
   0xa   : > { %p28_p0 = scmp.ge.s32.totalorder %s27_s12, 2  ;;  %s1079_s14 = sadd.s32 4294967295, %s1220_s11  }
   0xb   : > { %p46_p1 = scmp.ne.s32.totalorder %s1200_s28, %s1196_s27  ;;  %p47_p2 = scmp.eq.s32.totalorder %s1220_s11, 0 }
   0xc   : > { %s1554_s12 = smov (%p28_p0, %s27_s12), 0  ;;  %s1556_s13 = smov (!%p28_p0, %s30_s13), %s1216_s10 }
   0xd   : > { %1536 = sst [smem:[#allocation7_spill]] %s1554_s12  ;;  %p32_p3 = scmp.ge.s32.totalorder %s1556_s13, 2 }
   0xe   : > { %p266_p4 = scmp.eq.s32.totalorder %s1079_s14, 3  ;;  %s35_s15 = ssub.s32 %s1212_s9, %s1554_s12 }
   0xf   : > { %p1313_p5 = por %p47_p2, %p46_p1  ;;  %s1558_s13 = smov (%p32_p3, %s1556_s13), 0 }
  0x10   : > { %1538 = sst [smem:[#allocation8_spill]] %s1558_s13  ;;  %p1319_p6 = por %p266_p4, %p46_p1 }
  0x11   : > { %s34_s18 = ssub.s32 %s1216_s10, %s1558_s13  ;;  %s39_s20 = sadd.s32 1, %s1200_s28 }
  0x12   : > { %s36_s19 = sor.u32 %s35_s15, %s34_s18  ;;  %p1082_p8 = scmp.ge.s32.totalorder %s1220_s11, 4 }
  0x13   : > { %p37_p7 = scmp.eq.s32.totalorder %s36_s19, 0 }
  0x14   : > { %288 = sbr.rel (%p1082_p8) target bundleno = 81 (0x51), region = 16 }
  0x15   : > { %s1327_s21 = scalar_select %p37_p7, %s1200_s28, %s39_s20  }
  0x19   : > { %291 = sbr.rel (!%p1313_p5) target bundleno = 39 (0x27), region = 20  ;;  %s293_s22 = sand.u32 (%p1313_p5), 1, %s1200_s28  }
  0x1a   : > { %s1084_s23 = sshll.u32 (%p1313_p5), %s1216_s10, 4  ;;  %s1083_s24 = sshll.u32 (%p1313_p5), %s293_s22, 6 }
  0x1b   : > { %s297_s25 = sadd.s32 (%p1313_p5), %s1212_s9, %s1084_s23  ;;  %s1540_s0 = sld [smem:[#allocation9_spill]] (%p1313_p5) }
  0x1c   : > { %s1085_s26 = sshll.u32 (%p1313_p5), %s297_s25, 3  ;;  %s295_s19 = scalar_lea.vmem (%p1313_p5), [#allocation2], %s1083_s24 }
  0x21   : > { %s299_s18 = scalar_lea.vmem %s1540_s0, %s1085_s26 }
  0x22   : > { %v342_v0 = vld [vmem:[%s299_s18] sm:$0xff]  ;;  %v344_v1 = vld [vmem:[%s299_s18 + $0x10] sm:$0xff] }
  0x23   : > { %v346_v2 = vld [vmem:[%s299_s18 + $0x20] sm:$0xff]  ;;  %343 = vst [vmem:[%s295_s19] sm:$0xff] %v342_v0  ;;  %345 = vst [vmem:[%s295_s19 + $0x8] sm:$0xff] %v344_v1  ;;  %v348_v3 = vld [vmem:[%s299_s18 + $0x30] sm:$0xff] }
  0x24   : > { %347 = vst [vmem:[%s295_s19 + $0x10] sm:$0xff] %v346_v2  ;;  %v350_v4 = vld [vmem:[%s299_s18 + $0x40] sm:$0xff]  ;;  %v352_v5 = vld [vmem:[%s299_s18 + $0x50] sm:$0xff]  ;;  %349 = vst [vmem:[%s295_s19 + $0x18] sm:$0xff] %v348_v3 }
  0x25   : > { %351 = vst [vmem:[%s295_s19 + $0x20] sm:$0xff] %v350_v4  ;;  %353 = vst [vmem:[%s295_s19 + $0x28] sm:$0xff] %v352_v5  ;;  %v354_v6 = vld [vmem:[%s299_s18 + $0x60] sm:$0xff]  ;;  %v356_v7 = vld [vmem:[%s299_s18 + $0x70] sm:$0xff] }
  0x26   : > { %355 = vst [vmem:[%s295_s19 + $0x30] sm:$0xff] %v354_v6  ;;  %357 = vst [vmem:[%s295_s19 + $0x38] sm:$0xff] %v356_v7 }
  0x27 PF: > { %363 = sbr.rel (!%p1313_p5) target bundleno = 53 (0x35), region = 58  ;;  %s365_s20 = sand.u32 (%p1313_p5), 1, %s1200_s28  }
  0x28   : > { %s1087_s22 = sshll.u32 (%p1313_p5), %s1216_s10, 4  ;;  %s1086_s23 = sshll.u32 (%p1313_p5), %s365_s20, 6 }
  0x29   : > { %s369_s24 = sadd.s32 (%p1313_p5), %s1212_s9, %s1087_s22  ;;  %s1541_s1 = sld [smem:[#allocation10_spill]] (%p1313_p5) }
  0x2a   : > { %s1088_s25 = sshll.u32 (%p1313_p5), %s369_s24, 3  ;;  %s367_s18 = scalar_lea.vmem (%p1313_p5), [#allocation3], %s1086_s23 }
  0x2f   : > { %s371_s15 = scalar_lea.vmem %s1541_s1, %s1088_s25 }
  0x30   : > { %v414_v8 = vld [vmem:[%s371_s15] sm:$0xff]  ;;  %v416_v9 = vld [vmem:[%s371_s15 + $0x10] sm:$0xff] }
  0x31   : > { %v418_v10 = vld [vmem:[%s371_s15 + $0x20] sm:$0xff]  ;;  %415 = vst [vmem:[%s367_s18] sm:$0xff] %v414_v8  ;;  %417 = vst [vmem:[%s367_s18 + $0x8] sm:$0xff] %v416_v9  ;;  %v420_v11 = vld [vmem:[%s371_s15 + $0x30] sm:$0xff] }
  0x32   : > { %419 = vst [vmem:[%s367_s18 + $0x10] sm:$0xff] %v418_v10  ;;  %v422_v12 = vld [vmem:[%s371_s15 + $0x40] sm:$0xff]  ;;  %v424_v13 = vld [vmem:[%s371_s15 + $0x50] sm:$0xff]  ;;  %421 = vst [vmem:[%s367_s18 + $0x18] sm:$0xff] %v420_v11 }
  0x33   : > { %423 = vst [vmem:[%s367_s18 + $0x20] sm:$0xff] %v422_v12  ;;  %425 = vst [vmem:[%s367_s18 + $0x28] sm:$0xff] %v424_v13  ;;  %v426_v14 = vld [vmem:[%s371_s15 + $0x60] sm:$0xff]  ;;  %v428_v15 = vld [vmem:[%s371_s15 + $0x70] sm:$0xff] }
  0x34   : > { %427 = vst [vmem:[%s367_s18 + $0x30] sm:$0xff] %v426_v14  ;;  %429 = vst [vmem:[%s367_s18 + $0x38] sm:$0xff] %v428_v15 }
  0x35 PF: > { %435 = sbr.rel (!%p1313_p5) target bundleno = 67 (0x43), region = 96  ;;  %s437_s19 = sand.u32 (%p1313_p5), 1, %s1200_s28  }
  0x36   : > { %s1090_s20 = sshll.u32 (%p1313_p5), %s1216_s10, 4  ;;  %s1089_s22 = sshll.u32 (%p1313_p5), %s437_s19, 6 }
  0x37   : > { %s441_s23 = sadd.s32 (%p1313_p5), %s1212_s9, %s1090_s20  ;;  %s1542_s2 = sld [smem:[#allocation11_spill]] (%p1313_p5) }
  0x38   : > { %s1091_s24 = sshll.u32 (%p1313_p5), %s441_s23, 3  ;;  %s439_s15 = scalar_lea.vmem (%p1313_p5), [#allocation4], %s1089_s22 }
  0x3d   : > { %s443_s14 = scalar_lea.vmem %s1542_s2, %s1091_s24 }
  0x3e   : > { %v486_v16 = vld [vmem:[%s443_s14] sm:$0xff]  ;;  %v488_v17 = vld [vmem:[%s443_s14 + $0x10] sm:$0xff] }
  0x3f   : > { %v490_v18 = vld [vmem:[%s443_s14 + $0x20] sm:$0xff]  ;;  %487 = vst [vmem:[%s439_s15] sm:$0xff] %v486_v16  ;;  %489 = vst [vmem:[%s439_s15 + $0x8] sm:$0xff] %v488_v17  ;;  %v492_v19 = vld [vmem:[%s443_s14 + $0x30] sm:$0xff] }
  0x40   : > { %491 = vst [vmem:[%s439_s15 + $0x10] sm:$0xff] %v490_v18  ;;  %v494_v20 = vld [vmem:[%s443_s14 + $0x40] sm:$0xff]  ;;  %v496_v21 = vld [vmem:[%s443_s14 + $0x50] sm:$0xff]  ;;  %493 = vst [vmem:[%s439_s15 + $0x18] sm:$0xff] %v492_v19 }
  0x41   : > { %495 = vst [vmem:[%s439_s15 + $0x20] sm:$0xff] %v494_v20  ;;  %497 = vst [vmem:[%s439_s15 + $0x28] sm:$0xff] %v496_v21  ;;  %v498_v22 = vld [vmem:[%s443_s14 + $0x60] sm:$0xff]  ;;  %v500_v23 = vld [vmem:[%s443_s14 + $0x70] sm:$0xff] }
  0x42   : > { %499 = vst [vmem:[%s439_s15 + $0x30] sm:$0xff] %v498_v22  ;;  %501 = vst [vmem:[%s439_s15 + $0x38] sm:$0xff] %v500_v23 }
  0x43 PF: > { %507 = sbr.rel (!%p1313_p5) target bundleno = 81 (0x51), region = 134  ;;  %s509_s18 = sand.u32 (%p1313_p5), 1, %s1200_s28  }
  0x44   : > { %s1093_s19 = sshll.u32 (%p1313_p5), %s1216_s10, 4  ;;  %s1092_s20 = sshll.u32 (%p1313_p5), %s509_s18, 6 }
  0x45   : > { %s513_s22 = sadd.s32 (%p1313_p5), %s1212_s9, %s1093_s19  ;;  %s1543_s3 = sld [smem:[#allocation12_spill]] (%p1313_p5) }
  0x46   : > { %s1094_s23 = sshll.u32 (%p1313_p5), %s513_s22, 3  ;;  %s511_s14 = scalar_lea.vmem (%p1313_p5), [#allocation5], %s1092_s20 }
  0x4b   : > { %s515_s26 = scalar_lea.vmem %s1543_s3, %s1094_s23 }
  0x4c   : > { %v558_v24 = vld [vmem:[%s515_s26] sm:$0xff]  ;;  %v560_v25 = vld [vmem:[%s515_s26 + $0x10] sm:$0xff] }
  0x4d   : > { %v562_v26 = vld [vmem:[%s515_s26 + $0x20] sm:$0xff]  ;;  %559 = vst [vmem:[%s511_s14] sm:$0xff] %v558_v24  ;;  %561 = vst [vmem:[%s511_s14 + $0x8] sm:$0xff] %v560_v25  ;;  %v564_v27 = vld [vmem:[%s515_s26 + $0x30] sm:$0xff] }
  0x4e   : > { %563 = vst [vmem:[%s511_s14 + $0x10] sm:$0xff] %v562_v26  ;;  %v566_v28 = vld [vmem:[%s515_s26 + $0x40] sm:$0xff]  ;;  %v568_v29 = vld [vmem:[%s515_s26 + $0x50] sm:$0xff]  ;;  %565 = vst [vmem:[%s511_s14 + $0x18] sm:$0xff] %v564_v27 }
  0x4f   : > { %567 = vst [vmem:[%s511_s14 + $0x20] sm:$0xff] %v566_v28  ;;  %569 = vst [vmem:[%s511_s14 + $0x28] sm:$0xff] %v568_v29  ;;  %v570_v30 = vld [vmem:[%s515_s26 + $0x60] sm:$0xff]  ;;  %v572_v31 = vld [vmem:[%s515_s26 + $0x70] sm:$0xff] }
  0x50   : > { %571 = vst [vmem:[%s511_s14 + $0x30] sm:$0xff] %v570_v30  ;;  %573 = vst [vmem:[%s511_s14 + $0x38] sm:$0xff] %v572_v31 }
  0x51 PF: > { %p1095_p9 = scmp.ge.s32.totalorder %s1220_s11, 1  ;;  %p606_p10 = scmp.lt.s32.totalorder %s1220_s11, 5 }
  0x53   : > { %p607_p11 = pnand %p1095_p9, %p606_p10 }
  0x54   : > { %s1529_s16 = sand.u32 (!%p607_p11), 1, %s1196_s27   ;;  %p694_p12 = scmp.lt.s32.totalorder (!%p607_p11), %s1204_s29, 1 }
  0x55   : > { %610 = sbr.rel (%p607_p11) target bundleno = 127 (0x7f), region = 188  ;;  %s1096_s15 = sshll.u32 (!%p607_p11), %s1529_s16, 6 }
  0x56   : > { %s1369_s19 = scalar_lea.vmem (!%p607_p11), [#allocation2], %s1096_s15  ;;  %s1372_s20 = scalar_lea.vmem (!%p607_p11), [#allocation3], %s1096_s15 }
  0x57   : > { %s1376_s22 = scalar_lea.vmem (!%p607_p11), [#allocation4], %s1096_s15  ;;  %s1379_s23 = scalar_lea.vmem (!%p607_p11), [#allocation5], %s1096_s15 }
  0x58   : > { %s1544_s0 = sand.u32 (!%p607_p11), 1, %s1196_s27  }
  0x5a   : > { %s695_s18 = scalar_select %p694_p12, %s1204_s29, 1  ;;  %v714_v32 = vld [vmem:[%s1369_s19] sm:$0xff]  ;;  %v715_v34 = vld [vmem:[%s1369_s19 + $0x8] sm:$0xff]  ;;  %v716_v40 = vld [vmem:[%s1369_s19 + $0x10] sm:$0xff]  ;;  %vm810_vm0 = vcmask 125952  }
  0x5b   : > { %v730_v33 = vld [vmem:[%s1372_s20] sm:$0xff]  ;;  %v731_v37 = vld [vmem:[%s1372_s20 + $0x8] sm:$0xff]  ;;  %v732_v41 = vld [vmem:[%s1372_s20 + $0x10] sm:$0xff] }
  0x5c   : > { %v754_v35 = vld [vmem:[%s1376_s22] sm:$0xff]  ;;  %s1101_s24 = sshll.u32 %s695_s18, 3  ;;  %v755_v38 = vld [vmem:[%s1376_s22 + $0x8] sm:$0xff]  ;;  %v756_v42 = vld [vmem:[%s1376_s22 + $0x10] sm:$0xff] }
  0x5d   : > { %v778_v36 = vld [vmem:[%s1379_s23] sm:$0xff]  ;;  %v779_v39 = vld [vmem:[%s1379_s23 + $0x8] sm:$0xff]  ;;  %s697_s14 = scalar_lea.vmem %s1524_s4, %s1101_s24  ;;  %s701_s1 = scalar_lea.vmem %s1525_s5, %s1101_s24  ;;  %v780_v43 = vld [vmem:[%s1379_s23 + $0x10] sm:$0xff] }
  0x5e   : > { %s705_s3 = scalar_lea.vmem %s1526_s6, %s1101_s24  ;;  %s709_s12 = scalar_lea.vmem %s1527_s7, %s1101_s24  ;;  %v1401_v44 = vld [vmem:[%s697_s14] sm:$0xff]  ;;  %v717_v46 = vld [vmem:[%s1369_s19 + $0x18] sm:$0xff]  ;;  %v719_v12 = vld [vmem:[%s1369_s19 + $0x28] sm:$0xff] }
  0x5f   : > { %v1403_v45 = vld [vmem:[%s701_s1] sm:$0xff]  ;;  %v722_v49 = vmul.f32 %v714_v32, %v1401_v44  ;;  %v723_v51 = vmul.f32 %v715_v34, %v1401_v44  ;;  %v733_v53 = vld [vmem:[%s1372_s20 + $0x18] sm:$0xff]  ;;  %v724_v61 = vmul.f32 %v716_v40, %v1401_v44  ;;  %v725_v4 = vmul.f32 %v717_v46, %v1401_v44  ;;  %s1432_s1 = sshll.u32 %s1544_s0, 5  ;;  %v735_v17 = vld [vmem:[%s1372_s20 + $0x28] sm:$0xff] }
  0x60   : > { %v1406_v47 = vld [vmem:[%s705_s3] sm:$0xff]  ;;  %v738_v50 = vmul.f32 %v730_v33, %v1403_v45  ;;  %v739_v52 = vmul.f32 %v731_v37, %v1403_v45  ;;  %v757_v58 = vld [vmem:[%s1376_s22 + $0x18] sm:$0xff]  ;;  %v740_v62 = vmul.f32 %v732_v41, %v1403_v45  ;;  %v741_v5 = vmul.f32 %v733_v53, %v1403_v45  ;;  %v759_v22 = vld [vmem:[%s1376_s22 + $0x28] sm:$0xff]  ;;  %s1456_s2 = scalar_lea.vmem [#allocation6], %s1432_s1  ;;  %s1106_s3 = sshll.u32 (%p1319_p6), %s1208_s30, 4 }
  0x61   : > { %v1408_v48 = vld [vmem:[%s709_s12] sm:$0xff]  ;;  %v762_v54 = vmul.f32 %v754_v35, %v1406_v47  ;;  %v763_v56 = vmul.f32 %v755_v38, %v1406_v47  ;;  %v781_v63 = vld [vmem:[%s1379_s23 + $0x18] sm:$0xff]  ;;  %v764_v2 = vmul.f32 %v756_v42, %v1406_v47  ;;  %v765_v10 = vmul.f32 %v757_v58, %v1406_v47  ;;  %v783_v23 = vld [vmem:[%s1379_s23 + $0x28] sm:$0xff]  ;;  %s827_s27 = sadd.s32 (%p1319_p6), %s1204_s29, %s1106_s3 }
  0x62   : > { %v786_v55 = vmul.f32 %v778_v36, %v1408_v48  ;;  %v787_v57 = vmul.f32 %v779_v39, %v1408_v48  ;;  %v746_v59 = vadd.f32 %v738_v50, %v722_v49  ;;  %v747_v60 = vadd.f32 %v739_v52, %v723_v51  ;;  %v718_v0 = vld [vmem:[%s1369_s19 + $0x20] sm:$0xff]  ;;  %v720_v28 = vld [vmem:[%s1369_s19 + $0x30] sm:$0xff]  ;;  %v721_v40 = vld [vmem:[%s1369_s19 + $0x38] sm:$0xff]  ;;  %s1107_s12 = sshll.u32 (%p1319_p6), %s827_s27, 2 }
  0x63   : > { %v734_v1 = vld [vmem:[%s1372_s20 + $0x20] sm:$0xff]  ;;  %v788_v3 = vmul.f32 %v780_v43, %v1408_v48  ;;  %v748_v9 = vadd.f32 %v740_v62, %v724_v61  ;;  %v749_v13 = vadd.f32 %v741_v5, %v725_v4  ;;  %v789_v14 = vmul.f32 %v781_v63, %v1408_v48  ;;  %v736_v29 = vld [vmem:[%s1372_s20 + $0x30] sm:$0xff]  ;;  %v737_v41 = vld [vmem:[%s1372_s20 + $0x38] sm:$0xff]  ;;  %s829_s16 = scalar_lea.vmem (%p1319_p6), %s1528_s8, %s1107_s12 }
  0x64   : > { %v758_v6 = vld [vmem:[%s1376_s22 + $0x20] sm:$0xff]  ;;  %v770_v7 = vadd.f32 %v762_v54, %v746_v59  ;;  %v771_v8 = vadd.f32 %v763_v56, %v747_v60  ;;  %v726_v15 = vmul.f32 %v718_v0, %v1401_v44  ;;  %v742_v16 = vmul.f32 %v734_v1, %v1403_v45  ;;  %v760_v34 = vld [vmem:[%s1376_s22 + $0x30] sm:$0xff]  ;;  %v761_v50 = vld [vmem:[%s1376_s22 + $0x38] sm:$0xff] }
  0x65   : > { %v782_v11 = vld [vmem:[%s1379_s23 + $0x20] sm:$0xff]  ;;  %v772_v20 = vadd.f32 %v764_v2, %v748_v9  ;;  %v766_v21 = vmul.f32 %v758_v6, %v1406_v47  ;;  %v773_v24 = vadd.f32 %v765_v10, %v749_v13  ;;  %v727_v27 = vmul.f32 %v719_v12, %v1401_v44  ;;  %v784_v35 = vld [vmem:[%s1379_s23 + $0x30] sm:$0xff] }
  0x66   : > { %v794_v18 = vadd.f32 %v786_v55, %v770_v7  ;;  %v795_v19 = vadd.f32 %v787_v57, %v771_v8  ;;  %v750_v25 = vadd.f32 %v742_v16, %v726_v15  ;;  %v790_v26 = vmul.f32 %v782_v11, %v1408_v48  ;;  %v785_v55 = vld [vmem:[%s1379_s23 + $0x38] sm:$0xff] }
  0x67   : > { %v796_v32 = vadd.f32 %v788_v3, %v772_v20  ;;  %v743_v33 = vmul.f32 %v735_v17, %v1403_v45  ;;  %v797_v36 = vadd.f32 %v789_v14, %v773_v24  ;;  %v767_v38 = vmul.f32 %v759_v22, %v1406_v47 }
  0x68   : > { %v802_v30 = vpack.c.bf16 %v794_v18, %v794_v18  ;;  %v803_v31 = vpack.c.bf16 %v795_v19, %v795_v19  ;;  %v774_v37 = vadd.f32 %v766_v21, %v750_v25  ;;  %v791_v39 = vmul.f32 %v783_v23, %v1408_v48 }
  0x69   : > { %v804_v42 = vpack.c.bf16 %v796_v32, %v796_v32  ;;  %v751_v43 = vadd.f32 %v743_v33, %v727_v27  ;;  %v728_v46 = vmul.f32 %v720_v28, %v1401_v44  ;;  %v744_v49 = vmul.f32 %v736_v29, %v1403_v45 }
  0x6a   : > { %811 = vst.msk [vmem:[%s1456_s2] sm:$0xf] %vm810_vm0, %v802_v30  ;;  %812 = vst.msk [vmem:[%s1456_s2 + $0x4] sm:$0xf] %vm810_vm0, %v803_v31  ;;  %v805_v51 = vpack.c.bf16 %v797_v36, %v797_v36  ;;  %v798_v52 = vadd.f32 %v790_v26, %v774_v37  ;;  %v768_v53 = vmul.f32 %v760_v34, %v1406_v47 }
  0x6b   : > { %v792_v54 = vmul.f32 %v784_v35, %v1408_v48  ;;  %813 = vst.msk [vmem:[%s1456_s2 + $0x8] sm:$0xf] %vm810_vm0, %v804_v42  ;;  %v775_v56 = vadd.f32 %v767_v38, %v751_v43  ;;  %v752_v57 = vadd.f32 %v744_v49, %v728_v46  ;;  %v729_v58 = vmul.f32 %v721_v40, %v1401_v44 }
  0x6c   : > { %v745_v59 = vmul.f32 %v737_v41, %v1403_v45  ;;  %814 = vst.msk [vmem:[%s1456_s2 + $0xc] sm:$0xf] %vm810_vm0, %v805_v51  ;;  %v806_v60 = vpack.c.bf16 %v798_v52, %v798_v52  ;;  %v769_v61 = vmul.f32 %v761_v50, %v1406_v47  ;;  %v793_v1 = vmul.f32 %v785_v55, %v1408_v48 }
  0x6d   : > { %v799_v62 = vadd.f32 %v791_v39, %v775_v56  ;;  %v776_v63 = vadd.f32 %v768_v53, %v752_v57 }
  0x6e   : > { %v753_v0 = vadd.f32 %v745_v59, %v729_v58  ;;  %815 = vst.msk [vmem:[%s1456_s2 + $0x10] sm:$0xf] %vm810_vm0, %v806_v60 }
  0x6f   : > { %v807_v2 = vpack.c.bf16 %v799_v62, %v799_v62  ;;  %v800_v3 = vadd.f32 %v792_v54, %v776_v63 }
  0x70   : > { %v777_v4 = vadd.f32 %v769_v61, %v753_v0 }
  0x71   : > { %816 = vst.msk [vmem:[%s1456_s2 + $0x14] sm:$0xf] %vm810_vm0, %v807_v2  ;;  %v808_v44 = vpack.c.bf16 %v800_v3, %v800_v3  ;;  %v846_v47 = vld [vmem:[%s1456_s2] sm:$0xf] (%p1319_p6)  ;;  %v848_v48 = vld [vmem:[%s1456_s2 + $0x4] sm:$0xf] (%p1319_p6) }
  0x72   : > { %v801_v45 = vadd.f32 %v793_v1, %v777_v4  ;;  %825 = sbr.rel (!%p1319_p6) target bundleno = 127 (0x7f), region = 208  ;;  %v850_v6 = vld [vmem:[%s1456_s2 + $0x8] sm:$0xf] (%p1319_p6)  ;;  %847 = vst [vmem:[%s829_s16] sm:$0xf] (%p1319_p6), %v846_v47  ;;  %849 = vst [vmem:[%s829_s16 + $0x8] sm:$0xf] (%p1319_p6), %v848_v48 }
  0x73   : > { %817 = vst.msk [vmem:[%s1456_s2 + $0x18] sm:$0xf] %vm810_vm0, %v808_v44  ;;  %v852_v7 = vld [vmem:[%s1456_s2 + $0xc] sm:$0xf] (%p1319_p6)  ;;  %851 = vst [vmem:[%s829_s16 + $0x10] sm:$0xf] (%p1319_p6), %v850_v6 }
  0x74   : > { %v809_v5 = vpack.c.bf16 %v801_v45, %v801_v45  ;;  %853 = vst [vmem:[%s829_s16 + $0x18] sm:$0xf] (%p1319_p6), %v852_v7 }
  0x75   : > { %v854_v8 = vld [vmem:[%s1456_s2 + $0x10] sm:$0xf] (%p1319_p6) }
  0x76   : > { %818 = vst.msk [vmem:[%s1456_s2 + $0x1c] sm:$0xf] %vm810_vm0, %v809_v5  ;;  %855 = vst [vmem:[%s829_s16 + $0x20] sm:$0xf] (%p1319_p6), %v854_v8 }
  0x78   : > { %v856_v9 = vld [vmem:[%s1456_s2 + $0x14] sm:$0xf] }
  0x79   : > { %857 = vst [vmem:[%s829_s16 + $0x28] sm:$0xf] %v856_v9 }
  0x7a   : > { %v858_v10 = vld [vmem:[%s1456_s2 + $0x18] sm:$0xf] }
  0x7b   : > { %859 = vst [vmem:[%s829_s16 + $0x30] sm:$0xf] %v858_v10 }
  0x7d   : > { %v860_v11 = vld [vmem:[%s1456_s2 + $0x1c] sm:$0xf] }
  0x7e   : > { %861 = vst [vmem:[%s829_s16 + $0x38] sm:$0xf] %v860_v11 }
  0x7f PF: > { %s18_s11 = sadd.s32 1, %s1220_s11   ;;  %s1545_s19 = sld [smem:[#allocation7_spill]] }
  0x80   : > { %p15_p13 = scmp.ge.s32.totalorder %s18_s11, 6   ;;  %s1546_s20 = sld [smem:[#allocation8_spill]] }
  0x81   : > { %s1547_s27 = smov %s1200_s28  ;;  %s1548_s28 = smov %s1327_s21 }
  0x82   : > { %s1549_s29 = smov %s1212_s9  ;;  %s1550_s30 = smov %s1216_s10 }
  0x83   :  { %17 = sbr.rel (!%p15_p13) target bundleno = 9 (0x9), region = 316 }
  0x85   : > { %s1551_s9 = smov %s1545_s19 }
  0x86   : > { %s1552_s10 = smov %s1546_s20 }

// kernel: unet_up_block.5
= control target key start
LH: loop header
LB: loop body
LE: loop exit
PB: predicated region body
PF: predicated region fallthrough
CT: control target
= control target key end

     0   :  { %s2400_s12 = smov 0   ;;  %s3210_s0 = inlined_call_operand.vmem [shape: bf16[4,10,18,8], index: 0, kind: input, shape index: {}]   ;;  %s3211_s1 = inlined_call_operand.vmem [shape: bf16[9,8,8], index: 1, kind: input, shape index: {}]   ;;  %s3212_s2 = inlined_call_operand.vmem [shape: f32[1,8], index: 2, kind: input, shape index: {}]   ;;  %s3213_s3 = inlined_call_operand.vmem [shape: bf16[4,128,8], index: 3, kind: output, shape index: {}]  }
   0x1 LB: > { %s1934_s13 = sadd.s32 4294967295, %s2378_s12   ;;  %p1938_p0 = scmp.ge.s32.totalorder %s2378_s12, 1  ;;  %s2378_s12 = sphi %s2400_s12, %s13_s12  }
   0x2   : > { %p137_p1 = scmp.lt.s32.totalorder %s2378_s12, 5 }
   0x4   : > { %p138_p2 = pnand %p1938_p0, %p137_p1 }
   0x6   : > { %141 = sbr.rel (%p138_p2) target bundleno = 396 (0x18c), region = 32 }
   0xb   : > { %v1942_v0 = vld [vmem:[%s3211_s1 + $0x4] sm:$0xf]  ;;  %vm449_vm0 = vcmask 1043456   ;;  %p161_p3 = scmp.lt.s32.totalorder %s1934_s13, 3  ;;  %v202_v2 = vld [vmem:[%s3211_s1] sm:$0xf] }
   0xc   : > { %2344 = vmatprep.subr.msk.bf16.mxu1 %vm449_vm0, %v1942_v0  ;;  %2343 = vmatprep.subr.msk.bf16.mxu0 %vm449_vm0, %v1942_v0  ;;  %v451_v1 = vsel %vm449_vm0, %v1942_v0, 0  ;;  %v1983_v3 = vld [vmem:[%s3211_s1 + $0x8] sm:$0xf]  ;;  %vm203_vm1 = vsmask.f32 3328  ;;  %vm424_vm3 = vcmask 64512  }
   0xd   : > { %2342 = vmatpush3.bf16.msra.mxu1 %v451_v1  ;;  %2180 = vmatpush3.bf16.msra.mxu0 %v451_v1  ;;  %s3263_s13 = smov (!%p161_p3, %s1934_s13), 3  ;;  %vm204_vm2 = vsmask.f32 7440  ;;  %v2454_v15 = vsel %vm449_vm0, %v202_v2, 0  ;;  %v2474_v34 = vsel %vm449_vm0, %v1983_v3, 0  ;;  %vm722_vm5 = vcmask 1042432  }
   0xe   : > { %2345 = vmatprep.subr.msk.bf16.mxu1 %vm449_vm0, %v202_v2  ;;  %2346 = vmatprep.subr.msk.bf16.mxu0 %vm449_vm0, %v1983_v3  ;;  %s2353_s20 = smul.u32 120, %s3263_s13  ;;  %vm2469_vm4 = vmor %vm203_vm1, %vm204_vm2  ;;  %vm723_vm6 = vcmask 1046532   ;;  %vm1862_vm8 = vcmask 60416   ;;  %s2081_s11 = sshll.u32 %s3263_s13, 6 }
   0xf   : > { %vm2617_vm7 = vmor %vm722_vm5, %vm723_vm6  ;;  %s3132_s15 = scalar_lea.vmem %s3213_s3, %s2081_s11 }
  0x10   : > { %s2428_s23 = scalar_lea.vmem %s3210_s0, %s2353_s20 }
  0x11   : > { %v2431_v4 = vld [vmem:[%s2428_s23] sm:$0xf]  ;;  %v2434_v5 = vld [vmem:[%s2428_s23 + $0x4] sm:$0xf]  ;;  %v2437_v6 = vld [vmem:[%s2428_s23 + $0x8] sm:$0x1] }
  0x12   : > { %v207_v7 = vshrl.u32 %v2431_v4, 16  ;;  %v210_v8 = vshll.u32 %v2431_v4, 16  ;;  %v216_v9 = vshll.u32 %v2434_v5, 16  ;;  %v220_v10 = vshrl.u32 %v2434_v5, 16  ;;  %v2444_v11 = vld [vmem:[%s2428_s23 + $0x30] sm:$0xf] }
  0x13   : > { %v226_v12 = vshll.u32 %v2437_v6, 16  ;;  %v2448_v13 = vld [vmem:[%s2428_s23 + $0x34] sm:$0xf]  ;;  %v2451_v14 = vld [vmem:[%s2428_s23 + $0x38] sm:$0x1]  ;;  %v303_v21 = vshrl.u32 %v2444_v11, 16 }
  0x14   : > { %v209_v16 = vrot.slane %v207_v7, 4  ;;  %v212_v17 = vrot.slane %v210_v8, 5  ;;  %v218_v18 = vrot.slane %v216_v9, 5  ;;  %v222_v19 = vrot.slane %v220_v10, 4  ;;  %v2462_v28 = vld [vmem:[%s2428_s23 + $0xc] sm:$0xf] }
  0x15   : > { %v228_v20 = vrot.slane %v226_v12, 5  ;;  %v306_v22 = vshll.u32 %v2444_v11, 16  ;;  %v312_v23 = vshll.u32 %v2448_v13, 16  ;;  %v316_v26 = vshrl.u32 %v2448_v13, 16  ;;  %v2465_v29 = vld [vmem:[%s2428_s23 + $0x10] sm:$0xf] }
  0x16   : > { %v213_v24 = vor.u32 %v212_v17, %v209_v16  ;;  %v223_v25 = vor.u32 %v222_v19, %v218_v18  ;;  %v322_v27 = vshll.u32 %v2451_v14, 16  ;;  %v305_v31 = vrot.slane %v303_v21, 4  ;;  %v2477_v40 = vld [vmem:[%s2428_s23 + $0x14] sm:$0x1]  ;;  %v2488_v52 = vld [vmem:[%s2428_s23 + $0x3c] sm:$0xf] }
  0x17   : > { %v308_v32 = vrot.slane %v306_v22, 5  ;;  %v314_v33 = vrot.slane %v312_v23, 5  ;;  %v318_v37 = vrot.slane %v316_v26, 4  ;;  %v231_v41 = vshrl.u32 %v2462_v28, 16  ;;  %v2492_v57 = vld [vmem:[%s2428_s23 + $0x40] sm:$0xf] }
  0x18   : > { %v214_v35 = vrot.slane %v213_v24, 4  ;;  %v224_v36 = vrot.slane %v223_v25, 4  ;;  %v324_v38 = vrot.slane %v322_v27, 5  ;;  %v234_v42 = vshll.u32 %v2462_v28, 16  ;;  %v2500_v62 = vld [vmem:[%s2428_s23 + $0x44] sm:$0x1] }
  0x19   : > { %v309_v39 = vor.u32 %v308_v32, %v305_v31  ;;  %v240_v43 = vshll.u32 %v2465_v29, 16  ;;  %v319_v46 = vor.u32 %v318_v37, %v314_v33  ;;  %v244_v47 = vshrl.u32 %v2465_v29, 16  ;;  %v2506_v3 = vld [vmem:[%s2428_s23 + $0x18] sm:$0xf]  ;;  %v2515_v19 = vld [vmem:[%s2428_s23 + $0x1c] sm:$0xf] }
  0x1a   : > { %v219_v44 = vsel %vm2469_vm4, %v214_v35, %v218_v18  ;;  %v229_v45 = vsel %vm2469_vm4, %v224_v36, %v228_v20  ;;  %v233_v50 = vrot.slane %v231_v41, 4  ;;  %v236_v51 = vrot.slane %v234_v42, 5  ;;  %v2522_v23 = vld [vmem:[%s2428_s23 + $0x20] sm:$0x1]  ;;  %v2529_v32 = vld [vmem:[%s2428_s23 + $0x48] sm:$0xf] }
  0x1b   : > { %v1943_v48 = vcombine.low %v219_v44, %v229_v45  ;;  %v310_v49 = vrot.slane %v309_v39, 4  ;;  %v320_v53 = vrot.slane %v319_v46, 4  ;;  %v242_v54 = vrot.slane %v240_v43, 5  ;;  %v2542_v44 = vld [vmem:[%s2428_s23 + $0x4c] sm:$0xf] }
  0x1c   : > { %v246_v55 = vrot.slane %v244_v47, 4  ;;  %v250_v56 = vshll.u32 %v2477_v40, 16  ;;  %v730_v58 = vrot.slane %v2437_v6, 5  ;;  %v237_v60 = vor.u32 %v236_v51, %v233_v50 }
  0x1d   : > { %2181 = vmatprep.mubr.msk.bf16.mxu0 %vm424_vm3, %v1943_v48  ;;  %v315_v59 = vsel %vm2469_vm4, %v310_v49, %v314_v33  ;;  %v734_v61 = vrot.slane %v2465_v29, 5  ;;  %v325_v63 = vsel %vm2469_vm4, %v320_v53, %v324_v38  ;;  %v327_v2 = vshrl.u32 %v2488_v52, 16  ;;  %v2537_v38 = vld [vmem:[%s3211_s1 + $0x10] sm:$0xf] }
  0x1e   : > { %v247_v0 = vor.u32 %v246_v55, %v242_v54  ;;  %v252_v1 = vrot.slane %v250_v56, 5  ;;  %v2508_v7 = vcombine.low %v315_v59, %v325_v63  ;;  %v238_v8 = vrot.slane %v237_v60, 4  ;;  %v2556_v63 = vld [vmem:[%s2428_s23 + $0x24] sm:$0xf] }
  0x1f   : > { %v330_v9 = vshll.u32 %v2488_v52, 16  ;;  %v336_v10 = vshll.u32 %v2492_v57, 16  ;;  %v329_v16 = vrot.slane %v327_v2, 4  ;;  %v340_v17 = vshrl.u32 %v2492_v57, 16 }
  0x20   : > { %v248_v12 = vrot.slane %v247_v0, 4  ;;  %v346_v18 = vshll.u32 %v2500_v62, 16  ;;  %2189 = vmatprep.mubr.msk.bf16.mxu1 %vm424_vm3, %v2508_v7  ;;  %v243_v20 = vsel %vm2469_vm4, %v238_v8, %v242_v54  ;;  %v255_v24 = vshrl.u32 %v2506_v3, 16  ;;  %v2550_v54 = vld [vmem:[%s2428_s23 + $0x50] sm:$0x1] }
  0x21   : > { %v332_v21 = vrot.slane %v330_v9, 5  ;;  %v338_v22 = vrot.slane %v336_v10, 5  ;;  %v342_v26 = vrot.slane %v340_v17, 4  ;;  %v258_v31 = vshll.u32 %v2506_v3, 16  ;;  %v2564_v8 = vld [vmem:[%s2428_s23 + $0x28] sm:$0xf] }
  0x22   : > { %v253_v25 = vsel %vm2469_vm4, %v248_v12, %v252_v1  ;;  %v348_v27 = vrot.slane %v346_v18, 5  ;;  %v257_v36 = vrot.slane %v255_v24, 4  ;;  %v264_v37 = vshll.u32 %v2515_v19, 16  ;;  %v2572_v17 = vld [vmem:[%s3211_s1 + $0xc] sm:$0xf] }
  0x23   : > { %v2531_v33 = vcombine.low %v243_v20, %v253_v25  ;;  %v333_v35 = vor.u32 %v332_v21, %v329_v16  ;;  %v343_v39 = vor.u32 %v342_v26, %v338_v22  ;;  %v260_v41 = vrot.slane %v258_v31, 5 }
  0x24   : > { %v268_v42 = vshrl.u32 %v2515_v19, 16  ;;  %v274_v43 = vshll.u32 %v2522_v23, 16  ;;  %v266_v46 = vrot.slane %v264_v37, 5  ;;  %v351_v47 = vshrl.u32 %v2529_v32, 16 }
  0x25   : > { %2182 = vmatmul.mubr.msk.bf16.vlgmr.msra.gmra.mxu0 %vm424_vm3, %v2531_v33  ;;  %v334_v45 = vrot.slane %v333_v35, 4  ;;  %v354_v48 = vshll.u32 %v2529_v32, 16  ;;  %v344_v49 = vrot.slane %v343_v39, 4  ;;  %v261_v50 = vor.u32 %v260_v41, %v257_v36  ;;  %v2585_v35 = vld [vmem:[%s2428_s23 + $0x54] sm:$0xf] }
  0x26   : > { %2216 = vmatpush3.bf16.msra.mxu0 %v2474_v34  ;;  %v270_v51 = vrot.slane %v268_v42, 4  ;;  %v276_v53 = vrot.slane %v274_v43, 5  ;;  %v353_v56 = vrot.slane %v351_v47, 4  ;;  %v360_v60 = vshll.u32 %v2542_v44, 16  ;;  %v2592_v42 = vld [vmem:[%s2428_s23 + $0x58] sm:$0xf] }
  0x27   : > { %v339_v55 = vsel %vm2469_vm4, %v334_v45, %v338_v22  ;;  %v356_v59 = vrot.slane %v354_v48, 5  ;;  %2348 = vmatprep.subr.msk.bf16.mxu0 %vm449_vm0, %v2537_v38  ;;  %v349_v34 = vsel %vm2469_vm4, %v344_v49, %v348_v27  ;;  %v262_v0 = vrot.slane %v261_v50, 4  ;;  %v2577_v22 = vld [vmem:[%s2428_s23 + $0x2c] sm:$0x1] }
  0x28   : > { %v271_v1 = vor.u32 %v270_v51, %v266_v46  ;;  %v364_v2 = vshrl.u32 %v2542_v44, 16  ;;  %v2566_v9 = vcombine.low %v339_v55, %v349_v34  ;;  %v362_v12 = vrot.slane %v360_v60, 5 }
  0x29   : > { %v357_v10 = vor.u32 %v356_v59, %v353_v56  ;;  %v370_v16 = vshll.u32 %v2550_v54, 16  ;;  %v267_v18 = vsel %vm2469_vm4, %v262_v0, %v266_v46  ;;  %v279_v24 = vshrl.u32 %v2556_v63, 16 }
  0x2a   : > { %v272_v20 = vrot.slane %v271_v1, 4  ;;  %v366_v21 = vrot.slane %v364_v2, 4  ;;  %2190 = vmatmul.mubr.msk.bf16.vlgmr.msra.gmra.mxu1 %vm424_vm3, %v2566_v9  ;;  %v282_v27 = vshll.u32 %v2556_v63, 16  ;;  %v288_v31 = vshll.u32 %v2564_v8, 16 }
  0x2b   : > { %v358_v25 = vrot.slane %v357_v10, 4  ;;  %v372_v26 = vrot.slane %v370_v16, 5  ;;  %2198 = vmatpush3.bf16.msra.mxu1 %v2454_v15  ;;  %v281_v39 = vrot.slane %v279_v24, 4  ;;  %v292_v41 = vshrl.u32 %v2564_v8, 16  ;;  %v2052_v24 = vld [vmem:[%s3211_s1 + $0x20] sm:$0xf] }
  0x2c   : > { %v277_v36 = vsel %vm2469_vm4, %v272_v20, %v276_v53  ;;  %v367_v37 = vor.u32 %v366_v21, %v362_v12  ;;  %v284_v46 = vrot.slane %v282_v27, 5  ;;  %v290_v47 = vrot.slane %v288_v31, 5  ;;  %2347 = vmatprep.subr.msk.bf16.mxu1 %vm449_vm0, %v2572_v17  ;;  %v2605_v53 = vld [vmem:[%s2428_s23 + $0x5c] sm:$0x1] }
  0x2d   : > { %v2594_v43 = vcombine.low %v267_v18, %v277_v36  ;;  %v363_v45 = vsel %vm2469_vm4, %v358_v25, %v362_v12  ;;  %v294_v48 = vrot.slane %v292_v41, 4  ;;  %v298_v49 = vshll.u32 %v2577_v22, 16 }
  0x2e   : > { %v368_v15 = vrot.slane %v367_v37, 4  ;;  %v375_v50 = vshrl.u32 %v2585_v35, 16  ;;  %v285_v51 = vor.u32 %v284_v46, %v281_v39  ;;  %v378_v55 = vshll.u32 %v2585_v35, 16 }
  0x2f   : > { %2185 = vmatprep.mubr.msk.bf16.mxu0 %vm424_vm3, %v2594_v43  ;;  %v384_v56 = vshll.u32 %v2592_v42, 16  ;;  %v388_v59 = vshrl.u32 %v2592_v42, 16  ;;  %v295_v34 = vor.u32 %v294_v48, %v290_v47  ;;  %v300_v0 = vrot.slane %v298_v49, 5 }
  0x30   : > { %v373_v60 = vsel %vm2469_vm4, %v368_v15, %v372_v26  ;;  %v377_v1 = vrot.slane %v375_v50, 4  ;;  %v286_v10 = vrot.slane %v285_v51, 4  ;;  %v380_v12 = vrot.slane %v378_v55, 5 }
  0x31   : > { %v2612_v2 = vcombine.low %v363_v45, %v373_v60  ;;  %v386_v16 = vrot.slane %v384_v56, 5  ;;  %v296_v18 = vrot.slane %v295_v34, 4  ;;  %v390_v20 = vrot.slane %v388_v59, 4 }
  0x32   : > { %v394_v21 = vshll.u32 %v2605_v53, 16  ;;  %v1975_v25 = vrot.slane %v2431_v4, 9  ;;  %v737_v26 = vrot.slane %v2477_v40, 5  ;;  %v291_v27 = vsel %vm2469_vm4, %v286_v10, %v290_v47 }
  0x33   : > { %2193 = vmatprep.mubr.msk.bf16.mxu1 %vm424_vm3, %v2612_v2  ;;  %v381_v31 = vor.u32 %v380_v12, %v377_v1  ;;  %v727_v36 = vrot.slane %v2434_v5, 5  ;;  %v301_v37 = vsel %vm2469_vm4, %v296_v18, %v300_v0  ;;  %v391_v39 = vor.u32 %v390_v20, %v386_v16 }
  0x34   : > { %v396_v41 = vrot.slane %v394_v21, 5  ;;  %v1976_v45 = vrot.slane %v2462_v28, 9  ;;  %v2631_v46 = vcombine.low %v291_v27, %v301_v37  ;;  %v1959_v47 = vcombine.low %v2431_v4, %v2434_v5 }
  0x35   : > { %v382_v15 = vrot.slane %v381_v31, 4  ;;  %v728_v40 = vsel %vm2617_vm7, %v1975_v25, %v727_v36  ;;  %v729_v48 = vrot.slane %v727_v36, 4  ;;  %v392_v49 = vrot.slane %v391_v39, 4 }
  0x36   : > { %v735_v50 = vsel %vm2617_vm7, %v1976_v45, %v734_v61  ;;  %v736_v51 = vrot.slane %v734_v61, 4  ;;  %2186 = vmatmul.mubr.msk.bf16.gmra.mxu0 %vm424_vm3, %v2631_v46  ;;  %v1977_v4 = vrot.slane %v2506_v3, 9  ;;  %v741_v5 = vrot.slane %v2515_v19, 5 }
  0x37   : > { %v387_v55 = vsel %vm2469_vm4, %v382_v15, %v386_v16  ;;  %v731_v56 = vsel %vm2617_vm7, %v729_v48, %v730_v58  ;;  %v397_v59 = vsel %vm2469_vm4, %v392_v49, %v396_v41  ;;  %v744_v34 = vrot.slane %v2522_v23, 5 }
  0x38   : > { %v1984_v60 = vcombine.low %v728_v40, %v731_v56  ;;  %v738_v61 = vsel %vm2617_vm7, %v736_v51, %v737_v26  ;;  %v2658_v0 = vcombine.low %v387_v55, %v397_v59  ;;  %v742_v6 = vsel %vm2617_vm7, %v1977_v4, %v741_v5 }
  0x39   : > { %v743_v1 = vrot.slane %v741_v5, 4  ;;  %v758_v58 = vrot.slane %v2451_v14, 5  ;;  %v1978_v10 = vrot.slane %v2556_v63, 9  ;;  %v748_v12 = vrot.slane %v2564_v8, 5 }
  0x3a   : > { %2217 = vmatprep.mubr.msk.bf16.mxu0 %vm424_vm3, %v1984_v60  ;;  %v751_v16 = vrot.slane %v2577_v22, 5  ;;  %2194 = vmatmul.mubr.msk.bf16.gmra.mxu1 %vm424_vm3, %v2658_v0  ;;  %v2669_v23 = vcombine.low %v735_v50, %v738_v61  ;;  %v1979_v20 = vrot.slane %v2444_v11, 9  ;;  %v755_v14 = vrot.slane %v2448_v13, 5 }
  0x3b   : > { %v745_v18 = vsel %vm2617_vm7, %v743_v1, %v744_v34  ;;  %2199 = vmatprep.mubr.msk.bf16.mxu1 %vm424_vm3, %v1959_v47  ;;  %v750_v25 = vrot.slane %v748_v12, 4  ;;  %v2680_v22 = vcombine.low %v2462_v28, %v2465_v29  ;;  %v1106_v26 = vsel %vm449_vm0, %v2537_v38, 0  ;;  %v2695_v28 = vld [vmem:[%s3211_s1 + $0x18] sm:$0xf]  ;;  %v2712_v47 = vld [vmem:[%s2428_s23 + $0x60] sm:$0xf] }
  0x3c   : > { %v2676_v21 = vcombine.low %v742_v6, %v745_v18  ;;  %v757_v27 = vrot.slane %v755_v14, 4  ;;  %v762_v31 = vrot.slane %v2492_v57, 5  ;;  %v749_v36 = vsel %vm2617_vm7, %v1978_v10, %v748_v12 }
  0x3d   : > { %v752_v37 = vsel %vm2617_vm7, %v750_v25, %v751_v16  ;;  %v756_v39 = vsel %vm2617_vm7, %v1979_v20, %v755_v14  ;;  %v1980_v41 = vrot.slane %v2488_v52, 9  ;;  %v765_v45 = vrot.slane %v2500_v62, 5 }
  0x3e   : > { %2218 = vmatmul.mubr.msk.bf16.vlgmr.msra.gmra.mxu0 %vm424_vm3, %v2669_v23  ;;  %v759_v29 = vsel %vm2617_vm7, %v757_v27, %v758_v58  ;;  %v764_v38 = vrot.slane %v762_v31, 4  ;;  %v1981_v15 = vrot.slane %v2529_v32, 9  ;;  %v2705_v40 = vcombine.low %v2506_v3, %v2515_v19  ;;  %v2729_v19 = vld [vmem:[%s2428_s23 + $0x64] sm:$0xf]  ;;  %v2771_v27 = vld [vmem:[%s2428_s23 + $0x6c] sm:$0xf] }
  0x3f   : > { %2252 = vmatpush3.bf16.msra.mxu0 %v1106_v26  ;;  %2221 = vmatprep.mubr.msk.bf16.mxu0 %vm424_vm3, %v2676_v21  ;;  %v769_v48 = vrot.slane %v2542_v44, 5  ;;  %v772_v49 = vrot.slane %v2550_v54, 5  ;;  %v958_v50 = vsel %vm449_vm0, %v2572_v17, 0  ;;  %v2718_v62 = vcombine.low %v2556_v63, %v2564_v8  ;;  %v198_v54 = vld [vmem:[%s2428_s23 + $0x68] sm:$0x1] }
  0x40   : > { %v2720_v51 = vcombine.low %v749_v36, %v752_v37  ;;  %v2724_v3 = vcombine.low %v2444_v11, %v2448_v13  ;;  %2350 = vmatprep.subr.msk.bf16.mxu0 %vm449_vm0, %v2695_v28  ;;  %v2732_v55 = vcombine.low %v756_v39, %v759_v29  ;;  %v763_v17 = vsel %vm2617_vm7, %v1980_v41, %v762_v31  ;;  %v2740_v8 = vld [vmem:[%s3211_s1 + $0x14] sm:$0xf] }
  0x41   : > { %v771_v56 = vrot.slane %v769_v48, 4  ;;  %v776_v63 = vrot.slane %v2592_v42, 5  ;;  %v766_v11 = vsel %vm2617_vm7, %v764_v38, %v765_v45  ;;  %v770_v13 = vsel %vm2617_vm7, %v1981_v15, %v769_v48  ;;  %v201_v41 = vld [vmem:[%s2428_s23 + $0x74] sm:$0x1]  ;;  %v2780_v15 = vld [vmem:[%s2428_s23 + $0x70] sm:$0xf] }
  0x42   : > { %2200 = vmatmul.mubr.msk.bf16.vlgmr.msra.gmra.mxu1 %vm424_vm3, %v2680_v22  ;;  %v1074_v4 = vshrl.u32 %v2712_v47, 16  ;;  %v1077_v5 = vshll.u32 %v2712_v47, 16  ;;  %v1087_v60 = vshrl.u32 %v2729_v19, 16  ;;  %v1083_v61 = vshll.u32 %v2729_v19, 16 }
  0x43   : > { %2234 = vmatpush3.bf16.msra.mxu1 %v958_v50  ;;  %2203 = vmatprep.mubr.msk.bf16.mxu1 %vm424_vm3, %v2705_v40  ;;  %v773_v59 = vsel %vm2617_vm7, %v771_v56, %v772_v49  ;;  %v1093_v34 = vshll.u32 %v198_v54, 16  ;;  %v1982_v6 = vrot.slane %v2585_v35, 9  ;;  %v779_v1 = vrot.slane %v2605_v53, 5 }
  0x44   : > { %2349 = vmatprep.subr.msk.bf16.mxu1 %vm449_vm0, %v2740_v8  ;;  %v1076_v58 = vrot.slane %v1074_v4, 4  ;;  %v1079_v10 = vrot.slane %v1077_v5, 5  ;;  %v2760_v12 = vcombine.low %v763_v17, %v766_v11  ;;  %v778_v16 = vrot.slane %v776_v63, 4 }
  0x45   : > { %v1085_v18 = vrot.slane %v1083_v61, 5  ;;  %v1089_v20 = vrot.slane %v1087_v60, 4  ;;  %v2766_v14 = vcombine.low %v770_v13, %v773_v59  ;;  %v2020_v25 = vrot.slane %v2712_v47, 9 }
  0x46   : > { %2222 = vmatmul.mubr.msk.bf16.gmra.mxu0 %vm424_vm3, %v2720_v51  ;;  %v1080_v53 = vor.u32 %v1079_v10, %v1076_v58  ;;  %v1224_v26 = vrot.slane %v2729_v19, 5  ;;  %v1095_v36 = vrot.slane %v1093_v34, 5  ;;  %v1227_v37 = vrot.slane %v198_v54, 5 }
  0x47   : > { %2225 = vmatprep.mubr.msk.bf16.mxu0 %vm424_vm3, %v2732_v55  ;;  %v1090_v31 = vor.u32 %v1089_v20, %v1085_v18  ;;  %v1480_v39 = vshrl.u32 %v2771_v27, 16  ;;  %v1483_v48 = vshll.u32 %v2771_v27, 16  ;;  %v1493_v50 = vshrl.u32 %v2780_v15, 16 }
  0x48   : > { %v1081_v29 = vrot.slane %v1080_v53, 4  ;;  %v1225_v38 = vsel %vm2617_vm7, %v2020_v25, %v1224_v26  ;;  %v1226_v45 = vrot.slane %v1224_v26, 4  ;;  %v1489_v56 = vshll.u32 %v2780_v15, 16 }
  0x49   : > { %v1091_v49 = vrot.slane %v1090_v31, 4  ;;  %v1482_v17 = vrot.slane %v1480_v39, 4  ;;  %v1485_v13 = vrot.slane %v1483_v48, 5  ;;  %v1499_v4 = vshll.u32 %v201_v41, 16 }
  0x4a   : > { %2204 = vmatmul.mubr.msk.bf16.gmra.mxu1 %vm424_vm3, %v2718_v62  ;;  %v1086_v54 = vsel %vm2469_vm4, %v1081_v29, %v1085_v18  ;;  %v1228_v11 = vsel %vm2617_vm7, %v1226_v45, %v1227_v37  ;;  %v1491_v60 = vrot.slane %v1489_v56, 5  ;;  %v1495_v61 = vrot.slane %v1493_v50, 4 }
  0x4b   : > { %2207 = vmatprep.mubr.msk.bf16.mxu1 %vm424_vm3, %v2724_v3  ;;  %v1096_v5 = vsel %vm2469_vm4, %v1091_v49, %v1095_v36  ;;  %v2795_v59 = vcombine.low %v1225_v38, %v1228_v11  ;;  %v1486_v58 = vor.u32 %v1485_v13, %v1482_v17  ;;  %v2051_v10 = vrot.slane %v2771_v27, 9 }
  0x4c   : > { %v2797_v34 = vcombine.low %v1086_v54, %v1096_v5  ;;  %v1496_v18 = vor.u32 %v1495_v61, %v1491_v60  ;;  %v1501_v20 = vrot.slane %v1499_v4, 5  ;;  %v1630_v53 = vrot.slane %v2780_v15, 5 }
  0x4d   : > { %v1633_v25 = vrot.slane %v201_v41, 5  ;;  %v1964_v26 = vcombine.low %v2488_v52, %v2492_v57  ;;  %v1965_v31 = vcombine.low %v2529_v32, %v2542_v44  ;;  %v777_v36 = vsel %vm2617_vm7, %v1982_v6, %v776_v63 }
  0x4e   : > { %2226 = vmatmul.mubr.msk.bf16.gmra.mxu0 %vm424_vm3, %v2760_v12  ;;  %v1487_v37 = vrot.slane %v1486_v58, 4  ;;  %v780_v39 = vsel %vm2617_vm7, %v778_v16, %v779_v1  ;;  %v1497_v41 = vrot.slane %v1496_v18, 4  ;;  %v2817_v52 = vsel %vm2617_vm7, %v2051_v10, %v1630_v53 }
  0x4f   : > { %2229 = vmatprep.mubr.msk.bf16.mxu0 %vm424_vm3, %v2766_v14  ;;  %v1632_v57 = vrot.slane %v1630_v53, 4  ;;  %v2828_v6 = vcombine.low %v777_v36, %v780_v39  ;;  %v1966_v29 = vcombine.low %v2585_v35, %v2592_v42  ;;  %v1364_v30 = vsel %vm449_vm0, %v2695_v28, 0  ;;  %v2041_v35 = vld [vmem:[%s3211_s1 + $0x1c] sm:$0xf] }
  0x50   : > { %v1492_v32 = vsel %vm2469_vm4, %v1487_v37, %v1491_v60  ;;  %v1502_v44 = vsel %vm2469_vm4, %v1497_v41, %v1501_v20  ;;  %v2001_v42 = vcombine.low %v2712_v47, %v2729_v19  ;;  %v1512_v28 = vsel %vm449_vm0, %v2041_v35, 0 }
  0x51   : > { %v2825_v63 = vsel %vm2617_vm7, %v1632_v57, %v1633_v25  ;;  %v2830_v1 = vcombine.low %v1492_v32, %v1502_v44 }
  0x52   : > { %2208 = vmatmul.mubr.msk.bf16.gmra.mxu1 %vm424_vm3, %v1964_v26  ;;  %v2053_v16 = vcombine.low %v2817_v52, %v2825_v63 }
  0x53   : > { %2211 = vmatprep.mubr.msk.bf16.mxu1 %vm424_vm3, %v1965_v31 }
  0x56   : > { %2230 = vmatmul.mubr.msk.bf16.gmra.mxu0 %vm424_vm3, %v2828_v6 }
  0x57   : > { %2253 = vmatprep.mubr.msk.bf16.mxu0 %vm424_vm3, %v2531_v33  ;;  %v1238_v33 = vsel %vm449_vm0, %v2740_v8, 0 }
  0x5a   : > { %2212 = vmatmul.mubr.msk.bf16.gmra.mxu1 %vm424_vm3, %v1966_v29 }
  0x5b   : > { %2235 = vmatprep.mubr.msk.bf16.mxu1 %vm424_vm3, %v2680_v22  ;;  %v1644_v22 = vsel %vm449_vm0, %v2052_v24, 0 }
  0x5e   : > { %2254 = vmatmul.mubr.msk.bf16.vlgmr.msra.gmra.mxu0 %vm424_vm3, %v2594_v43 }
  0x5f   : > { %2288 = vmatpush3.bf16.msra.mxu0 %v1364_v30  ;;  %2257 = vmatprep.mubr.msk.bf16.mxu0 %vm424_vm3, %v2631_v46 }
  0x60   : > { %2352 = vmatprep.subr.msk.bf16.mxu0 %vm449_vm0, %v2052_v24 }
  0x62   : > { %2236 = vmatmul.mubr.msk.bf16.vlgmr.msra.gmra.mxu1 %vm424_vm3, %v2705_v40 }
  0x63   : > { %2270 = vmatpush3.bf16.msra.mxu1 %v1238_v33  ;;  %2239 = vmatprep.mubr.msk.bf16.mxu1 %vm424_vm3, %v2718_v62 }
  0x64   : > { %2351 = vmatprep.subr.msk.bf16.mxu1 %vm449_vm0, %v2041_v35 }
  0x66   : > { %2258 = vmatmul.mubr.msk.bf16.gmra.mxu0 %vm424_vm3, %v2508_v7 }
  0x67   : > { %2261 = vmatprep.mubr.msk.bf16.mxu0 %vm424_vm3, %v2566_v9 }
  0x6a   : > { %2240 = vmatmul.mubr.msk.bf16.gmra.mxu1 %vm424_vm3, %v2724_v3 }
  0x6b   : > { %2243 = vmatprep.mubr.msk.bf16.mxu1 %vm424_vm3, %v1964_v26 }
  0x6e   : > { %2262 = vmatmul.mubr.msk.bf16.gmra.mxu0 %vm424_vm3, %v2612_v2 }
  0x6f   : > { %2265 = vmatprep.mubr.msk.bf16.mxu0 %vm424_vm3, %v2658_v0 }
  0x72   : > { %2244 = vmatmul.mubr.msk.bf16.gmra.mxu1 %vm424_vm3, %v1965_v31 }
  0x73   : > { %2247 = vmatprep.mubr.msk.bf16.mxu1 %vm424_vm3, %v1966_v29 }
  0x76   : > { %2266 = vmatmul.mubr.msk.bf16.gmra.mxu0 %vm424_vm3, %v2797_v34 }
  0x77   : > { %2289 = vmatprep.mubr.msk.bf16.mxu0 %vm424_vm3, %v2705_v40 }
  0x7a   : > { %2248 = vmatmul.mubr.msk.bf16.gmra.mxu1 %vm424_vm3, %v2001_v42 }
  0x7b   : > { %2271 = vmatprep.mubr.msk.bf16.mxu1 %vm424_vm3, %v2669_v23  ;;  %v2032_v23 = vcombine.low %v2771_v27, %v2780_v15 }
  0x7e   : > { %2290 = vmatmul.mubr.msk.bf16.vlgmr.msra.gmra.mxu0 %vm424_vm3, %v2718_v62 }
  0x7f   : > { %2324 = vmatpush3.bf16.msra.mxu0 %v1644_v22  ;;  %2293 = vmatprep.mubr.msk.bf16.mxu0 %vm424_vm3, %v2724_v3 }
  0x82   : > { %2272 = vmatmul.mubr.msk.bf16.vlgmr.msra.gmra.mxu1 %vm424_vm3, %v2676_v21 }
  0x83   : > { %2306 = vmatpush3.bf16.msra.mxu1 %v1512_v28  ;;  %2275 = vmatprep.mubr.msk.bf16.mxu1 %vm424_vm3, %v2720_v51 }
  0x86   : > { %2294 = vmatmul.mubr.msk.bf16.gmra.mxu0 %vm424_vm3, %v1964_v26 }
  0x87   : > { %2297 = vmatprep.mubr.msk.bf16.mxu0 %vm424_vm3, %v1965_v31 }
  0x8a   : > { %2276 = vmatmul.mubr.msk.bf16.gmra.mxu1 %vm424_vm3, %v2732_v55 }
  0x8b   : > { %2279 = vmatprep.mubr.msk.bf16.mxu1 %vm424_vm3, %v2760_v12 }
  0x8e   : > { %2298 = vmatmul.mubr.msk.bf16.gmra.mxu0 %vm424_vm3, %v1966_v29 }
  0x8f   : > { %2301 = vmatprep.mubr.msk.bf16.mxu0 %vm424_vm3, %v2001_v42 }
  0x92   : > { %2280 = vmatmul.mubr.msk.bf16.gmra.mxu1 %vm424_vm3, %v2766_v14 }
  0x93   : > { %2283 = vmatprep.mubr.msk.bf16.mxu1 %vm424_vm3, %v2828_v6 }
  0x96   : > { %2302 = vmatmul.mubr.msk.bf16.gmra.mxu0 %vm424_vm3, %v2032_v23 }
  0x97   : > { %2325 = vmatprep.mubr.msk.bf16.mxu0 %vm424_vm3, %v2676_v21 }
  0x9a   : > { %2284 = vmatmul.mubr.msk.bf16.gmra.mxu1 %vm424_vm3, %v2795_v59 }
  0x9b   : > { %2307 = vmatprep.mubr.msk.bf16.mxu1 %vm424_vm3, %v2594_v43 }
  0x9e   : > { %2326 = vmatmul.mubr.msk.bf16.vlgmr.msra.gmra.mxu0 %vm424_vm3, %v2720_v51 }
  0x9f   : > { %2329 = vmatprep.mubr.msk.bf16.mxu0 %vm424_vm3, %v2732_v55 }
  0xa2   : > { %2308 = vmatmul.mubr.msk.bf16.vlgmr.msra.gmra.mxu1 %vm424_vm3, %v2631_v46 }
  0xa3   : > { %2311 = vmatprep.mubr.msk.bf16.mxu1 %vm424_vm3, %v2508_v7 }
  0xa6   : > { %2330 = vmatmul.mubr.msk.bf16.gmra.mxu0 %vm424_vm3, %v2760_v12 }
  0xa7   : > { %2333 = vmatprep.mubr.msk.bf16.mxu0 %vm424_vm3, %v2766_v14 }
  0xaa   : > { %2312 = vmatmul.mubr.msk.bf16.gmra.mxu1 %vm424_vm3, %v2566_v9 }
  0xab   : > { %2315 = vmatprep.mubr.msk.bf16.mxu1 %vm424_vm3, %v2612_v2 }
  0xae   : > { %2334 = vmatmul.mubr.msk.bf16.gmra.mxu0 %vm424_vm3, %v2828_v6 }
  0xaf   : > { %2337 = vmatprep.mubr.msk.bf16.mxu0 %vm424_vm3, %v2795_v59 }
  0xb2   : > { %2316 = vmatmul.mubr.msk.bf16.gmra.mxu1 %vm424_vm3, %v2658_v0 }
  0xb3   : > { %2319 = vmatprep.mubr.msk.bf16.mxu1 %vm424_vm3, %v2797_v34 }
  0xb6   : > { %2338 = vmatmul.mubr.msk.bf16.gmra.mxu0 %vm424_vm3, %v2053_v16 }
  0xba   : > { %2320 = vmatmul.mubr.msk.bf16.gmra.mxu1 %vm424_vm3, %v2830_v1 }
  0xe5   : > { %v2183_v7 = vpop.f32.mrf.mxu0 }
  0xe7   : > { %v487_v43 = vpop.f32.mrf.mxu0 }
  0xe9   : > { %v2184_v46 = vpop.f32.mrf.mxu0 }
  0xea   : > { %v2191_v9 = vpop.f32.mrf.mxu1 }
  0xeb   : > { %v490_v40 = vpop.f32.mrf.mxu0 }
  0xec   : > { %v519_v2 = vpop.f32.mrf.mxu1 }
  0xee   : > { %v2192_v21 = vpop.f32.mrf.mxu1 }
  0xf0   : > { %v522_v47 = vpop.f32.mrf.mxu1 }
  0xf6   : > { %v2187_v0 = vpop.f32.mrf.mxu0 }
  0xf8   : > { %v503_v62 = vpop.f32.mrf.mxu0 }
  0xfa   : > { %v2195_v51 = vpop.f32.mrf.mxu1  ;;  %v2188_v3 = vpop.f32.mrf.mxu0 }
  0xfc   : > { %v535_v19 = vpop.f32.mrf.mxu1  ;;  %v506_v55 = vpop.f32.mrf.mxu0 }
  0xfe   : > { %v2196_v8 = vpop.f32.mrf.mxu1  ;;  %v2219_v12 = vpop.f32.mrf.mxu0 }
 0x100   : > { %v2947_v14 = vpop.f32.mrf.mxu1  ;;  %v868_v27 = vpop.f32.mrf.mxu0 }
 0x102   : > { %v2201_v38 = vpop.f32.mrf.mxu1  ;;  %v2220_v45 = vpop.f32.mrf.mxu0 }
 0x103   : > { %v660_v15 = vadd.f32 %v2201_v38, %v2183_v7 }
 0x104   : > { %v651_v48 = vpop.f32.mrf.mxu1  ;;  %v871_v49 = vpop.f32.mrf.mxu0 }
 0x105   : > { %v2949_v50 = vadd.f32 %v2219_v12, %v660_v15  ;;  %v652_v17 = vadd.f32 %v651_v48, %v487_v43 }
 0x106   : > { %v2202_v56 = vpop.f32.mrf.mxu1  ;;  %v2223_v54 = vpop.f32.mrf.mxu0 }
 0x107   : > { %v2951_v11 = vadd.f32 %v868_v27, %v652_v17  ;;  %v663_v13 = vadd.f32 %v2202_v56, %v2184_v46 }
 0x108   : > { %v654_v4 = vpop.f32.mrf.mxu1  ;;  %v884_v5 = vpop.f32.mrf.mxu0 }
 0x109   : > { %v2953_v59 = vadd.f32 %v2220_v45, %v663_v13  ;;  %v655_v60 = vadd.f32 %v654_v4, %v490_v40 }
 0x10a   : > { %v2205_v61 = vpop.f32.mrf.mxu1  ;;  %v2224_v34 = vpop.f32.mrf.mxu0 }
 0x10b   : > { %v2955_v58 = vadd.f32 %v871_v49, %v655_v60  ;;  %v676_v10 = vadd.f32 %v2205_v61, %v2187_v0 }
 0x10c   : > { %v667_v18 = vpop.f32.mrf.mxu1  ;;  %v887_v20 = vpop.f32.mrf.mxu0 }
 0x10d   : > { %v2957_v53 = vadd.f32 %v2223_v54, %v676_v10  ;;  %v668_v25 = vadd.f32 %v667_v18, %v503_v62 }
 0x10e   : > { %v2206_v26 = vpop.f32.mrf.mxu1  ;;  %v2227_v31 = vpop.f32.mrf.mxu0 }
 0x10f   : > { %v2959_v36 = vadd.f32 %v884_v5, %v668_v25  ;;  %v679_v37 = vadd.f32 %v2206_v26, %v2188_v3 }
 0x110   : > { %v670_v39 = vpop.f32.mrf.mxu1  ;;  %v900_v41 = vpop.f32.mrf.mxu0 }
 0x111   : > { %v2961_v52 = vadd.f32 %v2224_v34, %v679_v37  ;;  %v671_v57 = vadd.f32 %v670_v39, %v506_v55 }
 0x112   : > { %v2209_v32 = vpop.f32.mrf.mxu1  ;;  %v2228_v44 = vpop.f32.mrf.mxu0 }
 0x113   : > { %v2963_v63 = vadd.f32 %v887_v20, %v671_v57  ;;  %v692_v6 = vadd.f32 %v2209_v32, %v2191_v9 }
 0x114   : > { %v683_v1 = vpop.f32.mrf.mxu1  ;;  %v903_v16 = vpop.f32.mrf.mxu0 }
 0x115   : > { %v2965_v29 = vadd.f32 %v2227_v31, %v692_v6  ;;  %v684_v30 = vadd.f32 %v683_v1, %v519_v2 }
 0x116   : > { %v2210_v24 = vpop.f32.mrf.mxu1  ;;  %v2231_v33 = vpop.f32.mrf.mxu0 }
 0x117   : > { %v2967_v35 = vadd.f32 %v900_v41, %v684_v30  ;;  %v695_v42 = vadd.f32 %v2210_v24, %v2192_v21 }
 0x118   : > { %v686_v22 = vpop.f32.mrf.mxu1  ;;  %v916_v28 = vpop.f32.mrf.mxu0 }
 0x119   : > { %v2969_v23 = vadd.f32 %v2228_v44, %v695_v42  ;;  %v687_v7 = vadd.f32 %v686_v22, %v522_v47 }
 0x11a   : > { %v2213_v43 = vpop.f32.mrf.mxu1  ;;  %v2232_v46 = vpop.f32.mrf.mxu0 }
 0x11b   : > { %v2971_v40 = vadd.f32 %v903_v16, %v687_v7  ;;  %v708_v9 = vadd.f32 %v2213_v43, %v2195_v51 }
 0x11c   : > { %v699_v0 = vpop.f32.mrf.mxu1  ;;  %v919_v62 = vpop.f32.mrf.mxu0 }
 0x11d   : > { %v2973_v3 = vadd.f32 %v2231_v33, %v708_v9  ;;  %v700_v2 = vadd.f32 %v699_v0, %v535_v19 }
 0x11e   : > { %v2214_v55 = vpop.f32.mrf.mxu1  ;;  %v2975_v12 = vpop.f32.mrf.mxu0 }
 0x11f   : > { %v2977_v27 = vadd.f32 %v916_v28, %v700_v2  ;;  %v711_v21 = vadd.f32 %v2214_v55, %v2196_v8 }
 0x120   : > { %v702_v38 = vpop.f32.mrf.mxu1  ;;  %v2979_v45 = vpop.f32.mrf.mxu0 }
 0x121   : > { %v2981_v47 = vadd.f32 %v2232_v46, %v711_v21  ;;  %v703_v15 = vadd.f32 %v702_v38, %v2947_v14 }
 0x122   : > { %v2237_v48 = vpop.f32.mrf.mxu1  ;;  %v2984_v51 = vpop.f32.mrf.mxu0 }
 0x123   : > { %3218 = vst [vmem:[#allocation2_spill] sm:$0xff] %v2981_v47  ;;  %v2986_v49 = vadd.f32 %v919_v62, %v703_v15 }
 0x124   : > { %v994_v17 = vpop.f32.mrf.mxu1  ;;  %v2988_v19 = vpop.f32.mrf.mxu0 }
 0x125   : > { %3219 = vst [vmem:[#allocation3_spill] sm:$0xff] %v2986_v49 }
 0x126   : > { %v2238_v56 = vpop.f32.mrf.mxu1  ;;  %v2990_v54 = vpop.f32.mrf.mxu0 }
 0x128   : > { %v997_v13 = vpop.f32.mrf.mxu1  ;;  %v2992_v8 = vpop.f32.mrf.mxu0 }
 0x12a   : > { %v2994_v4 = vpop.f32.mrf.mxu1  ;;  %v2996_v5 = vpop.f32.mrf.mxu0 }
 0x12c   : > { %v1010_v60 = vpop.f32.mrf.mxu1  ;;  %v2998_v14 = vpop.f32.mrf.mxu0 }
 0x12e   : > { %v2242_v61 = vpop.f32.mrf.mxu1  ;;  %v3000_v34 = vpop.f32.mrf.mxu0 }
 0x130   : > { %v3002_v10 = vpop.f32.mrf.mxu1  ;;  %v3004_v18 = vpop.f32.mrf.mxu0 }
 0x132   : > { %v3006_v20 = vpop.f32.mrf.mxu1  ;;  %v3008_v25 = vpop.f32.mrf.mxu0 }
 0x134   : > { %v3010_v26 = vpop.f32.mrf.mxu1  ;;  %v3012_v31 = vpop.f32.mrf.mxu0 }
 0x135   : > { %3220 = vst [vmem:[#allocation4_spill] sm:$0xff] %v3012_v31 }
 0x136   : > { %v3014_v37 = vpop.f32.mrf.mxu1  ;;  %v3016_v39 = vpop.f32.mrf.mxu0 }
 0x137   : > { %3221 = vst [vmem:[#allocation5_spill] sm:$0xff] %v3016_v39 }
 0x138   : > { %v3018_v41 = vpop.f32.mrf.mxu1  ;;  %v3020_v57 = vpop.f32.mrf.mxu0 }
 0x139   : > { %3222 = vst [vmem:[#allocation6_spill] sm:$0xff] %v3020_v57 }
 0x13a   : > { %v3022_v32 = vpop.f32.mrf.mxu1  ;;  %v3024_v44 = vpop.f32.mrf.mxu0 }
 0x13b   : > { %3223 = vst [vmem:[#allocation7_spill] sm:$0xff] %v3024_v44 }
 0x13c   : > { %v3026_v6 = vpop.f32.mrf.mxu1  ;;  %v3028_v1 = vpop.f32.mrf.mxu0 }
 0x13d   : > { %3224 = vst [vmem:[#allocation8_spill] sm:$0xff] %v3028_v1 }
 0x13e   : > { %v3030_v16 = vpop.f32.mrf.mxu1  ;;  %v2291_v30 = vpop.f32.mrf.mxu0 }
 0x13f   : > { %3225 = vst [vmem:[#allocation9_spill] sm:$0xff] %v3030_v16 }
 0x140   : > { %v3032_v24 = vpop.f32.mrf.mxu1  ;;  %v1400_v33 = vpop.f32.mrf.mxu0 }
 0x141   : > { %3226 = vst [vmem:[#allocation10_spill] sm:$0xff] %v3032_v24 }
 0x142   : > { %v2273_v42 = vpop.f32.mrf.mxu1  ;;  %v3034_v22 = vpop.f32.mrf.mxu0 }
 0x144   : > { %v1274_v28 = vpop.f32.mrf.mxu1  ;;  %v3036_v7 = vpop.f32.mrf.mxu0 }
 0x146   : > { %v2274_v43 = vpop.f32.mrf.mxu1  ;;  %v3038_v46 = vpop.f32.mrf.mxu0 }
 0x148   : > { %v1277_v9 = vpop.f32.mrf.mxu1  ;;  %v3040_v0 = vpop.f32.mrf.mxu0 }
 0x14a   : > { %v2277_v62 = vpop.f32.mrf.mxu1  ;;  %v3042_v2 = vpop.f32.mrf.mxu0 }
 0x14b   : > { %3227 = vst [vmem:[#allocation11_spill] sm:$0xff] %v3042_v2 }
 0x14c   : > { %v1290_v55 = vpop.f32.mrf.mxu1  ;;  %v3044_v21 = vpop.f32.mrf.mxu0 }
 0x14d   : > { %3228 = vst [vmem:[#allocation12_spill] sm:$0xff] %v3044_v21  ;;  %v1059_v21 = vadd.f32 %v2237_v48, %v2949_v50  ;;  %v1058_v48 = vadd.f32 %v997_v13, %v2955_v58  ;;  %v1062_v58 = vadd.f32 %v3002_v10, %v2963_v63  ;;  %v1068_v10 = vadd.f32 %v3014_v37, %v2969_v23 }
 0x14e   : > { %v3046_v38 = vpop.f32.mrf.mxu1  ;;  %v3048_v15 = vpop.f32.mrf.mxu0 }
 0x14f   : > { %3229 = vst [vmem:[#allocation13_spill] sm:$0xff] %v3048_v15 }
 0x150   : > { %v3050_v1 = vpop.f32.mrf.mxu1  ;;  %v3052_v44 = vpop.f32.mrf.mxu0 }
 0x151   : > { %3230 = vst [vmem:[#allocation14_spill] sm:$0xff] %v3052_v44  ;;  %v1057_v44 = vadd.f32 %v994_v17, %v2951_v11 }
 0x152   : > { %v3054_v24 = vpop.f32.mrf.mxu1  ;;  %v3056_v49 = vpop.f32.mrf.mxu0 }
 0x153   : > { %3231 = vst [vmem:[#allocation15_spill] sm:$0xff] %v3054_v24  ;;  %3232 = vst [vmem:[#allocation16_spill] sm:$0xff] %v3056_v49  ;;  %v1207_v49 = vadd.f32 %v2975_v12, %v1059_v21  ;;  %v1205_v50 = vadd.f32 %v2979_v45, %v1057_v44  ;;  %v1063_v12 = vadd.f32 %v2994_v4, %v2957_v53 }
 0x154   : > { %v3058_v16 = vpop.f32.mrf.mxu1  ;;  %v3060_v47 = vpop.f32.mrf.mxu0  ;;  %v1206_v45 = vadd.f32 %v2988_v19, %v1058_v48  ;;  %v1065_v53 = vadd.f32 %v3010_v26, %v2967_v35  ;;  %v1210_v26 = vadd.f32 %v2998_v14, %v1062_v58  ;;  %v1216_v14 = vadd.f32 %v3008_v25, %v1068_v10 }
 0x155   : > { %3233 = vst [vmem:[#allocation17_spill] sm:$0xff] %v3058_v16  ;;  %3234 = vst [vmem:[#allocation18_spill] sm:$0xff] %v3060_v47  ;;  %v1060_v47 = vadd.f32 %v2238_v56, %v2953_v59  ;;  %v1061_v59 = vadd.f32 %v1010_v60, %v2959_v36  ;;  %v1064_v56 = vadd.f32 %v2242_v61, %v2961_v52 }
 0x156   : > { %v3062_v57 = vpop.f32.mrf.mxu1  ;;  %v3064_v39 = vpop.f32.mrf.mxu0  ;;  %v1338_v52 = vadd.f32 %v1277_v9, %v1206_v45  ;;  %v1211_v61 = vadd.f32 %v2990_v54, %v1063_v12 }
 0x157   : > { %3235 = vst [vmem:[#allocation19_spill] sm:$0xff] %v3062_v57  ;;  %3236 = vst [vmem:[#allocation20_spill] sm:$0xff] %v3064_v39  ;;  %v1339_v39 = vadd.f32 %v2273_v42, %v1207_v49  ;;  %v1208_v17 = vadd.f32 %v2984_v51, %v1060_v47  ;;  %v1067_v47 = vadd.f32 %v3006_v20, %v2965_v29  ;;  %v3108_v29 = vld [vmem:[%s3212_s2] ss:$0 sm:$0xff] }
 0x158   : > { %v3067_v2 = vpop.f32.mrf.mxu1  ;;  %v3069_v15 = vpop.f32.mrf.mxu0  ;;  %v1209_v19 = vadd.f32 %v2992_v8, %v1061_v59  ;;  %v1212_v63 = vadd.f32 %v2996_v5, %v1064_v56  ;;  %v1213_v5 = vadd.f32 %v3004_v18, %v1065_v53  ;;  %v1343_v44 = vadd.f32 %v2277_v62, %v1211_v61 }
 0x159   : > { %3237 = vst [vmem:[#allocation21_spill] sm:$0xff] %v3069_v15  ;;  %v1465_v49 = vadd.f32 %v2291_v30, %v1339_v39  ;;  %v1340_v13 = vadd.f32 %v2274_v43, %v1208_v17  ;;  %v1215_v8 = vadd.f32 %v3000_v34, %v1067_v47  ;;  %v1071_v34 = vadd.f32 %v3022_v32, %v2973_v3 }
 0x15a   : > { %v3072_v31 = vpop.f32.mrf.mxu1  ;;  %v3074_v24 = vpop.f32.mrf.mxu0  ;;  %v1341_v30 = vadd.f32 %v1290_v55, %v1209_v19  ;;  %v1344_v18 = vadd.f32 %v3046_v38, %v1212_v63  ;;  %v1469_v25 = vadd.f32 %v3038_v46, %v1343_v44  ;;  %v3241_v46 = vld [vmem:[#allocation11_spill] sm:$0xff] }
 0x15b   : > { %3238 = vst [vmem:[#allocation22_spill] sm:$0xff] %v3072_v31  ;;  %v1337_v31 = vadd.f32 %v1274_v28, %v1205_v50 }
 0x15c   : > { %v3078_v16 = vpop.f32.mrf.mxu1  ;;  %v3080_v57 = vpop.f32.mrf.mxu0  ;;  %v1470_v59 = vadd.f32 %v3241_v46, %v1344_v18  ;;  %v3249_v18 = vld [vmem:[#allocation2_spill] sm:$0xff] }
 0x15d   : > { %3239 = vst [vmem:[#allocation23_spill] sm:$0xff] %v3080_v57  ;;  %v1463_v4 = vadd.f32 %v1400_v33, %v1337_v31  ;;  %v1466_v31 = vadd.f32 %v3034_v22, %v1340_v13  ;;  %v1464_v33 = vadd.f32 %v3036_v7, %v1338_v52  ;;  %v1066_v22 = vadd.f32 %v3018_v41, %v2971_v40 }
 0x15e   : > { %v3084_v15 = vpop.f32.mrf.mxu1  ;;  %v2327_v11 = vpop.f32.mrf.mxu0  ;;  %v1342_v40 = vadd.f32 %v3050_v1, %v1210_v26 }
 0x160   : > { %v3091_v21 = vpop.f32.mrf.mxu1  ;;  %v1680_v57 = vpop.f32.mrf.mxu0 }
 0x162   : > { %v2309_v51 = vpop.f32.mrf.mxu1  ;;  %v2328_v36 = vpop.f32.mrf.mxu0 }
 0x163   : > { %v1613_v60 = vadd.f32 %v2309_v51, %v1465_v49  ;;  %v3243_v51 = vld [vmem:[#allocation5_spill] sm:$0xff] }
 0x164   : > { %v1548_v35 = vpop.f32.mrf.mxu1  ;;  %v1683_v20 = vpop.f32.mrf.mxu0 }
 0x165   : > { %v1745_v54 = vadd.f32 %v2327_v11, %v1613_v60  ;;  %v1611_v39 = vadd.f32 %v1548_v35, %v1463_v4  ;;  %v1467_v11 = vadd.f32 %v3040_v0, %v1341_v30  ;;  %v3242_v0 = vld [vmem:[#allocation15_spill] sm:$0xff]  ;;  %v3244_v4 = vld [vmem:[#allocation6_spill] sm:$0xff]  ;;  %v3245_v60 = vld [vmem:[#allocation12_spill] sm:$0xff] }
 0x166   : > { %v2310_v23 = vpop.f32.mrf.mxu1  ;;  %v2331_v37 = vpop.f32.mrf.mxu0  ;;  %v1347_v1 = vadd.f32 %v3242_v0, %v1215_v8  ;;  %v1468_v61 = vadd.f32 %v3245_v60, %v1342_v40  ;;  %v3247_v8 = vld [vmem:[#allocation17_spill] sm:$0xff]  ;;  %v3248_v30 = vld [vmem:[#allocation19_spill] sm:$0xff] }
 0x167   : > { %v1768_v42 = vadd.f32 %v3108_v29, %v1745_v54  ;;  %v1743_v28 = vadd.f32 %v1680_v57, %v1611_v39  ;;  %v1614_v43 = vadd.f32 %v2310_v23, %v1466_v31  ;;  %v1069_v57 = vadd.f32 %v3026_v6, %v2977_v27  ;;  %v3240_v27 = vld [vmem:[#allocation4_spill] sm:$0xff]  ;;  %v3246_v54 = vld [vmem:[#allocation13_spill] sm:$0xff] }
 0x168   : > { %v1551_v9 = vpop.f32.mrf.mxu1  ;;  %v1696_v62 = vpop.f32.mrf.mxu0  ;;  %v1214_v6 = vadd.f32 %v3240_v27, %v1066_v22  ;;  %v1473_v39 = vadd.f32 %v3246_v54, %v1347_v1  ;;  %v1345_v44 = vadd.f32 %v3247_v8, %v1213_v5  ;;  %v1348_v23 = vadd.f32 %v3248_v30, %v1216_v14  ;;  %v3260_v8 = vld [vmem:[#allocation21_spill] sm:$0xff] }
 0x169   : > { %v1784_v55 = vmax.f32 %v1768_v42, 0.0  ;;  %v1766_v7 = vadd.f32 %v3108_v29, %v1743_v28  ;;  %v1746_v50 = vadd.f32 %v2328_v36, %v1614_v43  ;;  %v1612_v48 = vadd.f32 %v1551_v9, %v1464_v33  ;;  %v3250_v9 = vld [vmem:[#allocation9_spill] sm:$0xff] }
 0x16a   : > { %v2313_v3 = vpop.f32.mrf.mxu1  ;;  %v2332_v41 = vpop.f32.mrf.mxu0  ;;  %v1219_v36 = vadd.f32 %v3243_v51, %v1071_v34  ;;  %v1217_v52 = vadd.f32 %v3244_v4, %v1069_v57 }
 0x16b   : > { %v2084_v32 = vpack.c.bf16 %v1784_v55, %v1784_v55  ;;  %v1782_v38 = vmax.f32 %v1766_v7, 0.0  ;;  %v1769_v17 = vadd.f32 %v3108_v29, %v1746_v50  ;;  %v1744_v12 = vadd.f32 %v1683_v20, %v1612_v48  ;;  %v3251_v55 = vld [vmem:[#allocation3_spill] sm:$0xff]  ;;  %v3252_v7 = vld [vmem:[#allocation10_spill] sm:$0xff] }
 0x16c   : > { %v1617_v56 = vadd.f32 %v2313_v3, %v1469_v25  ;;  %v1564_v45 = vpop.f32.mrf.mxu1  ;;  %v1699_v58 = vpop.f32.mrf.mxu0  ;;  %v1070_v5 = vadd.f32 %v3252_v7, %v3251_v55  ;;  %v1346_v50 = vadd.f32 %v3067_v2, %v1214_v6 }
 0x16d   : > { %1865 = vst.msk [vmem:[%s3132_s15 + $0x8] sm:$0xf] %vm1862_vm8, %v2084_v32  ;;  %v2082_v49 = vpack.c.bf16 %v1782_v38, %v1782_v38  ;;  %v1785_v13 = vmax.f32 %v1769_v17, 0.0  ;;  %v1767_v47 = vadd.f32 %v3108_v29, %v1744_v12  ;;  %v1615_v53 = vadd.f32 %v1564_v45, %v1467_v11  ;;  %v3254_v38 = vld [vmem:[#allocation16_spill] sm:$0xff]  ;;  %v3255_v12 = vld [vmem:[#allocation22_spill] sm:$0xff] }
 0x16e   : > { %v1749_v19 = vadd.f32 %v2331_v37, %v1617_v56  ;;  %v2314_v63 = vpop.f32.mrf.mxu1  ;;  %v2335_v10 = vpop.f32.mrf.mxu0  ;;  %v1474_v17 = vadd.f32 %v3254_v38, %v1348_v23  ;;  %v1351_v27 = vadd.f32 %v3255_v12, %v1219_v36  ;;  %v3256_v45 = vld [vmem:[#allocation18_spill] sm:$0xff] }
 0x16f   : > { %1863 = vst.msk [vmem:[%s3132_s15] sm:$0xf] %vm1862_vm8, %v2082_v49  ;;  %v2085_v35 = vpack.c.bf16 %v1785_v13, %v1785_v13  ;;  %v1783_v20 = vmax.f32 %v1767_v47, 0.0  ;;  %v1747_v26 = vadd.f32 %v1696_v62, %v1615_v53  ;;  %v1618_v31 = vadd.f32 %v2314_v63, %v1470_v59  ;;  %v3258_v63 = vld [vmem:[#allocation8_spill] sm:$0xff] }
 0x170   : > { %v1772_v33 = vadd.f32 %v3108_v29, %v1749_v19  ;;  %v1567_v42 = vpop.f32.mrf.mxu1  ;;  %v1712_v28 = vpop.f32.mrf.mxu0  ;;  %v1072_v62 = vadd.f32 %v3250_v9, %v3249_v18  ;;  %v1472_v49 = vadd.f32 %v3256_v45, %v1346_v50 }
 0x171   : > { %1866 = vst.msk [vmem:[%s3132_s15 + $0xc] sm:$0xf] %vm1862_vm8, %v2085_v35  ;;  %v2083_v37 = vpack.c.bf16 %v1783_v20, %v1783_v20  ;;  %v1770_v43 = vadd.f32 %v3108_v29, %v1747_v26  ;;  %v1750_v22 = vadd.f32 %v2332_v41, %v1618_v31  ;;  %v1616_v34 = vadd.f32 %v1567_v42, %v1468_v61  ;;  %v3253_v41 = vld [vmem:[#allocation14_spill] sm:$0xff]  ;;  %v3257_v61 = vld [vmem:[#allocation7_spill] sm:$0xff]  ;;  %v3259_v35 = vld [vmem:[#allocation20_spill] sm:$0xff] }
 0x172   : > { %v1788_v14 = vmax.f32 %v1772_v33, 0.0  ;;  %v2317_v48 = vpop.f32.mrf.mxu1  ;;  %v2336_v57 = vpop.f32.mrf.mxu0  ;;  %v1471_v32 = vadd.f32 %v3253_v41, %v1345_v44  ;;  %v1220_v19 = vadd.f32 %v3257_v61, %v1072_v62  ;;  %v1477_v20 = vadd.f32 %v3259_v35, %v1351_v27 }
 0x173   : > { %1864 = vst.msk [vmem:[%s3132_s15 + $0x4] sm:$0xf] %vm1862_vm8, %v2083_v37  ;;  %v1786_v25 = vmax.f32 %v1770_v43, 0.0  ;;  %v1773_v11 = vadd.f32 %v3108_v29, %v1750_v22  ;;  %v1748_v40 = vadd.f32 %v1699_v58, %v1616_v34  ;;  %v1621_v3 = vadd.f32 %v2317_v48, %v1473_v39 }
 0x174   : > { %v2088_v46 = vpack.c.bf16 %v1788_v14, %v1788_v14  ;;  %v1580_v2 = vpop.f32.mrf.mxu1  ;;  %v1715_v6 = vpop.f32.mrf.mxu0  ;;  %v1349_v58 = vadd.f32 %v3078_v16, %v1217_v52  ;;  %v1352_v30 = vadd.f32 %v3084_v15, %v1220_v19 }
 0x175   : > { %v2086_v59 = vpack.c.bf16 %v1786_v25, %v1786_v25  ;;  %v1789_v0 = vmax.f32 %v1773_v11, 0.0  ;;  %v1771_v1 = vadd.f32 %v3108_v29, %v1748_v40  ;;  %v1753_v56 = vadd.f32 %v2335_v10, %v1621_v3 }
 0x176   : > { %1869 = vst.msk [vmem:[%s3132_s15 + $0x18] sm:$0xf] %vm1862_vm8, %v2088_v46  ;;  %v1619_v13 = vadd.f32 %v1580_v2, %v1471_v32  ;;  %v2318_v47 = vpop.f32.mrf.mxu1  ;;  %v2339_v53 = vpop.f32.mrf.mxu0  ;;  %v1218_v10 = vadd.f32 %v3258_v63, %v1070_v5  ;;  %v1475_v44 = vadd.f32 %v3260_v8, %v1349_v58  ;;  %v1478_v7 = vadd.f32 %v3074_v24, %v1352_v30  ;;  %v3261_v5 = vld [vmem:[#allocation23_spill] sm:$0xff] }
 0x177   : > { %1867 = vst.msk [vmem:[%s3132_s15 + $0x10] sm:$0xf] %vm1862_vm8, %v2086_v59  ;;  %v2089_v51 = vpack.c.bf16 %v1789_v0, %v1789_v0  ;;  %v1787_v36 = vmax.f32 %v1771_v1, 0.0  ;;  %v1776_v4 = vadd.f32 %v3108_v29, %v1753_v56  ;;  %v1622_v60 = vadd.f32 %v2318_v47, %v1474_v17 }
 0x178   : > { %v1751_v16 = vadd.f32 %v1712_v28, %v1619_v13  ;;  %v1583_v52 = vpop.f32.mrf.mxu1  ;;  %v1350_v23 = vadd.f32 %v3091_v21, %v1218_v10  ;;  %v1728_v37 = vpop.f32.mrf.mxu0 }
 0x179   : > { %1870 = vst.msk [vmem:[%s3132_s15 + $0x1c] sm:$0xf] %vm1862_vm8, %v2089_v51  ;;  %v2087_v26 = vpack.c.bf16 %v1787_v36, %v1787_v36  ;;  %v1792_v31 = vmax.f32 %v1776_v4, 0.0  ;;  %v1754_v54 = vadd.f32 %v2336_v57, %v1622_v60  ;;  %v1620_v39 = vadd.f32 %v1583_v52, %v1472_v49 }
 0x17a   : > { %v1774_v33 = vadd.f32 %v3108_v29, %v1751_v16  ;;  %v2321_v42 = vpop.f32.mrf.mxu1  ;;  %v1476_v50 = vadd.f32 %v3261_v5, %v1350_v23  ;;  %v2340_v57 = vpop.f32.mrf.mxu0 }
 0x17b   : > { %1868 = vst.msk [vmem:[%s3132_s15 + $0x14] sm:$0xf] %vm1862_vm8, %v2087_v26  ;;  %v2092_v28 = vpack.c.bf16 %v1792_v31, %v1792_v31  ;;  %v1777_v43 = vadd.f32 %v3108_v29, %v1754_v54  ;;  %v1752_v22 = vadd.f32 %v1715_v6, %v1620_v39  ;;  %v1625_v34 = vadd.f32 %v2321_v42, %v1477_v20 }
 0x17c   : > { %v1790_v18 = vmax.f32 %v1774_v33, 0.0  ;;  %v1596_v9 = vpop.f32.mrf.mxu1  ;;  %v1731_v46 = vpop.f32.mrf.mxu0 }
 0x17d   : > { %1873 = vst.msk [vmem:[%s3132_s15 + $0x28] sm:$0xf] %vm1862_vm8, %v2092_v28  ;;  %v1793_v62 = vmax.f32 %v1777_v43, 0.0  ;;  %v1775_v15 = vadd.f32 %v3108_v29, %v1752_v22  ;;  %v1757_v21 = vadd.f32 %v2339_v53, %v1625_v34  ;;  %v1623_v55 = vadd.f32 %v1596_v9, %v1475_v44 }
 0x17e   : > { %v2090_v14 = vpack.c.bf16 %v1790_v18, %v1790_v18  ;;  %v2322_v48 = vpop.f32.mrf.mxu1 }
 0x17f   : > { %v2093_v25 = vpack.c.bf16 %v1793_v62, %v1793_v62  ;;  %v1791_v11 = vmax.f32 %v1775_v15, 0.0  ;;  %v1780_v40 = vadd.f32 %v3108_v29, %v1757_v21  ;;  %v1755_v3 = vadd.f32 %v1728_v37, %v1623_v55 }
 0x180   : > { %1871 = vst.msk [vmem:[%s3132_s15 + $0x20] sm:$0xf] %vm1862_vm8, %v2090_v14  ;;  %v1626_v41 = vadd.f32 %v2322_v48, %v1478_v7  ;;  %v1599_v32 = vpop.f32.mrf.mxu1 }
 0x181   : > { %1874 = vst.msk [vmem:[%s3132_s15 + $0x2c] sm:$0xf] %vm1862_vm8, %v2093_v25  ;;  %v2091_v24 = vpack.c.bf16 %v1791_v11, %v1791_v11  ;;  %v1796_v38 = vmax.f32 %v1780_v40, 0.0  ;;  %v1778_v17 = vadd.f32 %v3108_v29, %v1755_v3  ;;  %v1624_v12 = vadd.f32 %v1599_v32, %v1476_v50 }
 0x182   : > { %v1758_v27 = vadd.f32 %v2340_v57, %v1626_v41 }
 0x183   : > { %1872 = vst.msk [vmem:[%s3132_s15 + $0x24] sm:$0xf] %vm1862_vm8, %v2091_v24  ;;  %v2096_v2 = vpack.c.bf16 %v1796_v38, %v1796_v38  ;;  %v1794_v6 = vmax.f32 %v1778_v17, 0.0  ;;  %v1756_v59 = vadd.f32 %v1731_v46, %v1624_v12 }
 0x184   : > { %v1781_v0 = vadd.f32 %v3108_v29, %v1758_v27 }
 0x185   : > { %1877 = vst.msk [vmem:[%s3132_s15 + $0x38] sm:$0xf] %vm1862_vm8, %v2096_v2  ;;  %v2094_v1 = vpack.c.bf16 %v1794_v6, %v1794_v6  ;;  %v1779_v56 = vadd.f32 %v3108_v29, %v1756_v59 }
 0x186   : > { %v1797_v45 = vmax.f32 %v1781_v0, 0.0 }
 0x187   : > { %1875 = vst.msk [vmem:[%s3132_s15 + $0x30] sm:$0xf] %vm1862_vm8, %v2094_v1  ;;  %v1795_v49 = vmax.f32 %v1779_v56, 0.0 }
 0x188   : > { %v2097_v58 = vpack.c.bf16 %v1797_v45, %v1797_v45 }
 0x189   : > { %v2095_v13 = vpack.c.bf16 %v1795_v49, %v1795_v49 }
 0x18a   : > { %1878 = vst.msk [vmem:[%s3132_s15 + $0x3c] sm:$0xf] %vm1862_vm8, %v2097_v58 }
 0x18b   : > { %1876 = vst.msk [vmem:[%s3132_s15 + $0x34] sm:$0xf] %vm1862_vm8, %v2095_v13 }
 0x18c PF: > { %s13_s12 = sadd.s32 1, %s2378_s12  }
 0x18d   : > { %p10_p4 = scmp.ge.s32.totalorder %s13_s12, 6  }
 0x18f   :  { %12 = sbr.rel (!%p10_p4) target bundleno = 1 (0x1), region = 70 }

// kernel: unet_up_block.7
= control target key start
LH: loop header
LB: loop body
LE: loop exit
PB: predicated region body
PF: predicated region fallthrough
CT: control target
= control target key end

     0   :  { %s2303_s12 = smov 0   ;;  %s3110_s0 = inlined_call_operand.vmem [shape: bf16[4,10,18,8], index: 0, kind: input, shape index: {}]   ;;  %s3111_s1 = inlined_call_operand.vmem [shape: bf16[9,8,8], index: 1, kind: input, shape index: {}]   ;;  %s3112_s2 = inlined_call_operand.vmem [shape: f32[1,8], index: 2, kind: input, shape index: {}]   ;;  %s3113_s3 = inlined_call_operand.vmem [shape: f32[4,128,8], index: 3, kind: output, shape index: {}]  }
   0x1 LB: > { %s1869_s13 = sadd.s32 4294967295, %s2281_s12   ;;  %p1873_p0 = scmp.ge.s32.totalorder %s2281_s12, 1  ;;  %s2281_s12 = sphi %s2303_s12, %s13_s12  }
   0x2   : > { %p137_p1 = scmp.lt.s32.totalorder %s2281_s12, 5 }
   0x4   : > { %p138_p2 = pnand %p1873_p0, %p137_p1 }
   0x6   : > { %141 = sbr.rel (%p138_p2) target bundleno = 394 (0x18a), region = 32 }
   0xb   : > { %v1877_v0 = vld [vmem:[%s3111_s1 + $0x4] sm:$0xf]  ;;  %vm449_vm0 = vcmask 1043456   ;;  %p161_p3 = scmp.lt.s32.totalorder %s1869_s13, 3  ;;  %v202_v2 = vld [vmem:[%s3111_s1] sm:$0xf] }
   0xc   : > { %2247 = vmatprep.subr.msk.bf16.mxu1 %vm449_vm0, %v1877_v0  ;;  %2246 = vmatprep.subr.msk.bf16.mxu0 %vm449_vm0, %v1877_v0  ;;  %v451_v1 = vsel %vm449_vm0, %v1877_v0, 0  ;;  %v1918_v3 = vld [vmem:[%s3111_s1 + $0x8] sm:$0xf]  ;;  %vm203_vm1 = vsmask.f32 3328  ;;  %vm424_vm3 = vcmask 64512  }
   0xd   : > { %2245 = vmatpush3.bf16.msra.mxu1 %v451_v1  ;;  %2083 = vmatpush3.bf16.msra.mxu0 %v451_v1  ;;  %s3165_s13 = smov (!%p161_p3, %s1869_s13), 3  ;;  %vm204_vm2 = vsmask.f32 7440  ;;  %v2357_v15 = vsel %vm449_vm0, %v202_v2, 0  ;;  %v2377_v34 = vsel %vm449_vm0, %v1918_v3, 0  ;;  %vm722_vm5 = vcmask 1042432  }
   0xe   : > { %2248 = vmatprep.subr.msk.bf16.mxu1 %vm449_vm0, %v202_v2  ;;  %2249 = vmatprep.subr.msk.bf16.mxu0 %vm449_vm0, %v1918_v3  ;;  %s2256_s20 = smul.u32 120, %s3165_s13  ;;  %vm2372_vm4 = vmor %vm203_vm1, %vm204_vm2  ;;  %vm723_vm6 = vcmask 1046532   ;;  %s2000_s11 = sshll.u32 %s3165_s13, 7 }
   0xf   : > { %vm2520_vm7 = vmor %vm722_vm5, %vm723_vm6  ;;  %s3018_s15 = scalar_lea.vmem %s3113_s3, %s2000_s11 }
  0x10   : > { %s2331_s23 = scalar_lea.vmem %s3110_s0, %s2256_s20 }
  0x11   : > { %v2334_v4 = vld [vmem:[%s2331_s23] sm:$0xf]  ;;  %v2337_v5 = vld [vmem:[%s2331_s23 + $0x4] sm:$0xf]  ;;  %v2340_v6 = vld [vmem:[%s2331_s23 + $0x8] sm:$0x1] }
  0x12   : > { %v207_v7 = vshrl.u32 %v2334_v4, 16  ;;  %v210_v8 = vshll.u32 %v2334_v4, 16  ;;  %v216_v9 = vshll.u32 %v2337_v5, 16  ;;  %v220_v10 = vshrl.u32 %v2337_v5, 16  ;;  %v2347_v11 = vld [vmem:[%s2331_s23 + $0x30] sm:$0xf] }
  0x13   : > { %v226_v12 = vshll.u32 %v2340_v6, 16  ;;  %v2351_v13 = vld [vmem:[%s2331_s23 + $0x34] sm:$0xf]  ;;  %v2354_v14 = vld [vmem:[%s2331_s23 + $0x38] sm:$0x1]  ;;  %v303_v21 = vshrl.u32 %v2347_v11, 16 }
  0x14   : > { %v209_v16 = vrot.slane %v207_v7, 4  ;;  %v212_v17 = vrot.slane %v210_v8, 5  ;;  %v218_v18 = vrot.slane %v216_v9, 5  ;;  %v222_v19 = vrot.slane %v220_v10, 4  ;;  %v2365_v28 = vld [vmem:[%s2331_s23 + $0xc] sm:$0xf] }
  0x15   : > { %v228_v20 = vrot.slane %v226_v12, 5  ;;  %v306_v22 = vshll.u32 %v2347_v11, 16  ;;  %v312_v23 = vshll.u32 %v2351_v13, 16  ;;  %v316_v26 = vshrl.u32 %v2351_v13, 16  ;;  %v2368_v29 = vld [vmem:[%s2331_s23 + $0x10] sm:$0xf] }
  0x16   : > { %v213_v24 = vor.u32 %v212_v17, %v209_v16  ;;  %v223_v25 = vor.u32 %v222_v19, %v218_v18  ;;  %v322_v27 = vshll.u32 %v2354_v14, 16  ;;  %v305_v31 = vrot.slane %v303_v21, 4  ;;  %v2380_v40 = vld [vmem:[%s2331_s23 + $0x14] sm:$0x1]  ;;  %v2391_v52 = vld [vmem:[%s2331_s23 + $0x3c] sm:$0xf] }
  0x17   : > { %v308_v32 = vrot.slane %v306_v22, 5  ;;  %v314_v33 = vrot.slane %v312_v23, 5  ;;  %v318_v37 = vrot.slane %v316_v26, 4  ;;  %v231_v41 = vshrl.u32 %v2365_v28, 16  ;;  %v2395_v57 = vld [vmem:[%s2331_s23 + $0x40] sm:$0xf] }
  0x18   : > { %v214_v35 = vrot.slane %v213_v24, 4  ;;  %v224_v36 = vrot.slane %v223_v25, 4  ;;  %v324_v38 = vrot.slane %v322_v27, 5  ;;  %v234_v42 = vshll.u32 %v2365_v28, 16  ;;  %v2403_v62 = vld [vmem:[%s2331_s23 + $0x44] sm:$0x1] }
  0x19   : > { %v309_v39 = vor.u32 %v308_v32, %v305_v31  ;;  %v240_v43 = vshll.u32 %v2368_v29, 16  ;;  %v319_v46 = vor.u32 %v318_v37, %v314_v33  ;;  %v244_v47 = vshrl.u32 %v2368_v29, 16  ;;  %v2409_v3 = vld [vmem:[%s2331_s23 + $0x18] sm:$0xf]  ;;  %v2418_v19 = vld [vmem:[%s2331_s23 + $0x1c] sm:$0xf] }
  0x1a   : > { %v219_v44 = vsel %vm2372_vm4, %v214_v35, %v218_v18  ;;  %v229_v45 = vsel %vm2372_vm4, %v224_v36, %v228_v20  ;;  %v233_v50 = vrot.slane %v231_v41, 4  ;;  %v236_v51 = vrot.slane %v234_v42, 5  ;;  %v2425_v23 = vld [vmem:[%s2331_s23 + $0x20] sm:$0x1]  ;;  %v2432_v32 = vld [vmem:[%s2331_s23 + $0x48] sm:$0xf] }
  0x1b   : > { %v1878_v48 = vcombine.low %v219_v44, %v229_v45  ;;  %v310_v49 = vrot.slane %v309_v39, 4  ;;  %v320_v53 = vrot.slane %v319_v46, 4  ;;  %v242_v54 = vrot.slane %v240_v43, 5  ;;  %v2445_v44 = vld [vmem:[%s2331_s23 + $0x4c] sm:$0xf] }
  0x1c   : > { %v246_v55 = vrot.slane %v244_v47, 4  ;;  %v250_v56 = vshll.u32 %v2380_v40, 16  ;;  %v730_v58 = vrot.slane %v2340_v6, 5  ;;  %v237_v60 = vor.u32 %v236_v51, %v233_v50 }
  0x1d   : > { %2084 = vmatprep.mubr.msk.bf16.mxu0 %vm424_vm3, %v1878_v48  ;;  %v315_v59 = vsel %vm2372_vm4, %v310_v49, %v314_v33  ;;  %v734_v61 = vrot.slane %v2368_v29, 5  ;;  %v325_v63 = vsel %vm2372_vm4, %v320_v53, %v324_v38  ;;  %v327_v2 = vshrl.u32 %v2391_v52, 16  ;;  %v2440_v38 = vld [vmem:[%s3111_s1 + $0x10] sm:$0xf] }
  0x1e   : > { %v247_v0 = vor.u32 %v246_v55, %v242_v54  ;;  %v252_v1 = vrot.slane %v250_v56, 5  ;;  %v2411_v7 = vcombine.low %v315_v59, %v325_v63  ;;  %v238_v8 = vrot.slane %v237_v60, 4  ;;  %v2459_v63 = vld [vmem:[%s2331_s23 + $0x24] sm:$0xf] }
  0x1f   : > { %v330_v9 = vshll.u32 %v2391_v52, 16  ;;  %v336_v10 = vshll.u32 %v2395_v57, 16  ;;  %v329_v16 = vrot.slane %v327_v2, 4  ;;  %v340_v17 = vshrl.u32 %v2395_v57, 16 }
  0x20   : > { %v248_v12 = vrot.slane %v247_v0, 4  ;;  %v346_v18 = vshll.u32 %v2403_v62, 16  ;;  %2092 = vmatprep.mubr.msk.bf16.mxu1 %vm424_vm3, %v2411_v7  ;;  %v243_v20 = vsel %vm2372_vm4, %v238_v8, %v242_v54  ;;  %v255_v24 = vshrl.u32 %v2409_v3, 16  ;;  %v2453_v54 = vld [vmem:[%s2331_s23 + $0x50] sm:$0x1] }
  0x21   : > { %v332_v21 = vrot.slane %v330_v9, 5  ;;  %v338_v22 = vrot.slane %v336_v10, 5  ;;  %v342_v26 = vrot.slane %v340_v17, 4  ;;  %v258_v31 = vshll.u32 %v2409_v3, 16  ;;  %v2467_v8 = vld [vmem:[%s2331_s23 + $0x28] sm:$0xf] }
  0x22   : > { %v253_v25 = vsel %vm2372_vm4, %v248_v12, %v252_v1  ;;  %v348_v27 = vrot.slane %v346_v18, 5  ;;  %v257_v36 = vrot.slane %v255_v24, 4  ;;  %v264_v37 = vshll.u32 %v2418_v19, 16  ;;  %v2475_v17 = vld [vmem:[%s3111_s1 + $0xc] sm:$0xf] }
  0x23   : > { %v2434_v33 = vcombine.low %v243_v20, %v253_v25  ;;  %v333_v35 = vor.u32 %v332_v21, %v329_v16  ;;  %v343_v39 = vor.u32 %v342_v26, %v338_v22  ;;  %v260_v41 = vrot.slane %v258_v31, 5 }
  0x24   : > { %v268_v42 = vshrl.u32 %v2418_v19, 16  ;;  %v274_v43 = vshll.u32 %v2425_v23, 16  ;;  %v266_v46 = vrot.slane %v264_v37, 5  ;;  %v351_v47 = vshrl.u32 %v2432_v32, 16 }
  0x25   : > { %2085 = vmatmul.mubr.msk.bf16.vlgmr.msra.gmra.mxu0 %vm424_vm3, %v2434_v33  ;;  %v334_v45 = vrot.slane %v333_v35, 4  ;;  %v354_v48 = vshll.u32 %v2432_v32, 16  ;;  %v344_v49 = vrot.slane %v343_v39, 4  ;;  %v261_v50 = vor.u32 %v260_v41, %v257_v36  ;;  %v2488_v35 = vld [vmem:[%s2331_s23 + $0x54] sm:$0xf] }
  0x26   : > { %2119 = vmatpush3.bf16.msra.mxu0 %v2377_v34  ;;  %v270_v51 = vrot.slane %v268_v42, 4  ;;  %v276_v53 = vrot.slane %v274_v43, 5  ;;  %v353_v56 = vrot.slane %v351_v47, 4  ;;  %v360_v60 = vshll.u32 %v2445_v44, 16  ;;  %v2495_v42 = vld [vmem:[%s2331_s23 + $0x58] sm:$0xf] }
  0x27   : > { %v339_v55 = vsel %vm2372_vm4, %v334_v45, %v338_v22  ;;  %v356_v59 = vrot.slane %v354_v48, 5  ;;  %2251 = vmatprep.subr.msk.bf16.mxu0 %vm449_vm0, %v2440_v38  ;;  %v349_v34 = vsel %vm2372_vm4, %v344_v49, %v348_v27  ;;  %v262_v0 = vrot.slane %v261_v50, 4  ;;  %v2480_v22 = vld [vmem:[%s2331_s23 + $0x2c] sm:$0x1] }
  0x28   : > { %v271_v1 = vor.u32 %v270_v51, %v266_v46  ;;  %v364_v2 = vshrl.u32 %v2445_v44, 16  ;;  %v2469_v9 = vcombine.low %v339_v55, %v349_v34  ;;  %v362_v12 = vrot.slane %v360_v60, 5 }
  0x29   : > { %v357_v10 = vor.u32 %v356_v59, %v353_v56  ;;  %v370_v16 = vshll.u32 %v2453_v54, 16  ;;  %v267_v18 = vsel %vm2372_vm4, %v262_v0, %v266_v46  ;;  %v279_v24 = vshrl.u32 %v2459_v63, 16 }
  0x2a   : > { %v272_v20 = vrot.slane %v271_v1, 4  ;;  %v366_v21 = vrot.slane %v364_v2, 4  ;;  %2093 = vmatmul.mubr.msk.bf16.vlgmr.msra.gmra.mxu1 %vm424_vm3, %v2469_v9  ;;  %v282_v27 = vshll.u32 %v2459_v63, 16  ;;  %v288_v31 = vshll.u32 %v2467_v8, 16 }
  0x2b   : > { %v358_v25 = vrot.slane %v357_v10, 4  ;;  %v372_v26 = vrot.slane %v370_v16, 5  ;;  %2101 = vmatpush3.bf16.msra.mxu1 %v2357_v15  ;;  %v281_v39 = vrot.slane %v279_v24, 4  ;;  %v292_v41 = vshrl.u32 %v2467_v8, 16  ;;  %v1987_v24 = vld [vmem:[%s3111_s1 + $0x20] sm:$0xf] }
  0x2c   : > { %v277_v36 = vsel %vm2372_vm4, %v272_v20, %v276_v53  ;;  %v367_v37 = vor.u32 %v366_v21, %v362_v12  ;;  %v284_v46 = vrot.slane %v282_v27, 5  ;;  %v290_v47 = vrot.slane %v288_v31, 5  ;;  %2250 = vmatprep.subr.msk.bf16.mxu1 %vm449_vm0, %v2475_v17  ;;  %v2508_v53 = vld [vmem:[%s2331_s23 + $0x5c] sm:$0x1] }
  0x2d   : > { %v2497_v43 = vcombine.low %v267_v18, %v277_v36  ;;  %v363_v45 = vsel %vm2372_vm4, %v358_v25, %v362_v12  ;;  %v294_v48 = vrot.slane %v292_v41, 4  ;;  %v298_v49 = vshll.u32 %v2480_v22, 16 }
  0x2e   : > { %v368_v15 = vrot.slane %v367_v37, 4  ;;  %v375_v50 = vshrl.u32 %v2488_v35, 16  ;;  %v285_v51 = vor.u32 %v284_v46, %v281_v39  ;;  %v378_v55 = vshll.u32 %v2488_v35, 16 }
  0x2f   : > { %2088 = vmatprep.mubr.msk.bf16.mxu0 %vm424_vm3, %v2497_v43  ;;  %v384_v56 = vshll.u32 %v2495_v42, 16  ;;  %v388_v59 = vshrl.u32 %v2495_v42, 16  ;;  %v295_v34 = vor.u32 %v294_v48, %v290_v47  ;;  %v300_v0 = vrot.slane %v298_v49, 5 }
  0x30   : > { %v373_v60 = vsel %vm2372_vm4, %v368_v15, %v372_v26  ;;  %v377_v1 = vrot.slane %v375_v50, 4  ;;  %v286_v10 = vrot.slane %v285_v51, 4  ;;  %v380_v12 = vrot.slane %v378_v55, 5 }
  0x31   : > { %v2515_v2 = vcombine.low %v363_v45, %v373_v60  ;;  %v386_v16 = vrot.slane %v384_v56, 5  ;;  %v296_v18 = vrot.slane %v295_v34, 4  ;;  %v390_v20 = vrot.slane %v388_v59, 4 }
  0x32   : > { %v394_v21 = vshll.u32 %v2508_v53, 16  ;;  %v1910_v25 = vrot.slane %v2334_v4, 9  ;;  %v737_v26 = vrot.slane %v2380_v40, 5  ;;  %v291_v27 = vsel %vm2372_vm4, %v286_v10, %v290_v47 }
  0x33   : > { %2096 = vmatprep.mubr.msk.bf16.mxu1 %vm424_vm3, %v2515_v2  ;;  %v381_v31 = vor.u32 %v380_v12, %v377_v1  ;;  %v727_v36 = vrot.slane %v2337_v5, 5  ;;  %v301_v37 = vsel %vm2372_vm4, %v296_v18, %v300_v0  ;;  %v391_v39 = vor.u32 %v390_v20, %v386_v16 }
  0x34   : > { %v396_v41 = vrot.slane %v394_v21, 5  ;;  %v1911_v45 = vrot.slane %v2365_v28, 9  ;;  %v2534_v46 = vcombine.low %v291_v27, %v301_v37  ;;  %v1894_v47 = vcombine.low %v2334_v4, %v2337_v5 }
  0x35   : > { %v382_v15 = vrot.slane %v381_v31, 4  ;;  %v728_v40 = vsel %vm2520_vm7, %v1910_v25, %v727_v36  ;;  %v729_v48 = vrot.slane %v727_v36, 4  ;;  %v392_v49 = vrot.slane %v391_v39, 4 }
  0x36   : > { %v735_v50 = vsel %vm2520_vm7, %v1911_v45, %v734_v61  ;;  %v736_v51 = vrot.slane %v734_v61, 4  ;;  %2089 = vmatmul.mubr.msk.bf16.gmra.mxu0 %vm424_vm3, %v2534_v46  ;;  %v1912_v4 = vrot.slane %v2409_v3, 9  ;;  %v741_v5 = vrot.slane %v2418_v19, 5 }
  0x37   : > { %v387_v55 = vsel %vm2372_vm4, %v382_v15, %v386_v16  ;;  %v731_v56 = vsel %vm2520_vm7, %v729_v48, %v730_v58  ;;  %v397_v59 = vsel %vm2372_vm4, %v392_v49, %v396_v41  ;;  %v744_v34 = vrot.slane %v2425_v23, 5 }
  0x38   : > { %v1919_v60 = vcombine.low %v728_v40, %v731_v56  ;;  %v738_v61 = vsel %vm2520_vm7, %v736_v51, %v737_v26  ;;  %v2561_v0 = vcombine.low %v387_v55, %v397_v59  ;;  %v742_v6 = vsel %vm2520_vm7, %v1912_v4, %v741_v5 }
  0x39   : > { %v743_v1 = vrot.slane %v741_v5, 4  ;;  %v758_v58 = vrot.slane %v2354_v14, 5  ;;  %v1913_v10 = vrot.slane %v2459_v63, 9  ;;  %v748_v12 = vrot.slane %v2467_v8, 5 }
  0x3a   : > { %2120 = vmatprep.mubr.msk.bf16.mxu0 %vm424_vm3, %v1919_v60  ;;  %v751_v16 = vrot.slane %v2480_v22, 5  ;;  %2097 = vmatmul.mubr.msk.bf16.gmra.mxu1 %vm424_vm3, %v2561_v0  ;;  %v2572_v23 = vcombine.low %v735_v50, %v738_v61  ;;  %v1914_v20 = vrot.slane %v2347_v11, 9  ;;  %v755_v14 = vrot.slane %v2351_v13, 5 }
  0x3b   : > { %v745_v18 = vsel %vm2520_vm7, %v743_v1, %v744_v34  ;;  %2102 = vmatprep.mubr.msk.bf16.mxu1 %vm424_vm3, %v1894_v47  ;;  %v750_v25 = vrot.slane %v748_v12, 4  ;;  %v2583_v22 = vcombine.low %v2365_v28, %v2368_v29  ;;  %v1106_v26 = vsel %vm449_vm0, %v2440_v38, 0  ;;  %v2598_v28 = vld [vmem:[%s3111_s1 + $0x18] sm:$0xf]  ;;  %v2615_v47 = vld [vmem:[%s2331_s23 + $0x60] sm:$0xf] }
  0x3c   : > { %v2579_v21 = vcombine.low %v742_v6, %v745_v18  ;;  %v757_v27 = vrot.slane %v755_v14, 4  ;;  %v762_v31 = vrot.slane %v2395_v57, 5  ;;  %v749_v36 = vsel %vm2520_vm7, %v1913_v10, %v748_v12 }
  0x3d   : > { %v752_v37 = vsel %vm2520_vm7, %v750_v25, %v751_v16  ;;  %v756_v39 = vsel %vm2520_vm7, %v1914_v20, %v755_v14  ;;  %v1915_v41 = vrot.slane %v2391_v52, 9  ;;  %v765_v45 = vrot.slane %v2403_v62, 5 }
  0x3e   : > { %2121 = vmatmul.mubr.msk.bf16.vlgmr.msra.gmra.mxu0 %vm424_vm3, %v2572_v23  ;;  %v759_v29 = vsel %vm2520_vm7, %v757_v27, %v758_v58  ;;  %v764_v38 = vrot.slane %v762_v31, 4  ;;  %v1916_v15 = vrot.slane %v2432_v32, 9  ;;  %v2608_v40 = vcombine.low %v2409_v3, %v2418_v19  ;;  %v2632_v19 = vld [vmem:[%s2331_s23 + $0x64] sm:$0xf]  ;;  %v2674_v27 = vld [vmem:[%s2331_s23 + $0x6c] sm:$0xf] }
  0x3f   : > { %2155 = vmatpush3.bf16.msra.mxu0 %v1106_v26  ;;  %2124 = vmatprep.mubr.msk.bf16.mxu0 %vm424_vm3, %v2579_v21  ;;  %v769_v48 = vrot.slane %v2445_v44, 5  ;;  %v772_v49 = vrot.slane %v2453_v54, 5  ;;  %v958_v50 = vsel %vm449_vm0, %v2475_v17, 0  ;;  %v2621_v62 = vcombine.low %v2459_v63, %v2467_v8  ;;  %v198_v54 = vld [vmem:[%s2331_s23 + $0x68] sm:$0x1] }
  0x40   : > { %v2623_v51 = vcombine.low %v749_v36, %v752_v37  ;;  %v2627_v3 = vcombine.low %v2347_v11, %v2351_v13  ;;  %2253 = vmatprep.subr.msk.bf16.mxu0 %vm449_vm0, %v2598_v28  ;;  %v2635_v55 = vcombine.low %v756_v39, %v759_v29  ;;  %v763_v17 = vsel %vm2520_vm7, %v1915_v41, %v762_v31  ;;  %v2643_v8 = vld [vmem:[%s3111_s1 + $0x14] sm:$0xf] }
  0x41   : > { %v771_v56 = vrot.slane %v769_v48, 4  ;;  %v776_v63 = vrot.slane %v2495_v42, 5  ;;  %v766_v11 = vsel %vm2520_vm7, %v764_v38, %v765_v45  ;;  %v770_v13 = vsel %vm2520_vm7, %v1916_v15, %v769_v48  ;;  %v201_v41 = vld [vmem:[%s2331_s23 + $0x74] sm:$0x1]  ;;  %v2683_v15 = vld [vmem:[%s2331_s23 + $0x70] sm:$0xf] }
  0x42   : > { %2103 = vmatmul.mubr.msk.bf16.vlgmr.msra.gmra.mxu1 %vm424_vm3, %v2583_v22  ;;  %v1074_v4 = vshrl.u32 %v2615_v47, 16  ;;  %v1077_v5 = vshll.u32 %v2615_v47, 16  ;;  %v1087_v60 = vshrl.u32 %v2632_v19, 16  ;;  %v1083_v61 = vshll.u32 %v2632_v19, 16 }
  0x43   : > { %2137 = vmatpush3.bf16.msra.mxu1 %v958_v50  ;;  %2106 = vmatprep.mubr.msk.bf16.mxu1 %vm424_vm3, %v2608_v40  ;;  %v773_v59 = vsel %vm2520_vm7, %v771_v56, %v772_v49  ;;  %v1093_v34 = vshll.u32 %v198_v54, 16  ;;  %v1917_v6 = vrot.slane %v2488_v35, 9  ;;  %v779_v1 = vrot.slane %v2508_v53, 5 }
  0x44   : > { %2252 = vmatprep.subr.msk.bf16.mxu1 %vm449_vm0, %v2643_v8  ;;  %v1076_v58 = vrot.slane %v1074_v4, 4  ;;  %v1079_v10 = vrot.slane %v1077_v5, 5  ;;  %v2663_v12 = vcombine.low %v763_v17, %v766_v11  ;;  %v778_v16 = vrot.slane %v776_v63, 4 }
  0x45   : > { %v1085_v18 = vrot.slane %v1083_v61, 5  ;;  %v1089_v20 = vrot.slane %v1087_v60, 4  ;;  %v2669_v14 = vcombine.low %v770_v13, %v773_v59  ;;  %v1955_v25 = vrot.slane %v2615_v47, 9 }
  0x46   : > { %2125 = vmatmul.mubr.msk.bf16.gmra.mxu0 %vm424_vm3, %v2623_v51  ;;  %v1080_v53 = vor.u32 %v1079_v10, %v1076_v58  ;;  %v1224_v26 = vrot.slane %v2632_v19, 5  ;;  %v1095_v36 = vrot.slane %v1093_v34, 5  ;;  %v1227_v37 = vrot.slane %v198_v54, 5 }
  0x47   : > { %2128 = vmatprep.mubr.msk.bf16.mxu0 %vm424_vm3, %v2635_v55  ;;  %v1090_v31 = vor.u32 %v1089_v20, %v1085_v18  ;;  %v1480_v39 = vshrl.u32 %v2674_v27, 16  ;;  %v1483_v48 = vshll.u32 %v2674_v27, 16  ;;  %v1493_v50 = vshrl.u32 %v2683_v15, 16 }
  0x48   : > { %v1081_v29 = vrot.slane %v1080_v53, 4  ;;  %v1225_v38 = vsel %vm2520_vm7, %v1955_v25, %v1224_v26  ;;  %v1226_v45 = vrot.slane %v1224_v26, 4  ;;  %v1489_v56 = vshll.u32 %v2683_v15, 16 }
  0x49   : > { %v1091_v49 = vrot.slane %v1090_v31, 4  ;;  %v1482_v17 = vrot.slane %v1480_v39, 4  ;;  %v1485_v13 = vrot.slane %v1483_v48, 5  ;;  %v1499_v4 = vshll.u32 %v201_v41, 16 }
  0x4a   : > { %2107 = vmatmul.mubr.msk.bf16.gmra.mxu1 %vm424_vm3, %v2621_v62  ;;  %v1086_v54 = vsel %vm2372_vm4, %v1081_v29, %v1085_v18  ;;  %v1228_v11 = vsel %vm2520_vm7, %v1226_v45, %v1227_v37  ;;  %v1491_v60 = vrot.slane %v1489_v56, 5  ;;  %v1495_v61 = vrot.slane %v1493_v50, 4 }
  0x4b   : > { %2110 = vmatprep.mubr.msk.bf16.mxu1 %vm424_vm3, %v2627_v3  ;;  %v1096_v5 = vsel %vm2372_vm4, %v1091_v49, %v1095_v36  ;;  %v2698_v59 = vcombine.low %v1225_v38, %v1228_v11  ;;  %v1486_v58 = vor.u32 %v1485_v13, %v1482_v17  ;;  %v1986_v10 = vrot.slane %v2674_v27, 9 }
  0x4c   : > { %v2700_v34 = vcombine.low %v1086_v54, %v1096_v5  ;;  %v1496_v18 = vor.u32 %v1495_v61, %v1491_v60  ;;  %v1501_v20 = vrot.slane %v1499_v4, 5  ;;  %v1630_v53 = vrot.slane %v2683_v15, 5 }
  0x4d   : > { %v1633_v25 = vrot.slane %v201_v41, 5  ;;  %v1899_v26 = vcombine.low %v2391_v52, %v2395_v57  ;;  %v1900_v31 = vcombine.low %v2432_v32, %v2445_v44  ;;  %v777_v36 = vsel %vm2520_vm7, %v1917_v6, %v776_v63 }
  0x4e   : > { %2129 = vmatmul.mubr.msk.bf16.gmra.mxu0 %vm424_vm3, %v2663_v12  ;;  %v1487_v37 = vrot.slane %v1486_v58, 4  ;;  %v780_v39 = vsel %vm2520_vm7, %v778_v16, %v779_v1  ;;  %v1497_v41 = vrot.slane %v1496_v18, 4  ;;  %v2720_v52 = vsel %vm2520_vm7, %v1986_v10, %v1630_v53 }
  0x4f   : > { %2132 = vmatprep.mubr.msk.bf16.mxu0 %vm424_vm3, %v2669_v14  ;;  %v1632_v57 = vrot.slane %v1630_v53, 4  ;;  %v2731_v6 = vcombine.low %v777_v36, %v780_v39  ;;  %v1901_v29 = vcombine.low %v2488_v35, %v2495_v42  ;;  %v1364_v30 = vsel %vm449_vm0, %v2598_v28, 0  ;;  %v1976_v35 = vld [vmem:[%s3111_s1 + $0x1c] sm:$0xf] }
  0x50   : > { %v1492_v32 = vsel %vm2372_vm4, %v1487_v37, %v1491_v60  ;;  %v1502_v44 = vsel %vm2372_vm4, %v1497_v41, %v1501_v20  ;;  %v1936_v42 = vcombine.low %v2615_v47, %v2632_v19  ;;  %v1512_v28 = vsel %vm449_vm0, %v1976_v35, 0 }
  0x51   : > { %v2728_v63 = vsel %vm2520_vm7, %v1632_v57, %v1633_v25  ;;  %v2733_v1 = vcombine.low %v1492_v32, %v1502_v44 }
  0x52   : > { %2111 = vmatmul.mubr.msk.bf16.gmra.mxu1 %vm424_vm3, %v1899_v26  ;;  %v1988_v16 = vcombine.low %v2720_v52, %v2728_v63 }
  0x53   : > { %2114 = vmatprep.mubr.msk.bf16.mxu1 %vm424_vm3, %v1900_v31 }
  0x56   : > { %2133 = vmatmul.mubr.msk.bf16.gmra.mxu0 %vm424_vm3, %v2731_v6 }
  0x57   : > { %2156 = vmatprep.mubr.msk.bf16.mxu0 %vm424_vm3, %v2434_v33  ;;  %v1238_v33 = vsel %vm449_vm0, %v2643_v8, 0 }
  0x5a   : > { %2115 = vmatmul.mubr.msk.bf16.gmra.mxu1 %vm424_vm3, %v1901_v29 }
  0x5b   : > { %2138 = vmatprep.mubr.msk.bf16.mxu1 %vm424_vm3, %v2583_v22  ;;  %v1644_v22 = vsel %vm449_vm0, %v1987_v24, 0 }
  0x5e   : > { %2157 = vmatmul.mubr.msk.bf16.vlgmr.msra.gmra.mxu0 %vm424_vm3, %v2497_v43 }
  0x5f   : > { %2191 = vmatpush3.bf16.msra.mxu0 %v1364_v30  ;;  %2160 = vmatprep.mubr.msk.bf16.mxu0 %vm424_vm3, %v2534_v46 }
  0x60   : > { %2255 = vmatprep.subr.msk.bf16.mxu0 %vm449_vm0, %v1987_v24 }
  0x62   : > { %2139 = vmatmul.mubr.msk.bf16.vlgmr.msra.gmra.mxu1 %vm424_vm3, %v2608_v40 }
  0x63   : > { %2173 = vmatpush3.bf16.msra.mxu1 %v1238_v33  ;;  %2142 = vmatprep.mubr.msk.bf16.mxu1 %vm424_vm3, %v2621_v62 }
  0x64   : > { %2254 = vmatprep.subr.msk.bf16.mxu1 %vm449_vm0, %v1976_v35 }
  0x66   : > { %2161 = vmatmul.mubr.msk.bf16.gmra.mxu0 %vm424_vm3, %v2411_v7 }
  0x67   : > { %2164 = vmatprep.mubr.msk.bf16.mxu0 %vm424_vm3, %v2469_v9 }
  0x6a   : > { %2143 = vmatmul.mubr.msk.bf16.gmra.mxu1 %vm424_vm3, %v2627_v3 }
  0x6b   : > { %2146 = vmatprep.mubr.msk.bf16.mxu1 %vm424_vm3, %v1899_v26 }
  0x6e   : > { %2165 = vmatmul.mubr.msk.bf16.gmra.mxu0 %vm424_vm3, %v2515_v2 }
  0x6f   : > { %2168 = vmatprep.mubr.msk.bf16.mxu0 %vm424_vm3, %v2561_v0 }
  0x72   : > { %2147 = vmatmul.mubr.msk.bf16.gmra.mxu1 %vm424_vm3, %v1900_v31 }
  0x73   : > { %2150 = vmatprep.mubr.msk.bf16.mxu1 %vm424_vm3, %v1901_v29 }
  0x76   : > { %2169 = vmatmul.mubr.msk.bf16.gmra.mxu0 %vm424_vm3, %v2700_v34 }
  0x77   : > { %2192 = vmatprep.mubr.msk.bf16.mxu0 %vm424_vm3, %v2608_v40 }
  0x7a   : > { %2151 = vmatmul.mubr.msk.bf16.gmra.mxu1 %vm424_vm3, %v1936_v42 }
  0x7b   : > { %2174 = vmatprep.mubr.msk.bf16.mxu1 %vm424_vm3, %v2572_v23  ;;  %v1967_v23 = vcombine.low %v2674_v27, %v2683_v15 }
  0x7e   : > { %2193 = vmatmul.mubr.msk.bf16.vlgmr.msra.gmra.mxu0 %vm424_vm3, %v2621_v62 }
  0x7f   : > { %2227 = vmatpush3.bf16.msra.mxu0 %v1644_v22  ;;  %2196 = vmatprep.mubr.msk.bf16.mxu0 %vm424_vm3, %v2627_v3 }
  0x82   : > { %2175 = vmatmul.mubr.msk.bf16.vlgmr.msra.gmra.mxu1 %vm424_vm3, %v2579_v21 }
  0x83   : > { %2209 = vmatpush3.bf16.msra.mxu1 %v1512_v28  ;;  %2178 = vmatprep.mubr.msk.bf16.mxu1 %vm424_vm3, %v2623_v51 }
  0x86   : > { %2197 = vmatmul.mubr.msk.bf16.gmra.mxu0 %vm424_vm3, %v1899_v26 }
  0x87   : > { %2200 = vmatprep.mubr.msk.bf16.mxu0 %vm424_vm3, %v1900_v31 }
  0x8a   : > { %2179 = vmatmul.mubr.msk.bf16.gmra.mxu1 %vm424_vm3, %v2635_v55 }
  0x8b   : > { %2182 = vmatprep.mubr.msk.bf16.mxu1 %vm424_vm3, %v2663_v12 }
  0x8e   : > { %2201 = vmatmul.mubr.msk.bf16.gmra.mxu0 %vm424_vm3, %v1901_v29 }
  0x8f   : > { %2204 = vmatprep.mubr.msk.bf16.mxu0 %vm424_vm3, %v1936_v42 }
  0x92   : > { %2183 = vmatmul.mubr.msk.bf16.gmra.mxu1 %vm424_vm3, %v2669_v14 }
  0x93   : > { %2186 = vmatprep.mubr.msk.bf16.mxu1 %vm424_vm3, %v2731_v6 }
  0x96   : > { %2205 = vmatmul.mubr.msk.bf16.gmra.mxu0 %vm424_vm3, %v1967_v23 }
  0x97   : > { %2228 = vmatprep.mubr.msk.bf16.mxu0 %vm424_vm3, %v2579_v21 }
  0x9a   : > { %2187 = vmatmul.mubr.msk.bf16.gmra.mxu1 %vm424_vm3, %v2698_v59 }
  0x9b   : > { %2210 = vmatprep.mubr.msk.bf16.mxu1 %vm424_vm3, %v2497_v43 }
  0x9e   : > { %2229 = vmatmul.mubr.msk.bf16.vlgmr.msra.gmra.mxu0 %vm424_vm3, %v2623_v51 }
  0x9f   : > { %2232 = vmatprep.mubr.msk.bf16.mxu0 %vm424_vm3, %v2635_v55 }
  0xa2   : > { %2211 = vmatmul.mubr.msk.bf16.vlgmr.msra.gmra.mxu1 %vm424_vm3, %v2534_v46 }
  0xa3   : > { %2214 = vmatprep.mubr.msk.bf16.mxu1 %vm424_vm3, %v2411_v7 }
  0xa6   : > { %2233 = vmatmul.mubr.msk.bf16.gmra.mxu0 %vm424_vm3, %v2663_v12 }
  0xa7   : > { %2236 = vmatprep.mubr.msk.bf16.mxu0 %vm424_vm3, %v2669_v14 }
  0xaa   : > { %2215 = vmatmul.mubr.msk.bf16.gmra.mxu1 %vm424_vm3, %v2469_v9 }
  0xab   : > { %2218 = vmatprep.mubr.msk.bf16.mxu1 %vm424_vm3, %v2515_v2 }
  0xae   : > { %2237 = vmatmul.mubr.msk.bf16.gmra.mxu0 %vm424_vm3, %v2731_v6 }
  0xaf   : > { %2240 = vmatprep.mubr.msk.bf16.mxu0 %vm424_vm3, %v2698_v59 }
  0xb2   : > { %2219 = vmatmul.mubr.msk.bf16.gmra.mxu1 %vm424_vm3, %v2561_v0 }
  0xb3   : > { %2222 = vmatprep.mubr.msk.bf16.mxu1 %vm424_vm3, %v2700_v34 }
  0xb6   : > { %2241 = vmatmul.mubr.msk.bf16.gmra.mxu0 %vm424_vm3, %v1988_v16 }
  0xba   : > { %2223 = vmatmul.mubr.msk.bf16.gmra.mxu1 %vm424_vm3, %v2733_v1 }
  0xe5   : > { %v2086_v7 = vpop.f32.mrf.mxu0 }
  0xe7   : > { %v487_v43 = vpop.f32.mrf.mxu0 }
  0xe9   : > { %v2087_v46 = vpop.f32.mrf.mxu0 }
  0xea   : > { %v2094_v9 = vpop.f32.mrf.mxu1 }
  0xeb   : > { %v490_v40 = vpop.f32.mrf.mxu0 }
  0xec   : > { %v519_v2 = vpop.f32.mrf.mxu1 }
  0xee   : > { %v2095_v21 = vpop.f32.mrf.mxu1 }
  0xf0   : > { %v522_v47 = vpop.f32.mrf.mxu1 }
  0xf6   : > { %v2090_v0 = vpop.f32.mrf.mxu0 }
  0xf8   : > { %v503_v62 = vpop.f32.mrf.mxu0 }
  0xfa   : > { %v2098_v51 = vpop.f32.mrf.mxu1  ;;  %v2091_v3 = vpop.f32.mrf.mxu0 }
  0xfc   : > { %v535_v19 = vpop.f32.mrf.mxu1  ;;  %v506_v55 = vpop.f32.mrf.mxu0 }
  0xfe   : > { %v2099_v8 = vpop.f32.mrf.mxu1  ;;  %v2122_v12 = vpop.f32.mrf.mxu0 }
 0x100   : > { %v2850_v14 = vpop.f32.mrf.mxu1  ;;  %v868_v27 = vpop.f32.mrf.mxu0 }
 0x102   : > { %v2104_v38 = vpop.f32.mrf.mxu1  ;;  %v2123_v45 = vpop.f32.mrf.mxu0 }
 0x103   : > { %v660_v15 = vadd.f32 %v2104_v38, %v2086_v7 }
 0x104   : > { %v651_v48 = vpop.f32.mrf.mxu1  ;;  %v871_v49 = vpop.f32.mrf.mxu0 }
 0x105   : > { %v2852_v50 = vadd.f32 %v2122_v12, %v660_v15  ;;  %v652_v17 = vadd.f32 %v651_v48, %v487_v43 }
 0x106   : > { %v2105_v56 = vpop.f32.mrf.mxu1  ;;  %v2126_v54 = vpop.f32.mrf.mxu0 }
 0x107   : > { %v2854_v11 = vadd.f32 %v868_v27, %v652_v17  ;;  %v663_v13 = vadd.f32 %v2105_v56, %v2087_v46 }
 0x108   : > { %v654_v4 = vpop.f32.mrf.mxu1  ;;  %v884_v5 = vpop.f32.mrf.mxu0 }
 0x109   : > { %v2856_v59 = vadd.f32 %v2123_v45, %v663_v13  ;;  %v655_v60 = vadd.f32 %v654_v4, %v490_v40 }
 0x10a   : > { %v2108_v61 = vpop.f32.mrf.mxu1  ;;  %v2127_v34 = vpop.f32.mrf.mxu0 }
 0x10b   : > { %v2858_v58 = vadd.f32 %v871_v49, %v655_v60  ;;  %v676_v10 = vadd.f32 %v2108_v61, %v2090_v0 }
 0x10c   : > { %v667_v18 = vpop.f32.mrf.mxu1  ;;  %v887_v20 = vpop.f32.mrf.mxu0 }
 0x10d   : > { %v2860_v53 = vadd.f32 %v2126_v54, %v676_v10  ;;  %v668_v25 = vadd.f32 %v667_v18, %v503_v62 }
 0x10e   : > { %v2109_v26 = vpop.f32.mrf.mxu1  ;;  %v2130_v31 = vpop.f32.mrf.mxu0 }
 0x10f   : > { %v2862_v36 = vadd.f32 %v884_v5, %v668_v25  ;;  %v679_v37 = vadd.f32 %v2109_v26, %v2091_v3 }
 0x110   : > { %v670_v39 = vpop.f32.mrf.mxu1  ;;  %v900_v41 = vpop.f32.mrf.mxu0 }
 0x111   : > { %v2864_v52 = vadd.f32 %v2127_v34, %v679_v37  ;;  %v671_v57 = vadd.f32 %v670_v39, %v506_v55 }
 0x112   : > { %v2112_v32 = vpop.f32.mrf.mxu1  ;;  %v2131_v44 = vpop.f32.mrf.mxu0 }
 0x113   : > { %v2866_v63 = vadd.f32 %v887_v20, %v671_v57  ;;  %v692_v6 = vadd.f32 %v2112_v32, %v2094_v9 }
 0x114   : > { %v683_v1 = vpop.f32.mrf.mxu1  ;;  %v903_v16 = vpop.f32.mrf.mxu0 }
 0x115   : > { %v2868_v29 = vadd.f32 %v2130_v31, %v692_v6  ;;  %v684_v30 = vadd.f32 %v683_v1, %v519_v2 }
 0x116   : > { %v2113_v24 = vpop.f32.mrf.mxu1  ;;  %v2134_v33 = vpop.f32.mrf.mxu0 }
 0x117   : > { %v2870_v35 = vadd.f32 %v900_v41, %v684_v30  ;;  %v695_v42 = vadd.f32 %v2113_v24, %v2095_v21 }
 0x118   : > { %v686_v22 = vpop.f32.mrf.mxu1  ;;  %v916_v28 = vpop.f32.mrf.mxu0 }
 0x119   : > { %v2872_v23 = vadd.f32 %v2131_v44, %v695_v42  ;;  %v687_v7 = vadd.f32 %v686_v22, %v522_v47 }
 0x11a   : > { %v2116_v43 = vpop.f32.mrf.mxu1  ;;  %v2135_v46 = vpop.f32.mrf.mxu0 }
 0x11b   : > { %v2874_v40 = vadd.f32 %v903_v16, %v687_v7  ;;  %v708_v9 = vadd.f32 %v2116_v43, %v2098_v51 }
 0x11c   : > { %v699_v0 = vpop.f32.mrf.mxu1  ;;  %v919_v62 = vpop.f32.mrf.mxu0 }
 0x11d   : > { %v2876_v3 = vadd.f32 %v2134_v33, %v708_v9  ;;  %v700_v2 = vadd.f32 %v699_v0, %v535_v19 }
 0x11e   : > { %v2117_v55 = vpop.f32.mrf.mxu1  ;;  %v2878_v12 = vpop.f32.mrf.mxu0 }
 0x11f   : > { %v2880_v27 = vadd.f32 %v916_v28, %v700_v2  ;;  %v711_v21 = vadd.f32 %v2117_v55, %v2099_v8 }
 0x120   : > { %v702_v38 = vpop.f32.mrf.mxu1  ;;  %v2882_v45 = vpop.f32.mrf.mxu0 }
 0x121   : > { %3118 = vst [vmem:[#allocation2_spill] sm:$0xff] %v2880_v27  ;;  %v2884_v47 = vadd.f32 %v2135_v46, %v711_v21  ;;  %v703_v15 = vadd.f32 %v702_v38, %v2850_v14 }
 0x122   : > { %v2140_v48 = vpop.f32.mrf.mxu1  ;;  %v2887_v51 = vpop.f32.mrf.mxu0 }
 0x123   : > { %3119 = vst [vmem:[#allocation3_spill] sm:$0xff] %v2884_v47  ;;  %v2889_v49 = vadd.f32 %v919_v62, %v703_v15 }
 0x124   : > { %v994_v17 = vpop.f32.mrf.mxu1  ;;  %v2891_v19 = vpop.f32.mrf.mxu0 }
 0x125   : > { %3120 = vst [vmem:[#allocation4_spill] sm:$0xff] %v2889_v49 }
 0x126   : > { %v2141_v56 = vpop.f32.mrf.mxu1  ;;  %v2893_v54 = vpop.f32.mrf.mxu0 }
 0x128   : > { %v997_v13 = vpop.f32.mrf.mxu1  ;;  %v2895_v8 = vpop.f32.mrf.mxu0 }
 0x12a   : > { %v2144_v4 = vpop.f32.mrf.mxu1  ;;  %v2897_v5 = vpop.f32.mrf.mxu0 }
 0x12c   : > { %v1010_v60 = vpop.f32.mrf.mxu1  ;;  %v2899_v61 = vpop.f32.mrf.mxu0 }
 0x12e   : > { %v2901_v14 = vpop.f32.mrf.mxu1  ;;  %v2903_v34 = vpop.f32.mrf.mxu0 }
 0x130   : > { %v2905_v10 = vpop.f32.mrf.mxu1  ;;  %v2907_v18 = vpop.f32.mrf.mxu0 }
 0x132   : > { %v2909_v20 = vpop.f32.mrf.mxu1  ;;  %v2911_v25 = vpop.f32.mrf.mxu0 }
 0x134   : > { %v2913_v26 = vpop.f32.mrf.mxu1  ;;  %v2915_v31 = vpop.f32.mrf.mxu0 }
 0x135   : > { %3121 = vst [vmem:[#allocation5_spill] sm:$0xff] %v2915_v31 }
 0x136   : > { %v2917_v37 = vpop.f32.mrf.mxu1  ;;  %v2919_v39 = vpop.f32.mrf.mxu0 }
 0x137   : > { %3122 = vst [vmem:[#allocation6_spill] sm:$0xff] %v2919_v39 }
 0x138   : > { %v2921_v41 = vpop.f32.mrf.mxu1  ;;  %v2923_v57 = vpop.f32.mrf.mxu0 }
 0x139   : > { %3123 = vst [vmem:[#allocation7_spill] sm:$0xff] %v2923_v57 }
 0x13a   : > { %v2925_v32 = vpop.f32.mrf.mxu1  ;;  %v2927_v44 = vpop.f32.mrf.mxu0 }
 0x13b   : > { %3124 = vst [vmem:[#allocation8_spill] sm:$0xff] %v2927_v44 }
 0x13c   : > { %v2929_v6 = vpop.f32.mrf.mxu1  ;;  %v2931_v1 = vpop.f32.mrf.mxu0 }
 0x13d   : > { %3125 = vst [vmem:[#allocation9_spill] sm:$0xff] %v2929_v6  ;;  %3126 = vst [vmem:[#allocation10_spill] sm:$0xff] %v2931_v1  ;;  %v1059_v6 = vadd.f32 %v2140_v48, %v2852_v50  ;;  %v1058_v48 = vadd.f32 %v997_v13, %v2858_v58 }
 0x13e   : > { %v2933_v16 = vpop.f32.mrf.mxu1  ;;  %v2194_v30 = vpop.f32.mrf.mxu0 }
 0x13f   : > { %3127 = vst [vmem:[#allocation11_spill] sm:$0xff] %v2933_v16 }
 0x140   : > { %v2935_v24 = vpop.f32.mrf.mxu1  ;;  %v1400_v33 = vpop.f32.mrf.mxu0 }
 0x141   : > { %3128 = vst [vmem:[#allocation12_spill] sm:$0xff] %v2935_v24 }
 0x142   : > { %v2176_v42 = vpop.f32.mrf.mxu1  ;;  %v2195_v22 = vpop.f32.mrf.mxu0 }
 0x144   : > { %v1274_v28 = vpop.f32.mrf.mxu1  ;;  %v2937_v7 = vpop.f32.mrf.mxu0 }
 0x146   : > { %v2177_v43 = vpop.f32.mrf.mxu1  ;;  %v2939_v46 = vpop.f32.mrf.mxu0 }
 0x148   : > { %v1277_v9 = vpop.f32.mrf.mxu1  ;;  %v2941_v0 = vpop.f32.mrf.mxu0 }
 0x14a   : > { %v2180_v62 = vpop.f32.mrf.mxu1  ;;  %v2943_v2 = vpop.f32.mrf.mxu0 }
 0x14c   : > { %v1290_v55 = vpop.f32.mrf.mxu1  ;;  %v2945_v21 = vpop.f32.mrf.mxu0 }
 0x14d   : > { %3129 = vst [vmem:[#allocation13_spill] sm:$0xff] %v2945_v21 }
 0x14e   : > { %v2947_v38 = vpop.f32.mrf.mxu1  ;;  %v2949_v15 = vpop.f32.mrf.mxu0 }
 0x14f   : > { %3130 = vst [vmem:[#allocation14_spill] sm:$0xff] %v2949_v15 }
 0x150   : > { %v2951_v1 = vpop.f32.mrf.mxu1  ;;  %v2953_v44 = vpop.f32.mrf.mxu0 }
 0x151   : > { %3131 = vst [vmem:[#allocation15_spill] sm:$0xff] %v2953_v44  ;;  %v1057_v44 = vadd.f32 %v994_v17, %v2854_v11 }
 0x152   : > { %v2955_v24 = vpop.f32.mrf.mxu1  ;;  %v2957_v49 = vpop.f32.mrf.mxu0 }
 0x153   : > { %3132 = vst [vmem:[#allocation16_spill] sm:$0xff] %v2957_v49  ;;  %v1207_v49 = vadd.f32 %v2878_v12, %v1059_v6  ;;  %v1205_v50 = vadd.f32 %v2882_v45, %v1057_v44  ;;  %v1061_v12 = vadd.f32 %v1010_v60, %v2862_v36  ;;  %v1206_v6 = vadd.f32 %v2891_v19, %v1058_v48  ;;  %v3002_v19 = vld [vmem:[%s3112_s2] ss:$0 sm:$0xff] }
 0x154   : > { %v2959_v57 = vpop.f32.mrf.mxu1  ;;  %v2961_v16 = vpop.f32.mrf.mxu0  ;;  %v1062_v60 = vadd.f32 %v2905_v10, %v2866_v63 }
 0x155   : > { %3133 = vst [vmem:[#allocation17_spill] sm:$0xff] %v2959_v57  ;;  %3134 = vst [vmem:[#allocation18_spill] sm:$0xff] %v2961_v16  ;;  %v1060_v16 = vadd.f32 %v2141_v56, %v2856_v59  ;;  %v1209_v36 = vadd.f32 %v2895_v8, %v1061_v12 }
 0x156   : > { %v2963_v47 = vpop.f32.mrf.mxu1  ;;  %v2965_v39 = vpop.f32.mrf.mxu0 }
 0x157   : > { %3135 = vst [vmem:[#allocation19_spill] sm:$0xff] %v2963_v47  ;;  %3136 = vst [vmem:[#allocation20_spill] sm:$0xff] %v2965_v39  ;;  %v1339_v39 = vadd.f32 %v2176_v42, %v1207_v49  ;;  %v1341_v8 = vadd.f32 %v1290_v55, %v1209_v36 }
 0x158   : > { %v2968_v27 = vpop.f32.mrf.mxu1  ;;  %v2970_v15 = vpop.f32.mrf.mxu0 }
 0x159   : > { %3137 = vst [vmem:[#allocation21_spill] sm:$0xff] %v2970_v15  ;;  %v1063_v15 = vadd.f32 %v2144_v4, %v2860_v53  ;;  %v1064_v53 = vadd.f32 %v2901_v14, %v2864_v52 }
 0x15a   : > { %v2973_v31 = vpop.f32.mrf.mxu1  ;;  %v2975_v21 = vpop.f32.mrf.mxu0 }
 0x15b   : > { %3138 = vst [vmem:[#allocation22_spill] sm:$0xff] %v2973_v31  ;;  %3139 = vst [vmem:[#allocation23_spill] sm:$0xff] %v2975_v21  ;;  %v1208_v21 = vadd.f32 %v2887_v51, %v1060_v16  ;;  %v1337_v31 = vadd.f32 %v1274_v28, %v1205_v50  ;;  %v1211_v58 = vadd.f32 %v2893_v54, %v1063_v15 }
 0x15c   : > { %v2979_v57 = vpop.f32.mrf.mxu1  ;;  %v2981_v47 = vpop.f32.mrf.mxu0  ;;  %v1338_v51 = vadd.f32 %v1277_v9, %v1206_v6  ;;  %v1210_v9 = vadd.f32 %v2899_v61, %v1062_v60 }
 0x15d   : > { %3140 = vst [vmem:[#allocation24_spill] sm:$0xff] %v2981_v47  ;;  %v1465_v47 = vadd.f32 %v2194_v30, %v1339_v39  ;;  %v1340_v45 = vadd.f32 %v2177_v43, %v1208_v21  ;;  %v1463_v4 = vadd.f32 %v1400_v33, %v1337_v31  ;;  %v1343_v16 = vadd.f32 %v2180_v62, %v1211_v58 }
 0x15e   : > { %v2986_v11 = vpop.f32.mrf.mxu1  ;;  %v2230_v17 = vpop.f32.mrf.mxu0  ;;  %v1212_v31 = vadd.f32 %v2897_v5, %v1064_v53  ;;  %v1464_v10 = vadd.f32 %v2937_v7, %v1338_v51 }
 0x15f   : > { %v1466_v30 = vadd.f32 %v2195_v22, %v1340_v45  ;;  %v1065_v22 = vadd.f32 %v2913_v26, %v2870_v35  ;;  %v1469_v62 = vadd.f32 %v2939_v46, %v1343_v16  ;;  %v1068_v35 = vadd.f32 %v2917_v37, %v2872_v23 }
 0x160   : > { %v2990_v59 = vpop.f32.mrf.mxu1  ;;  %v1680_v56 = vpop.f32.mrf.mxu0  ;;  %v1344_v5 = vadd.f32 %v2947_v38, %v1212_v31  ;;  %v1467_v26 = vadd.f32 %v2941_v0, %v1341_v8  ;;  %v1342_v46 = vadd.f32 %v2951_v1, %v1210_v9  ;;  %v3149_v9 = vld [vmem:[#allocation3_spill] sm:$0xff] }
 0x161   : > { %v1213_v6 = vadd.f32 %v2907_v18, %v1065_v22  ;;  %v1071_v18 = vadd.f32 %v2925_v32, %v2876_v3  ;;  %v3146_v3 = vld [vmem:[#allocation14_spill] sm:$0xff]  ;;  %v3150_v22 = vld [vmem:[#allocation11_spill] sm:$0xff] }
 0x162   : > { %v2212_v49 = vpop.f32.mrf.mxu1  ;;  %v2231_v13 = vpop.f32.mrf.mxu0  ;;  %v1470_v23 = vadd.f32 %v2943_v2, %v1344_v5  ;;  %v3142_v2 = vld [vmem:[#allocation17_spill] sm:$0xff]  ;;  %v3151_v5 = vld [vmem:[#allocation15_spill] sm:$0xff] }
 0x163   : > { %v1613_v44 = vadd.f32 %v2212_v49, %v1465_v47  ;;  %v1067_v47 = vadd.f32 %v2909_v20, %v2868_v29 }
 0x164   : > { %v1548_v54 = vpop.f32.mrf.mxu1  ;;  %v1683_v39 = vpop.f32.mrf.mxu0 }
 0x165   : > { %v1745_v52 = vadd.f32 %v2230_v17, %v1613_v44  ;;  %v1611_v14 = vadd.f32 %v1548_v54, %v1463_v4  ;;  %v1215_v15 = vadd.f32 %v2903_v34, %v1067_v47  ;;  %v1066_v34 = vadd.f32 %v2921_v41, %v2874_v40  ;;  %v3141_v40 = vld [vmem:[#allocation13_spill] sm:$0xff] }
 0x166   : > { %v2213_v33 = vpop.f32.mrf.mxu1  ;;  %v2234_v63 = vpop.f32.mrf.mxu0  ;;  %v1468_v41 = vadd.f32 %v3141_v40, %v1342_v46  ;;  %v1345_v4 = vadd.f32 %v3142_v2, %v1213_v6  ;;  %v3143_v54 = vld [vmem:[#allocation5_spill] sm:$0xff] }
 0x167   : > { %v1768_v42 = vadd.f32 %v3002_v19, %v1745_v52  ;;  %v1743_v28 = vadd.f32 %v1680_v56, %v1611_v14  ;;  %v1614_v43 = vadd.f32 %v2213_v33, %v1466_v30  ;;  %v1347_v37 = vadd.f32 %v2955_v24, %v1215_v15  ;;  %v3145_v30 = vld [vmem:[#allocation9_spill] sm:$0xff]  ;;  %v3147_v14 = vld [vmem:[#allocation19_spill] sm:$0xff] }
 0x168   : > { %v1551_v29 = vpop.f32.mrf.mxu1  ;;  %v1696_v20 = vpop.f32.mrf.mxu0 }
 0x169   : > { %v1784_v7 = vmax.f32 %v1768_v42, 0.0  ;;  %v1766_v55 = vadd.f32 %v3002_v19, %v1743_v28  ;;  %v1746_v21 = vadd.f32 %v2231_v13, %v1614_v43  ;;  %v1612_v61 = vadd.f32 %v1551_v29, %v1464_v10  ;;  %v3148_v28 = vld [vmem:[#allocation6_spill] sm:$0xff] }
 0x16a   : > { %v2216_v38 = vpop.f32.mrf.mxu1  ;;  %v2235_v50 = vpop.f32.mrf.mxu0  ;;  %v1216_v13 = vadd.f32 %v2911_v25, %v1068_v35  ;;  %v3144_v25 = vld [vmem:[#allocation2_spill] sm:$0xff]  ;;  %v1473_v32 = vadd.f32 %v3146_v3, %v1347_v37  ;;  %v1219_v43 = vadd.f32 %v3148_v28, %v1071_v18  ;;  %v1471_v29 = vadd.f32 %v3151_v5, %v1345_v4 }
 0x16b   : > { %1800 = vst.msk [vmem:[%s3018_s15 + $0x10] sm:$0xff] %vm424_vm3, %v1784_v7  ;;  %v1782_v48 = vmax.f32 %v1766_v55, 0.0  ;;  %v1769_v17 = vadd.f32 %v3002_v19, %v1746_v21  ;;  %v1744_v12 = vadd.f32 %v1683_v39, %v1612_v61  ;;  %v1617_v56 = vadd.f32 %v2216_v38, %v1469_v62  ;;  %v3153_v38 = vld [vmem:[#allocation4_spill] sm:$0xff] }
 0x16c   : > { %v1564_v1 = vpop.f32.mrf.mxu1  ;;  %v1699_v0 = vpop.f32.mrf.mxu0  ;;  %v1214_v39 = vadd.f32 %v3143_v54, %v1066_v34  ;;  %v1069_v52 = vadd.f32 %v3145_v30, %v3144_v25  ;;  %v1348_v31 = vadd.f32 %v3147_v14, %v1216_v13  ;;  %v1072_v62 = vadd.f32 %v3150_v22, %v3149_v9  ;;  %v3163_v22 = vld [vmem:[#allocation24_spill] sm:$0xff] }
 0x16d   : > { %1798 = vst.msk [vmem:[%s3018_s15] sm:$0xff] %vm424_vm3, %v1782_v48  ;;  %v1785_v45 = vmax.f32 %v1769_v17, 0.0  ;;  %v1767_v58 = vadd.f32 %v3002_v19, %v1744_v12  ;;  %v1749_v53 = vadd.f32 %v2234_v63, %v1617_v56  ;;  %v1615_v49 = vadd.f32 %v1564_v1, %v1467_v26  ;;  %v3152_v26 = vld [vmem:[#allocation7_spill] sm:$0xff]  ;;  %v3155_v17 = vld [vmem:[#allocation16_spill] sm:$0xff]  ;;  %v3156_v56 = vld [vmem:[#allocation22_spill] sm:$0xff] }
 0x16e   : > { %v2217_v24 = vpop.f32.mrf.mxu1  ;;  %v2238_v51 = vpop.f32.mrf.mxu0  ;;  %v1217_v46 = vadd.f32 %v3152_v26, %v1069_v52  ;;  %v1474_v12 = vadd.f32 %v3155_v17, %v1348_v31  ;;  %v1351_v6 = vadd.f32 %v3156_v56, %v1219_v43  ;;  %v3161_v52 = vld [vmem:[#allocation21_spill] sm:$0xff] }
 0x16f   : > { %1801 = vst.msk [vmem:[%s3018_s15 + $0x18] sm:$0xff] %vm424_vm3, %v1785_v45  ;;  %v1783_v44 = vmax.f32 %v1767_v58, 0.0  ;;  %v1772_v36 = vadd.f32 %v3002_v19, %v1749_v53  ;;  %v1747_v60 = vadd.f32 %v1696_v20, %v1615_v49  ;;  %v1618_v16 = vadd.f32 %v2217_v24, %v1470_v23  ;;  %v3157_v45 = vld [vmem:[#allocation8_spill] sm:$0xff]  ;;  %v3158_v53 = vld [vmem:[#allocation18_spill] sm:$0xff] }
 0x170   : > { %v1567_v47 = vpop.f32.mrf.mxu1  ;;  %v1712_v8 = vpop.f32.mrf.mxu0  ;;  %v1346_v20 = vadd.f32 %v2968_v27, %v1214_v39  ;;  %v1220_v58 = vadd.f32 %v3157_v45, %v1072_v62  ;;  %v1349_v13 = vadd.f32 %v2979_v57, %v1217_v46 }
 0x171   : > { %1799 = vst.msk [vmem:[%s3018_s15 + $0x8] sm:$0xff] %vm424_vm3, %v1783_v44  ;;  %v1788_v33 = vmax.f32 %v1772_v36, 0.0  ;;  %v1770_v63 = vadd.f32 %v3002_v19, %v1747_v60  ;;  %v1750_v10 = vadd.f32 %v2235_v50, %v1618_v16  ;;  %v1616_v42 = vadd.f32 %v1567_v47, %v1468_v41  ;;  %v3154_v50 = vld [vmem:[#allocation12_spill] sm:$0xff]  ;;  %v3159_v44 = vld [vmem:[#allocation10_spill] sm:$0xff] }
 0x172   : > { %v2220_v7 = vpop.f32.mrf.mxu1  ;;  %v2239_v55 = vpop.f32.mrf.mxu0  ;;  %v1070_v48 = vadd.f32 %v3154_v50, %v3153_v38  ;;  %v1472_v49 = vadd.f32 %v3158_v53, %v1346_v20  ;;  %v3160_v36 = vld [vmem:[#allocation20_spill] sm:$0xff]  ;;  %v1352_v16 = vadd.f32 %v2986_v11, %v1220_v58  ;;  %v1475_v3 = vadd.f32 %v3161_v52, %v1349_v13 }
 0x173   : > { %1804 = vst.msk [vmem:[%s3018_s15 + $0x30] sm:$0xff] %vm424_vm3, %v1788_v33  ;;  %v1786_v21 = vmax.f32 %v1770_v63, 0.0  ;;  %v1773_v61 = vadd.f32 %v3002_v19, %v1750_v10  ;;  %v1748_v15 = vadd.f32 %v1699_v0, %v1616_v42  ;;  %v1621_v35 = vadd.f32 %v2220_v7, %v1473_v32  ;;  %v3162_v63 = vld [vmem:[#allocation23_spill] sm:$0xff] }
 0x174   : > { %v1580_v27 = vpop.f32.mrf.mxu1  ;;  %v1715_v34 = vpop.f32.mrf.mxu0  ;;  %v1477_v60 = vadd.f32 %v3160_v36, %v1351_v6  ;;  %v1478_v10 = vadd.f32 %v3162_v63, %v1352_v16 }
 0x175   : > { %1802 = vst.msk [vmem:[%s3018_s15 + $0x20] sm:$0xff] %vm424_vm3, %v1786_v21  ;;  %v1789_v23 = vmax.f32 %v1773_v61, 0.0  ;;  %v1771_v37 = vadd.f32 %v3002_v19, %v1748_v15  ;;  %v1753_v1 = vadd.f32 %v2238_v51, %v1621_v35  ;;  %v1619_v0 = vadd.f32 %v1580_v27, %v1471_v29 }
 0x176   : > { %v2221_v18 = vpop.f32.mrf.mxu1  ;;  %v2242_v40 = vpop.f32.mrf.mxu0  ;;  %v1218_v51 = vadd.f32 %v3159_v44, %v1070_v48 }
 0x177   : > { %1805 = vst.msk [vmem:[%s3018_s15 + $0x38] sm:$0xff] %vm424_vm3, %v1789_v23  ;;  %v1787_v41 = vmax.f32 %v1771_v37, 0.0  ;;  %v1776_v2 = vadd.f32 %v3002_v19, %v1753_v1  ;;  %v1751_v4 = vadd.f32 %v1712_v8, %v1619_v0  ;;  %v1622_v24 = vadd.f32 %v2221_v18, %v1474_v12 }
 0x178   : > { %v1583_v54 = vpop.f32.mrf.mxu1  ;;  %v1350_v32 = vadd.f32 %v2990_v59, %v1218_v51  ;;  %v1728_v31 = vpop.f32.mrf.mxu0 }
 0x179   : > { %1803 = vst.msk [vmem:[%s3018_s15 + $0x28] sm:$0xff] %vm424_vm3, %v1787_v41  ;;  %v1792_v57 = vmax.f32 %v1776_v2, 0.0  ;;  %v1774_v39 = vadd.f32 %v3002_v19, %v1751_v4  ;;  %v1754_v25 = vadd.f32 %v2239_v55, %v1622_v24  ;;  %v1620_v30 = vadd.f32 %v1583_v54, %v1472_v49 }
 0x17a   : > { %v2224_v14 = vpop.f32.mrf.mxu1  ;;  %v1476_v62 = vadd.f32 %v3163_v22, %v1350_v32  ;;  %v2243_v29 = vpop.f32.mrf.mxu0 }
 0x17b   : > { %1808 = vst.msk [vmem:[%s3018_s15 + $0x50] sm:$0xff] %vm424_vm3, %v1792_v57  ;;  %v1790_v47 = vmax.f32 %v1774_v39, 0.0  ;;  %v1777_v11 = vadd.f32 %v3002_v19, %v1754_v25  ;;  %v1752_v8 = vadd.f32 %v1715_v34, %v1620_v30  ;;  %v1625_v33 = vadd.f32 %v2224_v14, %v1477_v60 }
 0x17c   : > { %v1596_v42 = vpop.f32.mrf.mxu1  ;;  %v1731_v38 = vpop.f32.mrf.mxu0 }
 0x17d   : > { %1806 = vst.msk [vmem:[%s3018_s15 + $0x40] sm:$0xff] %vm424_vm3, %v1790_v47  ;;  %v1793_v28 = vmax.f32 %v1777_v11, 0.0  ;;  %v1775_v43 = vadd.f32 %v3002_v19, %v1752_v8  ;;  %v1757_v59 = vadd.f32 %v2242_v40, %v1625_v33  ;;  %v1623_v9 = vadd.f32 %v1596_v42, %v1475_v3 }
 0x17e   : > { %v2225_v5 = vpop.f32.mrf.mxu1 }
 0x17f   : > { %1809 = vst.msk [vmem:[%s3018_s15 + $0x58] sm:$0xff] %vm424_vm3, %v1793_v28  ;;  %v1791_v20 = vmax.f32 %v1775_v43, 0.0  ;;  %v1780_v7 = vadd.f32 %v3002_v19, %v1757_v59  ;;  %v1755_v55 = vadd.f32 %v1728_v31, %v1623_v9  ;;  %v1626_v21 = vadd.f32 %v2225_v5, %v1478_v10 }
 0x180   : > { %v1599_v61 = vpop.f32.mrf.mxu1 }
 0x181   : > { %1807 = vst.msk [vmem:[%s3018_s15 + $0x48] sm:$0xff] %vm424_vm3, %v1791_v20  ;;  %v1796_v15 = vmax.f32 %v1780_v7, 0.0  ;;  %v1778_v35 = vadd.f32 %v3002_v19, %v1755_v55  ;;  %v1758_v26 = vadd.f32 %v2243_v29, %v1626_v21  ;;  %v1624_v46 = vadd.f32 %v1599_v61, %v1476_v62 }
 0x183   : > { %1812 = vst.msk [vmem:[%s3018_s15 + $0x70] sm:$0xff] %vm424_vm3, %v1796_v15  ;;  %v1794_v50 = vmax.f32 %v1778_v35, 0.0  ;;  %v1781_v48 = vadd.f32 %v3002_v19, %v1758_v26  ;;  %v1756_v17 = vadd.f32 %v1731_v38, %v1624_v46 }
 0x185   : > { %1810 = vst.msk [vmem:[%s3018_s15 + $0x60] sm:$0xff] %vm424_vm3, %v1794_v50  ;;  %v1797_v12 = vmax.f32 %v1781_v48, 0.0  ;;  %v1779_v56 = vadd.f32 %v3002_v19, %v1756_v17 }
 0x187   : > { %1813 = vst.msk [vmem:[%s3018_s15 + $0x78] sm:$0xff] %vm424_vm3, %v1797_v12  ;;  %v1795_v6 = vmax.f32 %v1779_v56, 0.0 }
 0x189   : > { %1811 = vst.msk [vmem:[%s3018_s15 + $0x68] sm:$0xff] %vm424_vm3, %v1795_v6 }
 0x18a PF: > { %s13_s12 = sadd.s32 1, %s2281_s12  }
 0x18b   : > { %p10_p4 = scmp.ge.s32.totalorder %s13_s12, 6  }
 0x18d   :  { %12 = sbr.rel (!%p10_p4) target bundleno = 1 (0x1), region = 70 }

// kernel: unet_up_block.6
= control target key start
LH: loop header
LB: loop body
LE: loop exit
PB: predicated region body
PF: predicated region fallthrough
CT: control target
= control target key end

     0   :  { %s4489_s18 = smov 0   ;;  %s5980_s0 = inlined_call_operand.vmem [shape: bf16[4,10,18,4], index: 0, kind: input, shape index: {}]   ;;  %s5981_s1 = inlined_call_operand.vmem [shape: bf16[4,10,18,8], index: 1, kind: input, shape index: {}]   ;;  %s5982_s2 = inlined_call_operand.vmem [shape: bf16[9,4,8], index: 2, kind: input, shape index: {}]   ;;  %s5983_s3 = inlined_call_operand.vmem [shape: bf16[9,8,8], index: 3, kind: input, shape index: {}]   ;;  %s5984_s4 = inlined_call_operand.vmem [shape: f32[1,8], index: 4, kind: input, shape index: {}]   ;;  %s5985_s5 = inlined_call_operand.vmem [shape: bf16[4,128,8], index: 5, kind: output, shape index: {}]  }
   0x1 LB: > { %s3633_s19 = sadd.s32 4294967295, %s4457_s18   ;;  %p3637_p0 = scmp.ge.s32.totalorder %s4457_s18, 1  ;;  %s4457_s18 = sphi %s4489_s18, %s15_s18  }
   0x2   : > { %p197_p1 = scmp.lt.s32.totalorder %s4457_s18, 5 }
   0x4   : > { %p198_p2 = pnand %p3637_p0, %p197_p1 }
   0x6   : > { %201 = sbr.rel (%p198_p2) target bundleno = 526 (0x20e), region = 40 }
   0xb   : > { %v276_v0 = vld [vmem:[%s5982_s2] sm:$0x3]  ;;  %vm523_vm0 = vcmask 1041408   ;;  %v3642_v1 = vld [vmem:[%s5982_s2 + $0x2] sm:$0x3]  ;;  %p230_p3 = scmp.lt.s32.totalorder %s3633_s19, 3 }
   0xc   : > { %4405 = vmatprep.subr.msk.bf16.mxu1 %vm523_vm0, %v276_v0  ;;  %v689_v2 = vsel %vm523_vm0, %v276_v0, 0  ;;  %4404 = vmatprep.subr.msk.bf16.mxu0 %vm523_vm0, %v3642_v1  ;;  %v525_v3 = vsel %vm523_vm0, %v3642_v1, 0  ;;  %v3683_v4 = vld [vmem:[%s5982_s2 + $0x4] sm:$0x3]  ;;  %v3700_v5 = vld [vmem:[%s5982_s2 + $0x6] sm:$0x3] }
   0xd   : > { %4099 = vmatpush3.bf16.msra.mxu1 %v689_v2  ;;  %s6052_s19 = smov (!%p230_p3, %s3633_s19), 3  ;;  %4081 = vmatpush3.bf16.msra.mxu0 %v525_v3  ;;  %vm498_vm1 = vcmask 31744   ;;  %vm277_vm2 = vsmask.f32 3328  ;;  %vm278_vm3 = vsmask.f32 7440 }
   0xe   : > { %4406 = vmatprep.subr.msk.bf16.mxu0 %vm523_vm0, %v3683_v4  ;;  %s4422_s28 = smul.u32 120, %s6052_s19  ;;  %4407 = vmatprep.subr.msk.bf16.mxu1 %vm523_vm0, %v3700_v5  ;;  %v1032_v20 = vsel %vm523_vm0, %v3700_v5, 0  ;;  %v4558_v21 = vld [vmem:[%s5982_s2 + $0xa] sm:$0x3]  ;;  %v4569_v29 = vsel %vm523_vm0, %v3683_v4, 0  ;;  %vm4580_vm4 = vmor %vm277_vm2, %vm278_vm3  ;;  %vm796_vm5 = vcmask 1042432  }
   0xf   : > { %vm797_vm6 = vcmask 1046532   ;;  %vm1929_vm8 = vcmask 1043456   ;;  %vm1904_vm9 = vcmask 64512   ;;  %vm3549_vm10 = vcmask 60416   ;;  %s3901_s17 = sshll.u32 %s6052_s19, 6 }
  0x10   : > { %s4523_s6 = scalar_lea.vmem %s5980_s0, %s4422_s28  ;;  %vm4761_vm7 = vmor %vm796_vm5, %vm797_vm6  ;;  %s4997_s27 = scalar_lea.vmem %s5981_s1, %s4422_s28 }
  0x11   : > { %v4526_v6 = vld [vmem:[%s4523_s6] sm:$0xf]  ;;  %v4529_v7 = vld [vmem:[%s4523_s6 + $0x4] sm:$0xf]  ;;  %v4532_v8 = vld [vmem:[%s4523_s6 + $0xc] sm:$0xf]  ;;  %s5890_s21 = scalar_lea.vmem %s5985_s5, %s3901_s17 }
  0x12   : > { %v281_v9 = vshrl.u32 %v4526_v6, 16  ;;  %v284_v10 = vshll.u32 %v4526_v6, 16  ;;  %v294_v11 = vshrl.u32 %v4529_v7, 16  ;;  %v3659_v12 = vcombine.low %v4526_v6, %v4529_v7  ;;  %v4540_v13 = vld [vmem:[%s4523_s6 + $0x10] sm:$0xf] }
  0x13   : > { %v305_v14 = vshrl.u32 %v4532_v8, 16  ;;  %v308_v15 = vshll.u32 %v4532_v8, 16  ;;  %v4545_v16 = vld [vmem:[%s4523_s6 + $0x8] sm:$0x1]  ;;  %v801_v17 = vrot.slane %v4529_v7, 5  ;;  %v318_v18 = vshrl.u32 %v4540_v13, 16 }
  0x14   : > { %4100 = vmatprep.mubr.msk.bf16.mxu1 %vm498_vm1, %v3659_v12  ;;  %v4552_v19 = vcombine.low %v4532_v8, %v4540_v13  ;;  %v283_v22 = vrot.slane %v281_v9, 4  ;;  %v286_v23 = vrot.slane %v284_v10, 5  ;;  %v290_v24 = vshll.u32 %v4529_v7, 16  ;;  %v4562_v25 = vld [vmem:[%s4523_s6 + $0x14] sm:$0x1] }
  0x15   : > { %v3675_v26 = vrot.slane %v4526_v6, 9  ;;  %v296_v27 = vrot.slane %v294_v11, 4  ;;  %v300_v28 = vshll.u32 %v4545_v16, 16  ;;  %v307_v32 = vrot.slane %v305_v14, 4  ;;  %v4572_v34 = vld [vmem:[%s4523_s6 + $0x18] sm:$0xf] }
  0x16   : > { %4101 = vmatmul.mubr.msk.bf16.vlgmr.msra.gmra.mxu1 %vm498_vm1, %v4552_v19  ;;  %v287_v30 = vor.u32 %v286_v23, %v283_v22  ;;  %v292_v31 = vrot.slane %v290_v24, 5  ;;  %v310_v33 = vrot.slane %v308_v15, 5  ;;  %v4576_v35 = vrot.slane %v801_v17, 4  ;;  %v4587_v40 = vld [vmem:[%s4523_s6 + $0x1c] sm:$0xf] }
  0x17   : > { %4135 = vmatpush3.bf16.msra.mxu1 %v1032_v20  ;;  %v314_v37 = vshll.u32 %v4540_v13, 16  ;;  %v320_v38 = vrot.slane %v318_v18, 4  ;;  %v324_v39 = vshll.u32 %v4562_v25, 16  ;;  %v302_v43 = vrot.slane %v300_v28, 5  ;;  %v4592_v45 = vld [vmem:[%s4523_s6 + $0x24] sm:$0xf] }
  0x18   : > { %4409 = vmatprep.subr.msk.bf16.mxu1 %vm523_vm0, %v4558_v21  ;;  %v288_v41 = vrot.slane %v287_v30, 4  ;;  %v297_v42 = vor.u32 %v296_v27, %v292_v31  ;;  %v311_v44 = vor.u32 %v310_v33, %v307_v32  ;;  %v329_v48 = vshrl.u32 %v4572_v34, 16  ;;  %v4597_v50 = vld [vmem:[%s4523_s6 + $0x28] sm:$0xf]  ;;  %v4609_v59 = vld [vmem:[%s4523_s6 + $0x20] sm:$0x1] }
  0x19   : > { %v316_v46 = vrot.slane %v314_v37, 5  ;;  %v326_v47 = vrot.slane %v324_v39, 5  ;;  %v332_v49 = vshll.u32 %v4572_v34, 16  ;;  %v342_v54 = vshrl.u32 %v4587_v40, 16  ;;  %v4627_v10 = vld [vmem:[%s4523_s6 + $0x2c] sm:$0x1] }
  0x1a   : > { %v293_v51 = vsel %vm4580_vm4, %v288_v41, %v292_v31  ;;  %v298_v52 = vrot.slane %v297_v42, 4  ;;  %v312_v53 = vrot.slane %v311_v44, 4  ;;  %v4604_v56 = vcombine.low %v4572_v34, %v4587_v40  ;;  %v4634_v20 = vld [vmem:[%s4523_s6 + $0x30] sm:$0xf]  ;;  %v4637_v22 = vld [vmem:[%s4523_s6 + $0x34] sm:$0xf] }
  0x1b   : > { %v321_v55 = vor.u32 %v320_v38, %v316_v46  ;;  %v353_v57 = vshrl.u32 %v4592_v45, 16  ;;  %v356_v58 = vshll.u32 %v4592_v45, 16  ;;  %v366_v62 = vshrl.u32 %v4597_v50, 16  ;;  %v4644_v30 = vld [vmem:[%s5982_s2 + $0x8] sm:$0x3] }
  0x1c   : > { %v303_v60 = vsel %vm4580_vm4, %v298_v52, %v302_v43  ;;  %v317_v61 = vsel %vm4580_vm4, %v312_v53, %v316_v46  ;;  %v4618_v63 = vcombine.low %v4592_v45, %v4597_v50  ;;  %4104 = vmatprep.mubr.msk.bf16.mxu1 %vm498_vm1, %v4604_v56  ;;  %v331_v2 = vrot.slane %v329_v48, 4  ;;  %v4648_v38 = vld [vmem:[%s4523_s6 + $0x3c] sm:$0xf]  ;;  %v4656_v44 = vld [vmem:[%s4523_s6 + $0x40] sm:$0xf] }
  0x1d   : > { %v3643_v0 = vcombine.low %v293_v51, %v303_v60  ;;  %v322_v1 = vrot.slane %v321_v55, 4  ;;  %v334_v3 = vrot.slane %v332_v49, 5  ;;  %v338_v4 = vshll.u32 %v4587_v40, 16  ;;  %v4668_v55 = vld [vmem:[%s4523_s6 + $0x38] sm:$0x1] }
  0x1e   : > { %4105 = vmatmul.mubr.msk.bf16.gmra.mxu1 %vm498_vm1, %v4618_v63  ;;  %v344_v5 = vrot.slane %v342_v54, 4  ;;  %v348_v9 = vshll.u32 %v4609_v59, 16  ;;  %v355_v11 = vrot.slane %v353_v57, 4  ;;  %v358_v15 = vrot.slane %v356_v58, 5 }
  0x1f   : > { %4082 = vmatprep.mubr.msk.bf16.mxu0 %vm498_vm1, %v3643_v0  ;;  %v327_v12 = vsel %vm4580_vm4, %v322_v1, %v326_v47  ;;  %v335_v14 = vor.u32 %v334_v3, %v331_v2  ;;  %v362_v18 = vshll.u32 %v4597_v50, 16  ;;  %v340_v24 = vrot.slane %v338_v4, 5 }
  0x20   : > { %v4639_v23 = vcombine.low %v317_v61, %v327_v12  ;;  %v350_v27 = vrot.slane %v348_v9, 5  ;;  %v368_v28 = vrot.slane %v366_v62, 4  ;;  %v359_v32 = vor.u32 %v358_v15, %v355_v11  ;;  %v4692_v9 = vld [vmem:[%s4523_s6 + $0x44] sm:$0x1]  ;;  %v4695_v11 = vld [vmem:[%s4523_s6 + $0x48] sm:$0xf] }
  0x21   : > { %v336_v31 = vrot.slane %v335_v14, 4  ;;  %v364_v33 = vrot.slane %v362_v18, 5  ;;  %v372_v37 = vshll.u32 %v4627_v10, 16  ;;  %v345_v39 = vor.u32 %v344_v5, %v340_v24 }
  0x22   : > { %4083 = vmatmul.mubr.msk.bf16.vlgmr.msra.gmra.mxu0 %vm498_vm1, %v4639_v23  ;;  %v377_v41 = vshrl.u32 %v4634_v20, 16  ;;  %v380_v42 = vshll.u32 %v4634_v20, 16  ;;  %v390_v43 = vshrl.u32 %v4637_v22, 16  ;;  %v360_v47 = vrot.slane %v359_v32, 4 }
  0x23   : > { %4117 = vmatpush3.bf16.msra.mxu0 %v4569_v29  ;;  %v341_v46 = vsel %vm4580_vm4, %v336_v31, %v340_v24  ;;  %v369_v48 = vor.u32 %v368_v28, %v364_v33  ;;  %v374_v49 = vrot.slane %v372_v37, 5  ;;  %v346_v51 = vrot.slane %v345_v39, 4  ;;  %v4700_v24 = vld [vmem:[%s4523_s6 + $0x4c] sm:$0xf] }
  0x24   : > { %v4663_v52 = vcombine.low %v4634_v20, %v4637_v22  ;;  %v401_v53 = vshrl.u32 %v4648_v38, 16  ;;  %v404_v54 = vshll.u32 %v4648_v38, 16  ;;  %4408 = vmatprep.subr.msk.bf16.mxu0 %vm523_vm0, %v4644_v30  ;;  %v365_v29 = vsel %vm4580_vm4, %v360_v47, %v364_v33 }
  0x25   : > { %v370_v57 = vrot.slane %v369_v48, 4  ;;  %v414_v58 = vshrl.u32 %v4656_v44, 16  ;;  %v4677_v60 = vcombine.low %v4648_v38, %v4656_v44  ;;  %v351_v61 = vsel %vm4580_vm4, %v346_v51, %v350_v27 }
  0x26   : > { %4108 = vmatprep.mubr.msk.bf16.mxu1 %vm498_vm1, %v4663_v52  ;;  %v379_v62 = vrot.slane %v377_v41, 4  ;;  %v382_v0 = vrot.slane %v380_v42, 5  ;;  %v386_v1 = vshll.u32 %v4637_v22, 16  ;;  %v4684_v2 = vcombine.low %v341_v46, %v351_v61  ;;  %v4710_v42 = vld [vmem:[%s4523_s6 + $0x54] sm:$0xf] }
  0x27   : > { %v375_v3 = vsel %vm4580_vm4, %v370_v57, %v374_v49  ;;  %4109 = vmatmul.mubr.msk.bf16.gmra.mxu1 %vm498_vm1, %v4677_v60  ;;  %v392_v4 = vrot.slane %v390_v43, 4  ;;  %v396_v5 = vshll.u32 %v4668_v55, 16  ;;  %v403_v18 = vrot.slane %v401_v53, 4  ;;  %v4715_v49 = vld [vmem:[%s4523_s6 + $0x58] sm:$0xf] }
  0x28   : > { %v4697_v12 = vcombine.low %v365_v29, %v375_v3  ;;  %v383_v14 = vor.u32 %v382_v0, %v379_v62  ;;  %v388_v15 = vrot.slane %v386_v1, 5  ;;  %4086 = vmatprep.mubr.msk.bf16.mxu0 %vm498_vm1, %v4684_v2  ;;  %v406_v28 = vrot.slane %v404_v54, 5  ;;  %v4726_v0 = vld [vmem:[%s4523_s6 + $0x50] sm:$0x1] }
  0x29   : > { %v398_v27 = vrot.slane %v396_v5, 5  ;;  %v410_v31 = vshll.u32 %v4656_v44, 16  ;;  %v416_v32 = vrot.slane %v414_v58, 4  ;;  %v420_v39 = vshll.u32 %v4692_v9, 16 }
  0x2a   : > { %4087 = vmatmul.mubr.msk.bf16.gmra.mxu0 %vm498_vm1, %v4697_v12  ;;  %v384_v33 = vrot.slane %v383_v14, 4  ;;  %v393_v37 = vor.u32 %v392_v4, %v388_v15  ;;  %v425_v41 = vshrl.u32 %v4695_v11, 16  ;;  %v407_v43 = vor.u32 %v406_v28, %v403_v18 }
  0x2b   : > { %v412_v46 = vrot.slane %v410_v31, 5  ;;  %v428_v47 = vshll.u32 %v4695_v11, 16  ;;  %v438_v48 = vshrl.u32 %v4700_v24, 16  ;;  %v422_v54 = vrot.slane %v420_v39, 5 }
  0x2c   : > { %v389_v51 = vsel %vm4580_vm4, %v384_v33, %v388_v15  ;;  %v394_v53 = vrot.slane %v393_v37, 4  ;;  %v4721_v29 = vcombine.low %v4695_v11, %v4700_v24  ;;  %v408_v57 = vrot.slane %v407_v43, 4  ;;  %v4746_v33 = vld [vmem:[%s4523_s6 + $0x5c] sm:$0x1] }
  0x2d   : > { %v417_v58 = vor.u32 %v416_v32, %v412_v46  ;;  %v449_v61 = vshrl.u32 %v4710_v42, 16  ;;  %v452_v62 = vshll.u32 %v4710_v42, 16  ;;  %v462_v3 = vshrl.u32 %v4715_v49, 16 }
  0x2e   : > { %v399_v1 = vsel %vm4580_vm4, %v394_v53, %v398_v27  ;;  %4112 = vmatprep.mubr.msk.bf16.mxu1 %vm498_vm1, %v4721_v29  ;;  %v4735_v4 = vcombine.low %v4710_v42, %v4715_v49  ;;  %v427_v5 = vrot.slane %v425_v41, 4  ;;  %v413_v15 = vsel %vm4580_vm4, %v408_v57, %v412_v46 }
  0x2f   : > { %v4737_v14 = vcombine.low %v389_v51, %v399_v1  ;;  %v418_v18 = vrot.slane %v417_v58, 4  ;;  %v430_v28 = vrot.slane %v428_v47, 5  ;;  %v434_v27 = vshll.u32 %v4700_v24, 16 }
  0x30   : > { %4113 = vmatmul.mubr.msk.bf16.gmra.mxu1 %vm498_vm1, %v4735_v4  ;;  %v440_v31 = vrot.slane %v438_v48, 4  ;;  %v444_v32 = vshll.u32 %v4726_v0, 16  ;;  %v451_v37 = vrot.slane %v449_v61, 4  ;;  %v454_v43 = vrot.slane %v452_v62, 5 }
  0x31   : > { %4090 = vmatprep.mubr.msk.bf16.mxu0 %vm498_vm1, %v4737_v14  ;;  %v423_v39 = vsel %vm4580_vm4, %v418_v18, %v422_v54  ;;  %v431_v41 = vor.u32 %v430_v28, %v427_v5  ;;  %v458_v46 = vshll.u32 %v4715_v49, 16  ;;  %4136 = vmatprep.mubr.msk.bf16.mxu1 %vm498_vm1, %v4552_v19  ;;  %v804_v47 = vrot.slane %v4545_v16, 5 }
  0x32   : > { %v4756_v48 = vcombine.low %v413_v15, %v423_v39  ;;  %v436_v51 = vrot.slane %v434_v27, 5  ;;  %v464_v53 = vrot.slane %v462_v3, 4  ;;  %v455_v58 = vor.u32 %v454_v43, %v451_v37  ;;  %v4787_v39 = vld [vmem:[%s5982_s2 + $0xe] sm:$0x3] }
  0x33   : > { %v432_v57 = vrot.slane %v431_v41, 4  ;;  %v460_v61 = vrot.slane %v458_v46, 5  ;;  %v468_v1 = vshll.u32 %v4746_v33, 16  ;;  %v808_v62 = vrot.slane %v4540_v13, 5 }
  0x34   : > { %4091 = vmatmul.mubr.msk.bf16.gmra.mxu0 %vm498_vm1, %v4756_v48  ;;  %v441_v16 = vor.u32 %v440_v31, %v436_v51  ;;  %v446_v19 = vrot.slane %v444_v32, 5  ;;  %v456_v5 = vrot.slane %v455_v58, 4  ;;  %v1312_v18 = vsel %vm523_vm0, %v4558_v21, 0 }
  0x35   : > { %v465_v3 = vor.u32 %v464_v53, %v460_v61  ;;  %v470_v15 = vrot.slane %v468_v1, 5  ;;  %v437_v28 = vsel %vm4580_vm4, %v432_v57, %v436_v51  ;;  %v802_v13 = vsel %vm4761_vm7, %v3675_v26, %v801_v17 }
  0x36   : > { %v442_v27 = vrot.slane %v441_v16, 4  ;;  %v805_v31 = vsel %vm4761_vm7, %v4576_v35, %v804_v47  ;;  %v461_v32 = vsel %vm4580_vm4, %v456_v5, %v460_v61  ;;  %v815_v21 = vrot.slane %v4587_v40, 5 }
  0x37   : > { %v466_v37 = vrot.slane %v465_v3, 4  ;;  %v3676_v6 = vrot.slane %v4532_v8, 9  ;;  %v810_v7 = vrot.slane %v808_v62, 4  ;;  %v811_v26 = vrot.slane %v4562_v25, 5  ;;  %v3731_v3 = vld [vmem:[%s5982_s2 + $0xc] sm:$0x3] }
  0x38   : > { %v447_v17 = vsel %vm4580_vm4, %v442_v27, %v446_v19  ;;  %4137 = vmatmul.mubr.msk.bf16.vlgmr.msra.gmra.mxu1 %vm498_vm1, %v4604_v56  ;;  %v3684_v41 = vcombine.low %v802_v13, %v805_v31  ;;  %v3677_v43 = vrot.slane %v4572_v34, 9  ;;  %v817_v46 = vrot.slane %v815_v21, 4 }
  0x39   : > { %v4795_v35 = vcombine.low %v437_v28, %v447_v17  ;;  %v471_v40 = vsel %vm4580_vm4, %v466_v37, %v470_v15  ;;  %4171 = vmatpush3.bf16.msra.mxu1 %v1312_v18  ;;  %4140 = vmatprep.mubr.msk.bf16.mxu1 %vm498_vm1, %v4618_v63  ;;  %v818_v47 = vrot.slane %v4609_v59, 5  ;;  %v809_v25 = vsel %vm4761_vm7, %v3676_v6, %v808_v62  ;;  %v270_v28 = vld [vmem:[%s4523_s6 + $0x60] sm:$0xf] }
  0x3a   : > { %v4801_v8 = vcombine.low %v461_v32, %v471_v40  ;;  %4411 = vmatprep.subr.msk.bf16.mxu1 %vm523_vm0, %v4787_v39  ;;  %v812_v34 = vsel %vm4761_vm7, %v810_v7, %v811_v26  ;;  %v822_v51 = vrot.slane %v4597_v50, 5  ;;  %v816_v59 = vsel %vm4761_vm7, %v3677_v43, %v815_v21  ;;  %v271_v32 = vld [vmem:[%s4523_s6 + $0x64] sm:$0xf] }
  0x3b   : > { %4094 = vmatprep.mubr.msk.bf16.mxu0 %vm498_vm1, %v4795_v35  ;;  %v819_v53 = vsel %vm4761_vm7, %v817_v46, %v818_v47  ;;  %v829_v57 = vrot.slane %v4637_v22, 5  ;;  %v3685_v58 = vcombine.low %v809_v25, %v812_v34  ;;  %v3678_v1 = vrot.slane %v4592_v45, 9  ;;  %v272_v34 = vld [vmem:[%s4523_s6 + $0x68] sm:$0x1] }
  0x3c   : > { %4095 = vmatmul.mubr.msk.bf16.gmra.mxu0 %vm498_vm1, %v4801_v8  ;;  %v4824_v61 = vcombine.low %v816_v59, %v819_v53  ;;  %v824_v62 = vrot.slane %v822_v51, 4  ;;  %v825_v16 = vrot.slane %v4627_v10, 5  ;;  %v1180_v50 = vsel %vm523_vm0, %v4644_v30, 0 }
  0x3d   : > { %4118 = vmatprep.mubr.msk.bf16.mxu0 %vm498_vm1, %v3684_v41  ;;  %v3679_v19 = vrot.slane %v4634_v20, 9  ;;  %v831_v22 = vrot.slane %v829_v57, 4  ;;  %v832_v5 = vrot.slane %v4668_v55, 5  ;;  %v823_v45 = vsel %vm4761_vm7, %v3678_v1, %v822_v51  ;;  %v3752_v51 = vld [vmem:[%s5982_s2 + $0x10] sm:$0x3] }
  0x3e   : > { %v826_v10 = vsel %vm4761_vm7, %v824_v62, %v825_v16  ;;  %v836_v20 = vrot.slane %v4656_v44, 5  ;;  %v843_v15 = vrot.slane %v4700_v24, 5  ;;  %v3680_v44 = vrot.slane %v4648_v38, 9 }
  0x3f   : > { %v830_v30 = vsel %vm4761_vm7, %v3679_v19, %v829_v57  ;;  %v833_v55 = vsel %vm4761_vm7, %v831_v22, %v832_v5  ;;  %v4851_v18 = vcombine.low %v823_v45, %v826_v10  ;;  %v839_v31 = vrot.slane %v4692_v9, 5 }
  0x40   : > { %4141 = vmatmul.mubr.msk.bf16.gmra.mxu1 %vm498_vm1, %v4663_v52  ;;  %v4856_v27 = vcombine.low %v830_v30, %v833_v55  ;;  %v838_v13 = vrot.slane %v836_v20, 4  ;;  %v3681_v24 = vrot.slane %v4695_v11, 9  ;;  %v845_v37 = vrot.slane %v843_v15, 4 }
  0x41   : > { %4144 = vmatprep.mubr.msk.bf16.mxu1 %vm498_vm1, %v4677_v60  ;;  %v846_v21 = vrot.slane %v4726_v0, 5  ;;  %v4867_v6 = vcombine.low %v270_v28, %v271_v32  ;;  %v837_v38 = vsel %vm4761_vm7, %v3680_v44, %v836_v20  ;;  %v850_v7 = vrot.slane %v4715_v49, 5 }
  0x42   : > { %v840_v9 = vsel %vm4761_vm7, %v838_v13, %v839_v31  ;;  %v844_v11 = vsel %vm4761_vm7, %v3681_v24, %v843_v15  ;;  %v3682_v40 = vrot.slane %v4710_v42, 9  ;;  %v853_v43 = vrot.slane %v4746_v33, 5  ;;  %v1863_v33 = vld [vmem:[%s5983_s3] sm:$0xf]  ;;  %v4958_v24 = vld [vmem:[%s4523_s6 + $0x70] sm:$0xf] }
  0x43   : > { %v847_v0 = vsel %vm4761_vm7, %v845_v37, %v846_v21  ;;  %v4880_v17 = vcombine.low %v837_v38, %v840_v9  ;;  %v852_v41 = vrot.slane %v850_v7, 4  ;;  %v1586_v42 = vsel %vm523_vm0, %v4787_v39, 0 }
  0x44   : > { %4119 = vmatmul.mubr.msk.bf16.vlgmr.msra.gmra.mxu0 %vm498_vm1, %v3685_v58  ;;  %v4884_v26 = vcombine.low %v844_v11, %v847_v0  ;;  %v851_v49 = vsel %vm4761_vm7, %v3682_v40, %v850_v7  ;;  %v1298_v39 = vrot.slane %v271_v32, 5  ;;  %v1438_v25 = vsel %vm523_vm0, %v3731_v3, 0 }
  0x45   : > { %4153 = vmatpush3.bf16.msra.mxu0 %v1180_v50  ;;  %4122 = vmatprep.mubr.msk.bf16.mxu0 %vm498_vm1, %v4824_v61  ;;  %v854_v46 = vsel %vm4761_vm7, %v852_v41, %v853_v43  ;;  %v1148_v59 = vshrl.u32 %v270_v28, 16  ;;  %v1151_v53 = vshll.u32 %v270_v28, 16  ;;  %v1161_v57 = vshrl.u32 %v271_v32, 16 }
  0x46   : > { %4410 = vmatprep.subr.msk.bf16.mxu0 %vm523_vm0, %v3731_v3  ;;  %v4902_v47 = vcombine.low %v851_v49, %v854_v46  ;;  %v1301_v1 = vrot.slane %v272_v34, 5  ;;  %v1157_v62 = vshll.u32 %v271_v32, 16  ;;  %v1167_v30 = vshll.u32 %v272_v34, 16  ;;  %v4955_v32 = vld [vmem:[%s4523_s6 + $0x6c] sm:$0xf] }
  0x47   : > { %v1150_v50 = vrot.slane %v1148_v59, 4  ;;  %v1153_v22 = vrot.slane %v1151_v53, 5  ;;  %v1163_v3 = vrot.slane %v1161_v57, 4  ;;  %v1931_v31 = vsel %vm1929_vm8, %v1863_v33, 0  ;;  %v5021_v34 = vld [vmem:[%s4997_s27 + $0xc] sm:$0xf] }
  0x48   : > { %4145 = vmatmul.mubr.msk.bf16.gmra.mxu1 %vm498_vm1, %v4721_v29  ;;  %v1159_v5 = vrot.slane %v1157_v62, 5  ;;  %v1554_v21 = vshrl.u32 %v4955_v32, 16  ;;  %v1557_v38 = vshll.u32 %v4955_v32, 16  ;;  %v1563_v9 = vshll.u32 %v4958_v24, 16  ;;  %v5030_v59 = vld [vmem:[%s4997_s27 + $0x1c] sm:$0xf] }
  0x49   : > { %4148 = vmatprep.mubr.msk.bf16.mxu1 %vm498_vm1, %v4735_v4  ;;  %v1154_v10 = vor.u32 %v1153_v22, %v1150_v50  ;;  %v1567_v7 = vshrl.u32 %v4958_v24, 16  ;;  %v1718_v46 = vsel %vm523_vm0, %v3752_v51, 0  ;;  %v5048_v57 = vld [vmem:[%s5983_s3 + $0x10] sm:$0xf]  ;;  %v5068_v50 = vld [vmem:[%s4997_s27 + $0x34] sm:$0xf] }
  0x4a   : > { %v1164_v20 = vor.u32 %v1163_v3, %v1159_v5  ;;  %v1559_v11 = vrot.slane %v1557_v38, 5  ;;  %v1565_v0 = vrot.slane %v1563_v9, 5  ;;  %v2074_v3 = vshll.u32 %v5021_v34, 16 }
  0x4b   : > { %v1155_v55 = vrot.slane %v1154_v10, 4  ;;  %v1569_v40 = vrot.slane %v1567_v7, 4 }
  0x4c   : > { %4123 = vmatmul.mubr.msk.bf16.gmra.mxu0 %vm498_vm1, %v4851_v18  ;;  %v1165_v15 = vrot.slane %v1164_v20, 4  ;;  %v5080_v20 = vld [vmem:[%s4997_s27 + $0x40] sm:$0xf] }
  0x4d   : > { %4126 = vmatprep.mubr.msk.bf16.mxu0 %vm498_vm1, %v4856_v27  ;;  %v1160_v44 = vsel %vm4580_vm4, %v1155_v55, %v1159_v5  ;;  %v1570_v43 = vor.u32 %v1569_v40, %v1565_v0  ;;  %v2071_v5 = vshrl.u32 %v5021_v34, 16  ;;  %v1835_v40 = vld [vmem:[%s4997_s27 + $0x8] sm:$0x1] }
  0x50   : > { %4149 = vmatmul.mubr.msk.bf16.gmra.mxu1 %vm498_vm1, %v4867_v6 }
  0x51   : > { %4172 = vmatprep.mubr.msk.bf16.mxu1 %vm498_vm1, %v3685_v58  ;;  %v1300_v58 = vrot.slane %v1298_v39, 4 }
  0x53   : > { %v1302_v19 = vsel %vm4761_vm7, %v1300_v58, %v1301_v1  ;;  %v5060_v58 = vld [vmem:[%s4997_s27 + $0x28] sm:$0xf]  ;;  %v5063_v1 = vld [vmem:[%s4997_s27 + $0x30] sm:$0xf] }
  0x54   : > { %4127 = vmatmul.mubr.msk.bf16.gmra.mxu0 %vm498_vm1, %v4880_v17  ;;  %v2132_v38 = vshrl.u32 %v5060_v58, 16  ;;  %v2143_v9 = vshrl.u32 %v5063_v1, 16  ;;  %v2146_v7 = vshll.u32 %v5063_v1, 16 }
  0x55   : > { %4130 = vmatprep.mubr.msk.bf16.mxu0 %vm498_vm1, %v4884_v26 }
  0x58   : > { %4173 = vmatmul.mubr.msk.bf16.vlgmr.msra.gmra.mxu1 %vm498_vm1, %v4824_v61 }
  0x59   : > { %4207 = vmatpush3.bf16.msra.mxu1 %v1586_v42  ;;  %4176 = vmatprep.mubr.msk.bf16.mxu1 %vm498_vm1, %v4851_v18  ;;  %v1571_v42 = vrot.slane %v1570_v43, 4 }
  0x5a   : > { %4413 = vmatprep.subr.msk.bf16.mxu1 %vm1929_vm8, %v1863_v33  ;;  %v5007_v33 = vld [vmem:[%s4997_s27] sm:$0xf] }
  0x5b   : > { %v2047_v62 = vshrl.u32 %v5007_v33, 16 }
  0x5c   : > { %4131 = vmatmul.mubr.msk.bf16.gmra.mxu0 %vm498_vm1, %v4902_v47 }
  0x5d   : > { %4154 = vmatprep.mubr.msk.bf16.mxu0 %vm498_vm1, %v4639_v23  ;;  %v3720_v23 = vrot.slane %v270_v28, 9  ;;  %v1169_v28 = vrot.slane %v1167_v30, 5 }
  0x5f   : > { %v1299_v16 = vsel %vm4761_vm7, %v3720_v23, %v1298_v39  ;;  %v1170_v13 = vsel %vm4580_vm4, %v1165_v15, %v1169_v28  ;;  %v5010_v39 = vld [vmem:[%s4997_s27 + $0x4] sm:$0xf] }
  0x60   : > { %4177 = vmatmul.mubr.msk.bf16.gmra.mxu1 %vm498_vm1, %v4856_v27  ;;  %v4937_v45 = vcombine.low %v1299_v16, %v1302_v19  ;;  %v3711_v37 = vcombine.low %v1160_v44, %v1170_v13  ;;  %v2050_v16 = vshll.u32 %v5007_v33, 16  ;;  %v5071_v19 = vld [vmem:[%s4997_s27 + $0x3c] sm:$0xf]  ;;  %v2060_v22 = vshrl.u32 %v5010_v39, 16  ;;  %v5091_v44 = vld [vmem:[%s4997_s27 + $0x48] sm:$0xf] }
  0x61   : > { %4180 = vmatprep.mubr.msk.bf16.mxu1 %vm498_vm1, %v4880_v17  ;;  %v2108_v13 = vshrl.u32 %v5030_v59, 16 }
  0x62   : > { %v2062_v43 = vrot.slane %v2060_v22, 4 }
  0x64   : > { %4155 = vmatmul.mubr.msk.bf16.vlgmr.msra.gmra.mxu0 %vm498_vm1, %v4684_v2 }
  0x65   : > { %4189 = vmatpush3.bf16.msra.mxu0 %v1438_v25  ;;  %4158 = vmatprep.mubr.msk.bf16.mxu0 %vm498_vm1, %v4697_v12 }
  0x66   : > { %4412 = vmatprep.subr.msk.bf16.mxu0 %vm523_vm0, %v3752_v51  ;;  %v5024_v51 = vld [vmem:[%s4997_s27 + $0x10] sm:$0xf] }
  0x67   : > { %v2084_v10 = vshrl.u32 %v5024_v51, 16 }
  0x68   : > { %4181 = vmatmul.mubr.msk.bf16.gmra.mxu1 %vm498_vm1, %v4884_v26 }
  0x69   : > { %4184 = vmatprep.mubr.msk.bf16.mxu1 %vm498_vm1, %v4902_v47 }
  0x6c   : > { %4159 = vmatmul.mubr.msk.bf16.gmra.mxu0 %vm498_vm1, %v4737_v14 }
  0x6d   : > { %4162 = vmatprep.mubr.msk.bf16.mxu0 %vm498_vm1, %v4756_v48 }
  0x70   : > { %4185 = vmatmul.mubr.msk.bf16.gmra.mxu1 %vm498_vm1, %v4937_v45 }
  0x71   : > { %4208 = vmatprep.mubr.msk.bf16.mxu1 %vm498_vm1, %v4684_v2  ;;  %v3803_v2 = vld [vmem:[%s5983_s3 + $0x8] sm:$0xf] }
  0x72   : > { %v2519_v23 = vsel %vm1929_vm8, %v3803_v2, 0 }
  0x74   : > { %4163 = vmatmul.mubr.msk.bf16.gmra.mxu0 %vm498_vm1, %v4795_v35 }
  0x75   : > { %4166 = vmatprep.mubr.msk.bf16.mxu0 %vm498_vm1, %v4801_v8 }
  0x78   : > { %4209 = vmatmul.mubr.msk.bf16.vlgmr.msra.gmra.mxu1 %vm498_vm1, %v4697_v12  ;;  %v1556_v12 = vrot.slane %v1554_v21, 4  ;;  %v5103_v21 = vld [vmem:[%s4997_s27 + $0x4c] sm:$0xf] }
  0x79   : > { %4243 = vmatpush3.bf16.msra.mxu1 %v1931_v31  ;;  %4212 = vmatprep.mubr.msk.bf16.mxu1 %vm498_vm1, %v4737_v14  ;;  %v4976_v14 = vld [vmem:[%s4523_s6 + $0x74] sm:$0x1] }
  0x7a   : > { %4415 = vmatprep.subr.msk.bf16.mxu1 %vm1929_vm8, %v3803_v2  ;;  %v1560_v41 = vor.u32 %v1559_v11, %v1556_v12  ;;  %v1573_v49 = vshll.u32 %v4976_v14, 16  ;;  %v5112_v11 = vcombine.low %v5071_v19, %v5080_v20 }
  0x7c   : > { %4167 = vmatmul.mubr.msk.bf16.gmra.mxu0 %vm498_vm1, %v3711_v37 }
  0x7d   : > { %4190 = vmatprep.mubr.msk.bf16.mxu0 %vm498_vm1, %v4604_v56  ;;  %v3778_v56 = vld [vmem:[%s5983_s3 + $0x4] sm:$0xf] }
  0x7e   : > { %v2289_v30 = vsel %vm1929_vm8, %v3778_v56, 0 }
  0x80   : > { %4213 = vmatmul.mubr.msk.bf16.gmra.mxu1 %vm498_vm1, %v4756_v48  ;;  %v1561_v48 = vrot.slane %v1560_v41, 4  ;;  %v2056_v41 = vshll.u32 %v5010_v39, 16 }
  0x81   : > { %4216 = vmatprep.mubr.msk.bf16.mxu1 %vm498_vm1, %v4795_v35  ;;  %v1575_v35 = vrot.slane %v1573_v49, 5 }
  0x82   : > { %v5135_v49 = vrot.slane %v2056_v41, 5  ;;  %v3796_v41 = vrot.slane %v5021_v34, 9 }
  0x84   : > { %4191 = vmatmul.mubr.msk.bf16.vlgmr.msra.gmra.mxu0 %vm498_vm1, %v4618_v63  ;;  %v1566_v63 = vsel %vm4580_vm4, %v1561_v48, %v1565_v0  ;;  %v1707_v48 = vrot.slane %v4976_v14, 5 }
  0x85   : > { %4225 = vmatpush3.bf16.msra.mxu0 %v1718_v46  ;;  %4194 = vmatprep.mubr.msk.bf16.mxu0 %vm498_vm1, %v4663_v52  ;;  %v1576_v52 = vsel %vm4580_vm4, %v1571_v42, %v1575_v35  ;;  %v5123_v46 = vcombine.low %v5091_v44, %v5103_v21  ;;  %v1704_v35 = vrot.slane %v4958_v24, 5  ;;  %v5140_v42 = vld [vmem:[%s5983_s3 + $0xc] sm:$0xf] }
  0x86   : > { %4414 = vmatprep.subr.msk.bf16.mxu0 %vm1929_vm8, %v3778_v56  ;;  %v3742_v25 = vcombine.low %v1566_v63, %v1576_v52  ;;  %v2080_v63 = vshll.u32 %v5024_v51, 16  ;;  %v3795_v52 = vrot.slane %v5007_v33, 9  ;;  %v2052_v56 = vrot.slane %v2050_v16, 5  ;;  %v5152_v16 = vld [vmem:[%s4997_s27 + $0x58] sm:$0xf] }
  0x87   : > { %v1706_v22 = vrot.slane %v1704_v35, 4 }
  0x88   : > { %4217 = vmatmul.mubr.msk.bf16.gmra.mxu1 %vm498_vm1, %v4801_v8  ;;  %v3762_v8 = vcombine.low %v5007_v33, %v5010_v39  ;;  %v3751_v33 = vrot.slane %v4955_v32, 9  ;;  %v5155_v0 = vrot.slane %v2080_v63, 5 }
  0x89   : > { %4220 = vmatprep.mubr.msk.bf16.mxu1 %vm498_vm1, %v3711_v37  ;;  %v5100_v37 = vcombine.low %v5063_v1, %v5068_v50 }
  0x8c   : > { %4195 = vmatmul.mubr.msk.bf16.gmra.mxu0 %vm498_vm1, %v4677_v60  ;;  %v5027_v60 = vld [vmem:[%s4997_s27 + $0x18] sm:$0xf] }
  0x8d   : > { %4198 = vmatprep.mubr.msk.bf16.mxu0 %vm498_vm1, %v4721_v29  ;;  %v5036_v29 = vcombine.low %v5021_v34, %v5024_v51  ;;  %v5042_v53 = vcombine.low %v5027_v60, %v5030_v59  ;;  %v2095_v55 = vshrl.u32 %v5027_v60, 16  ;;  %v2098_v15 = vshll.u32 %v5027_v60, 16 }
  0x90   : > { %4221 = vmatmul.mubr.msk.bf16.gmra.mxu1 %vm498_vm1, %v3742_v25  ;;  %v2417_v25 = vrot.slane %v1835_v40, 5 }
  0x91   : > { %4244 = vmatprep.mubr.msk.bf16.mxu1 %vm1904_vm9, %v3762_v8  ;;  %v1838_v8 = vld [vmem:[%s4997_s27 + $0x14] sm:$0x1] }
  0x92   : > { %v2090_v34 = vshll.u32 %v1838_v8, 16 }
  0x94   : > { %4199 = vmatmul.mubr.msk.bf16.gmra.mxu0 %vm498_vm1, %v4735_v4  ;;  %v3732_v4 = vcombine.low %v4955_v32, %v4958_v24  ;;  %v5145_v24 = vld [vmem:[%s4997_s27 + $0x54] sm:$0xf] }
  0x95   : > { %4202 = vmatprep.mubr.msk.bf16.mxu0 %vm498_vm1, %v4867_v6  ;;  %v5057_v6 = vld [vmem:[%s4997_s27 + $0x24] sm:$0xf] }
  0x96   : > { %v5088_v28 = vcombine.low %v5057_v6, %v5060_v58  ;;  %v2119_v31 = vshrl.u32 %v5057_v6, 16  ;;  %v2122_v2 = vshll.u32 %v5057_v6, 16 }
  0x98   : > { %4245 = vmatmul.mubr.msk.bf16.vlgmr.msra.gmra.mxu1 %vm1904_vm9, %v5036_v29 }
  0x99   : > { %4279 = vmatpush3.bf16.msra.mxu1 %v2519_v23  ;;  %4248 = vmatprep.mubr.msk.bf16.mxu1 %vm1904_vm9, %v5042_v53  ;;  %v2421_v23 = vrot.slane %v5024_v51, 5  ;;  %v2073_v51 = vrot.slane %v2071_v5, 4  ;;  %v2424_v5 = vrot.slane %v1838_v8, 5  ;;  %v5185_v8 = vsel %vm4761_vm7, %v1706_v22, %v1707_v48 }
  0x9a   : > { %4417 = vmatprep.subr.msk.bf16.mxu1 %vm1929_vm8, %v5048_v57  ;;  %v2435_v48 = vrot.slane %v5060_v58, 5 }
  0x9b   : > { %v2423_v14 = vrot.slane %v2421_v23, 4 }
  0x9c   : > { %4203 = vmatmul.mubr.msk.bf16.gmra.mxu0 %vm498_vm1, %v3732_v4  ;;  %v2049_v4 = vrot.slane %v2047_v62, 4  ;;  %v2076_v62 = vrot.slane %v2074_v3, 5  ;;  %v2063_v3 = vor.u32 %v2062_v43, %v5135_v49  ;;  %v5176_v43 = vsel %vm4761_vm7, %v3751_v33, %v1704_v35 }
  0x9d   : > { %4226 = vmatprep.mubr.msk.bf16.mxu0 %vm498_vm1, %v4824_v61  ;;  %v2414_v61 = vrot.slane %v5010_v39, 5  ;;  %v2104_v35 = vshll.u32 %v5030_v59, 16 }
  0x9f   : > { %v2416_v39 = vrot.slane %v2414_v61, 4  ;;  %v2415_v12 = vsel %vm4761_vm7, %v3795_v52, %v2414_v61  ;;  %v2077_v52 = vor.u32 %v2076_v62, %v2073_v51  ;;  %v2425_v51 = vsel %vm4761_vm7, %v2423_v14, %v2424_v5 }
  0xa0   : > { %4249 = vmatmul.mubr.msk.bf16.gmra.mxu1 %vm1904_vm9, %v5088_v28  ;;  %v2064_v62 = vrot.slane %v2063_v3, 4  ;;  %v2097_v14 = vrot.slane %v2095_v55, 4  ;;  %v2100_v5 = vrot.slane %v2098_v15, 5  ;;  %v5206_v3 = vrot.slane %v2104_v35, 5 }
  0xa1   : > { %4252 = vmatprep.mubr.msk.bf16.mxu1 %vm1904_vm9, %v5100_v37  ;;  %v2418_v32 = vsel %vm4761_vm7, %v2416_v39, %v2417_v25  ;;  %v1841_v39 = vld [vmem:[%s4997_s27 + $0x20] sm:$0x1]  ;;  %v2428_v25 = vrot.slane %v5030_v59, 5  ;;  %v3798_v55 = vrot.slane %v5057_v6, 9  ;;  %v2442_v35 = vrot.slane %v5068_v50, 5 }
  0xa2   : > { %v2431_v61 = vrot.slane %v1841_v39, 5 }
  0xa3   : > { %v2430_v22 = vrot.slane %v2428_v25, 4 }
  0xa4   : > { %4227 = vmatmul.mubr.msk.bf16.vlgmr.msra.gmra.mxu0 %vm498_vm1, %v4851_v18  ;;  %v2086_v18 = vrot.slane %v2084_v10, 4  ;;  %v5168_v10 = vcombine.low %v5145_v24, %v5152_v16 }
  0xa5   : > { %4261 = vmatpush3.bf16.msra.mxu0 %v2289_v30  ;;  %4230 = vmatprep.mubr.msk.bf16.mxu0 %vm498_vm1, %v4856_v27  ;;  %v2053_v27 = vor.u32 %v2052_v56, %v2049_v4  ;;  %v2066_v30 = vshll.u32 %v1835_v40, 16  ;;  %v2422_v40 = vsel %vm4761_vm7, %v3796_v41, %v2421_v23  ;;  %v3804_v4 = vcombine.low %v2415_v12, %v2418_v32  ;;  %v5197_v32 = vld [vmem:[%s4997_s27 + $0x2c] sm:$0x1] }
  0xa6   : > { %4416 = vmatprep.subr.msk.bf16.mxu0 %vm1929_vm8, %v5140_v42  ;;  %v2087_v56 = vor.u32 %v2086_v18, %v5155_v0  ;;  %v2092_v23 = vrot.slane %v2090_v34, 5  ;;  %v2078_v41 = vrot.slane %v2077_v52, 4  ;;  %v3797_v18 = vrot.slane %v5027_v60, 9 }
  0xa7   : > { %v2054_v33 = vrot.slane %v2053_v27, 4  ;;  %v2068_v63 = vrot.slane %v2066_v30, 5  ;;  %v3753_v27 = vcombine.low %v5176_v43, %v5185_v8  ;;  %v5210_v30 = vcombine.low %v2422_v40, %v2425_v51 }
  0xa8   : > { %4253 = vmatmul.mubr.msk.bf16.gmra.mxu1 %vm1904_vm9, %v5112_v11  ;;  %v2088_v12 = vrot.slane %v2087_v56, 4  ;;  %v2083_v15 = vsel %vm4580_vm4, %v2078_v41, %v5155_v0  ;;  %v2429_v59 = vsel %vm4761_vm7, %v3797_v18, %v2428_v25  ;;  %v2438_v52 = vrot.slane %v5197_v32, 5 }
  0xa9   : > { %4256 = vmatprep.mubr.msk.bf16.mxu1 %vm1904_vm9, %v5123_v46  ;;  %v2059_v34 = vsel %vm4580_vm4, %v2054_v33, %v5135_v49  ;;  %v2069_v60 = vsel %vm4580_vm4, %v2064_v62, %v2068_v63  ;;  %v2432_v63 = vsel %vm4761_vm7, %v2430_v22, %v2431_v61  ;;  %v2101_v40 = vor.u32 %v2100_v5, %v2097_v14 }
  0xaa   : > { %v2093_v49 = vsel %vm4580_vm4, %v2088_v12, %v2092_v23  ;;  %v2128_v56 = vshll.u32 %v5060_v58, 16  ;;  %v2793_v0 = vsel %vm1929_vm8, %v5048_v57, 0  ;;  %v2114_v51 = vshll.u32 %v1841_v39, 16  ;;  %v1847_v23 = vld [vmem:[%s4997_s27 + $0x38] sm:$0x1] }
  0xab   : > { %v3779_v33 = vcombine.low %v2059_v34, %v2069_v60  ;;  %v2121_v62 = vrot.slane %v2119_v31, 4  ;;  %v2124_v61 = vrot.slane %v2122_v2, 5  ;;  %v5245_v57 = vcombine.low %v2083_v15, %v2093_v49  ;;  %v5271_v58 = vld [vmem:[%s4997_s27 + $0x44] sm:$0x1] }
  0xac   : > { %4231 = vmatmul.mubr.msk.bf16.gmra.mxu0 %vm498_vm1, %v4880_v17  ;;  %v2228_v17 = vshrl.u32 %v5152_v16, 16  ;;  %v5247_v41 = vcombine.low %v2429_v59, %v2432_v63  ;;  %v2152_v18 = vshll.u32 %v5068_v50, 16  ;;  %v2102_v31 = vrot.slane %v2101_v40, 4 }
  0xad   : > { %4234 = vmatprep.mubr.msk.bf16.mxu0 %vm498_vm1, %v4884_v26  ;;  %v2110_v26 = vrot.slane %v2108_v13, 4  ;;  %v2437_v13 = vrot.slane %v2435_v48, 4  ;;  %v5254_v6 = vrot.slane %v2128_v56, 5  ;;  %v2134_v2 = vrot.slane %v2132_v38, 4 }
  0xae   : > { %v2116_v12 = vrot.slane %v2114_v51, 5  ;;  %v2444_v22 = vrot.slane %v2442_v35, 4  ;;  %v2445_v14 = vrot.slane %v1847_v23, 5  ;;  %v2138_v34 = vshll.u32 %v5197_v32, 16 }
  0xaf   : > { %v2111_v25 = vor.u32 %v2110_v26, %v5206_v3  ;;  %v2439_v39 = vsel %vm4761_vm7, %v2437_v13, %v2438_v52  ;;  %v2125_v26 = vor.u32 %v2124_v61, %v2121_v62  ;;  %v2449_v60 = vrot.slane %v5080_v20, 5 }
  0xb0   : > { %4257 = vmatmul.mubr.msk.bf16.gmra.mxu1 %vm1904_vm9, %v5168_v10  ;;  %v2145_v38 = vrot.slane %v2143_v9, 4  ;;  %v5277_v15 = vrot.slane %v2152_v18, 5  ;;  %v5990_v32 = vshrl.u32 %v5068_v50, 16  ;;  %v2645_v13 = vsel %vm1929_vm8, %v5140_v42, 0 }
  0xb1   : > { %4280 = vmatprep.mubr.msk.bf16.mxu1 %vm1904_vm9, %v3804_v4  ;;  %v2436_v4 = vsel %vm4761_vm7, %v3798_v55, %v2435_v48  ;;  %v2112_v48 = vrot.slane %v2111_v25, 4  ;;  %v2148_v55 = vrot.slane %v2146_v7, 5  ;;  %v2107_v9 = vsel %vm4580_vm4, %v2102_v31, %v5206_v3 }
  0xb2   : > { %v5259_v5 = vcombine.low %v2436_v4, %v2439_v39  ;;  %v2158_v59 = vrot.slane %v5990_v32, 4  ;;  %v2446_v52 = vsel %vm4761_vm7, %v2444_v22, %v2445_v14  ;;  %v3800_v42 = vrot.slane %v5071_v19, 9 }
  0xb3   : > { %v2117_v50 = vsel %vm4580_vm4, %v2112_v48, %v2116_v12  ;;  %v2456_v49 = vrot.slane %v5103_v21, 5  ;;  %v2140_v63 = vrot.slane %v2138_v34, 5  ;;  %v2451_v3 = vrot.slane %v2449_v60, 4 }
  0xb4   : > { %4235 = vmatmul.mubr.msk.bf16.gmra.mxu0 %vm498_vm1, %v4902_v47  ;;  %v3799_v47 = vrot.slane %v5063_v1, 9  ;;  %v2135_v1 = vor.u32 %v2134_v2, %v5254_v6  ;;  %v2452_v40 = vrot.slane %v5271_v58, 5  ;;  %v2162_v56 = vshll.u32 %v1847_v23, 16 }
  0xb5   : > { %4238 = vmatprep.mubr.msk.bf16.mxu0 %vm498_vm1, %v4937_v45  ;;  %v5266_v45 = vld [vmem:[%s5983_s3 + $0x18] sm:$0xf]  ;;  %v2126_v25 = vrot.slane %v2125_v26, 4  ;;  %v2149_v51 = vor.u32 %v2148_v55, %v2145_v38  ;;  %v2176_v4 = vshll.u32 %v5080_v20, 16  ;;  %v5310_v62 = vcombine.low %v2107_v9, %v2117_v50 }
  0xb6   : > { %v2443_v7 = vsel %vm4761_vm7, %v3799_v47, %v2442_v35  ;;  %v2159_v35 = vor.u32 %v2158_v59, %v5277_v15  ;;  %v2136_v61 = vrot.slane %v2135_v1, 4  ;;  %v3801_v23 = vrot.slane %v5091_v44, 9 }
  0xb7   : > { %v5312_v39 = vcombine.low %v2443_v7, %v2446_v52  ;;  %v2450_v43 = vsel %vm4761_vm7, %v3800_v42, %v2449_v60  ;;  %v2458_v8 = vrot.slane %v2456_v49, 4  ;;  %v2200_v18 = vshll.u32 %v5103_v21, 16 }
  0xb8   : > { %4281 = vmatmul.mubr.msk.bf16.vlgmr.msra.gmra.mxu1 %vm1904_vm9, %v5210_v30  ;;  %v2453_v31 = vsel %vm4761_vm7, %v2451_v3, %v2452_v40  ;;  %v5991_v2 = vshrl.u32 %v5071_v19, 16  ;;  %v5992_v48 = vshll.u32 %v5071_v19, 16  ;;  %v2150_v22 = vrot.slane %v2149_v51, 4 }
  0xb9   : > { %4315 = vmatpush3.bf16.msra.mxu1 %v2793_v0  ;;  %4284 = vmatprep.mubr.msk.bf16.mxu1 %vm1904_vm9, %v5247_v41  ;;  %v5301_v0 = vld [vmem:[%s4997_s27 + $0x50] sm:$0x1]  ;;  %v2160_v14 = vrot.slane %v2159_v35, 4  ;;  %v2178_v26 = vrot.slane %v2176_v4, 5  ;;  %v5993_v34 = vshrl.u32 %v5080_v20, 16  ;;  %v2131_v38 = vsel %vm4580_vm4, %v2126_v25, %v5254_v6 }
  0xba   : > { %4419 = vmatprep.subr.msk.bf16.mxu1 %vm1929_vm8, %v5266_v45  ;;  %v2169_v47 = vrot.slane %v5991_v2, 4  ;;  %v2172_v12 = vrot.slane %v5992_v48, 5  ;;  %v2457_v19 = vsel %vm4761_vm7, %v3801_v23, %v2456_v49  ;;  %v2463_v55 = vrot.slane %v5152_v16, 5  ;;  %v1856_v20 = vld [vmem:[%s4997_s27 + $0x5c] sm:$0x1] }
  0xbb   : > { %v2182_v60 = vrot.slane %v5993_v34, 4  ;;  %v5994_v32 = vshrl.u32 %v5091_v44, 16  ;;  %v5995_v1 = vshll.u32 %v5091_v44, 16  ;;  %v2202_v50 = vrot.slane %v2200_v18, 5 }
  0xbc   : > { %4239 = vmatmul.mubr.msk.bf16.gmra.mxu0 %vm498_vm1, %v3753_v27  ;;  %v2459_v27 = vrot.slane %v5301_v0, 5  ;;  %v5996_v6 = vshrl.u32 %v5103_v21, 16  ;;  %v2141_v42 = vsel %vm4580_vm4, %v2136_v61, %v2140_v63  ;;  %v5348_v49 = vcombine.low %v2450_v43, %v2453_v31 }
  0xbd   : > { %4262 = vmatprep.mubr.msk.bf16.mxu0 %vm1904_vm9, %v3779_v33  ;;  %v2164_v33 = vrot.slane %v2162_v56, 5  ;;  %v2193_v59 = vrot.slane %v5994_v32, 4  ;;  %v2196_v7 = vrot.slane %v5995_v1, 5  ;;  %v2173_v3 = vor.u32 %v2172_v12, %v2169_v47  ;;  %v5354_v56 = vld [vmem:[%s5983_s3 + $0x14] sm:$0xf] }
  0xbe   : > { %v2460_v9 = vsel %vm4761_vm7, %v2458_v8, %v2459_v27  ;;  %v2206_v52 = vrot.slane %v5996_v6, 4  ;;  %v2186_v40 = vshll.u32 %v5271_v58, 16  ;;  %v2155_v44 = vsel %vm4580_vm4, %v2150_v22, %v5277_v15 }
  0xbf   : > { %v2165_v21 = vsel %vm4580_vm4, %v2160_v14, %v2164_v33  ;;  %v2183_v63 = vor.u32 %v2182_v60, %v2178_v26  ;;  %v3802_v25 = vrot.slane %v5145_v24, 9  ;;  %v5366_v58 = vcombine.low %v2457_v19, %v2460_v9 }
  0xc0   : > { %4285 = vmatmul.mubr.msk.bf16.gmra.mxu1 %vm1904_vm9, %v5259_v5  ;;  %v2465_v51 = vrot.slane %v2463_v55, 4  ;;  %v2466_v35 = vrot.slane %v1856_v20, 5  ;;  %v2224_v4 = vshll.u32 %v5152_v16, 16  ;;  %v2197_v61 = vor.u32 %v2196_v7, %v2193_v59 }
  0xc1   : > { %4288 = vmatprep.mubr.msk.bf16.mxu1 %vm1904_vm9, %v5312_v39  ;;  %v2207_v23 = vor.u32 %v2206_v52, %v2202_v50  ;;  %v2210_v15 = vshll.u32 %v5301_v0, 16  ;;  %v5372_v43 = vcombine.low %v2131_v38, %v2141_v42  ;;  %v2174_v8 = vrot.slane %v2173_v3, 4  ;;  %v5423_v3 = vld [vmem:[%s4997_s27 + $0x60] sm:$0xf] }
  0xc2   : > { %v5376_v27 = vcombine.low %v2155_v44, %v2165_v21  ;;  %v2184_v18 = vrot.slane %v2183_v63, 4  ;;  %v2464_v31 = vsel %vm4761_vm7, %v3802_v25, %v2463_v55  ;;  %v5997_v33 = vshrl.u32 %v5145_v24, 16  ;;  %v5431_v44 = vld [vmem:[%s5983_s3 + $0x20] sm:$0xf] }
  0xc3   : > { %v2467_v0 = vsel %vm4761_vm7, %v2465_v51, %v2466_v35  ;;  %v5998_v47 = vshll.u32 %v5145_v24, 16  ;;  %v2226_v12 = vrot.slane %v2224_v4, 5  ;;  %v2230_v22 = vrot.slane %v2228_v17, 4 }
  0xc4   : > { %4263 = vmatmul.mubr.msk.bf16.vlgmr.msra.gmra.mxu0 %vm1904_vm9, %v5245_v57  ;;  %v2217_v2 = vrot.slane %v5997_v33, 4  ;;  %v2198_v14 = vrot.slane %v2197_v61, 4  ;;  %v2208_v34 = vrot.slane %v2207_v23, 4  ;;  %v2212_v60 = vrot.slane %v2210_v15, 5 }
  0xc5   : > { %4297 = vmatpush3.bf16.msra.mxu0 %v2645_v13  ;;  %4266 = vmatprep.mubr.msk.bf16.mxu0 %vm1904_vm9, %v5310_v62  ;;  %v2188_v13 = vrot.slane %v2186_v40, 5  ;;  %v2220_v48 = vrot.slane %v5998_v47, 5  ;;  %v2179_v38 = vsel %vm4580_vm4, %v2174_v8, %v2178_v26  ;;  %v5394_v19 = vcombine.low %v2464_v31, %v2467_v0  ;;  %v5426_v40 = vld [vmem:[%s4997_s27 + $0x64] sm:$0xf] }
  0xc6   : > { %4418 = vmatprep.subr.msk.bf16.mxu0 %vm1929_vm8, %v5354_v56  ;;  %v2231_v16 = vor.u32 %v2230_v22, %v2226_v12  ;;  %v2234_v17 = vshll.u32 %v1856_v20, 16  ;;  %v2203_v32 = vsel %vm4580_vm4, %v2198_v14, %v2202_v50  ;;  %v2213_v59 = vsel %vm4580_vm4, %v2208_v34, %v2212_v60  ;;  %v5464_v22 = vld [vmem:[%s5983_s3 + $0x1c] sm:$0xf] }
  0xc7   : > { %v2189_v24 = vsel %vm4580_vm4, %v2184_v18, %v2188_v13  ;;  %v2221_v55 = vor.u32 %v2220_v48, %v2217_v2  ;;  %v5408_v9 = vcombine.low %v2203_v32, %v2213_v59  ;;  %v3051_v42 = vsel %vm1929_vm8, %v5266_v45, 0  ;;  %v5450_v18 = vld [vmem:[%s4997_s27 + $0x68] sm:$0x1] }
  0xc8   : > { %4289 = vmatmul.mubr.msk.bf16.gmra.mxu1 %vm1904_vm9, %v5348_v49  ;;  %v5404_v26 = vcombine.low %v2179_v38, %v2189_v24  ;;  %v2232_v7 = vrot.slane %v2231_v16, 4  ;;  %v2236_v6 = vrot.slane %v2234_v17, 5  ;;  %v2761_v45 = vshrl.u32 %v5423_v3, 16 }
  0xc9   : > { %4292 = vmatprep.mubr.msk.bf16.mxu1 %vm1904_vm9, %v5366_v58  ;;  %v2222_v1 = vrot.slane %v2221_v55, 4  ;;  %v2764_v25 = vshll.u32 %v5423_v3, 16  ;;  %v2770_v51 = vshll.u32 %v5426_v40, 16  ;;  %v2774_v35 = vshrl.u32 %v5426_v40, 16 }
  0xca   : > { %v2237_v50 = vsel %vm4580_vm4, %v2232_v7, %v2236_v6  ;;  %v2763_v61 = vrot.slane %v2761_v45, 4  ;;  %v2780_v0 = vshll.u32 %v5450_v18, 16 }
  0xcb   : > { %v2227_v20 = vsel %vm4580_vm4, %v2222_v1, %v2226_v12  ;;  %v2766_v23 = vrot.slane %v2764_v25, 5  ;;  %v2772_v15 = vrot.slane %v2770_v51, 5  ;;  %v2776_v8 = vrot.slane %v2774_v35, 4 }
  0xcc   : > { %4267 = vmatmul.mubr.msk.bf16.gmra.mxu0 %vm1904_vm9, %v5372_v43  ;;  %v5433_v21 = vcombine.low %v2227_v20, %v2237_v50  ;;  %v2782_v24 = vrot.slane %v2780_v0, 5 }
  0xcd   : > { %4270 = vmatprep.mubr.msk.bf16.mxu0 %vm1904_vm9, %v5376_v27  ;;  %v2767_v33 = vor.u32 %v2766_v23, %v2763_v61  ;;  %v2777_v2 = vor.u32 %v2776_v8, %v2772_v15 }
  0xcf   : > { %v2778_v38 = vrot.slane %v2777_v2, 4  ;;  %v3331_v2 = vsel %vm1929_vm8, %v5431_v44, 0 }
  0xd0   : > { %4293 = vmatmul.mubr.msk.bf16.gmra.mxu1 %vm1904_vm9, %v5394_v19 }
  0xd1   : > { %4316 = vmatprep.mubr.msk.bf16.mxu1 %vm1904_vm9, %v5245_v57  ;;  %v2783_v6 = vsel %vm4580_vm4, %v2778_v38, %v2782_v24 }
  0xd4   : > { %4271 = vmatmul.mubr.msk.bf16.gmra.mxu0 %vm1904_vm9, %v5404_v26 }
  0xd5   : > { %4274 = vmatprep.mubr.msk.bf16.mxu0 %vm1904_vm9, %v5408_v9 }
  0xd6   : > { %v4102_v52 = vpop.f32.mrf.mxu1 }
  0xd8   : > { %v725_v57 = vpop.f32.mrf.mxu1  ;;  %4317 = vmatmul.mubr.msk.bf16.vlgmr.msra.gmra.mxu1 %vm1904_vm9, %v5310_v62 }
  0xd9   : > { %4351 = vmatpush3.bf16.msra.mxu1 %v3051_v42  ;;  %4320 = vmatprep.mubr.msk.bf16.mxu1 %vm1904_vm9, %v5372_v43 }
  0xda   : > { %v4103_v63 = vpop.f32.mrf.mxu1  ;;  %4421 = vmatprep.subr.msk.bf16.mxu1 %vm1929_vm8, %v5431_v44 }
  0xdc   : > { %v728_v4 = vpop.f32.mrf.mxu1  ;;  %4275 = vmatmul.mubr.msk.bf16.gmra.mxu0 %vm1904_vm9, %v5433_v21 }
  0xdd   : > { %4298 = vmatprep.mubr.msk.bf16.mxu0 %vm1904_vm9, %v5036_v29  ;;  %v2925_v29 = vsel %vm1929_vm8, %v5354_v56, 0  ;;  %v2768_v56 = vrot.slane %v2767_v33, 4 }
  0xde   : > { %v4106_v13 = vpop.f32.mrf.mxu1 }
  0xdf   : > { %v2773_v7 = vsel %vm4580_vm4, %v2768_v56, %v2772_v15 }
  0xe0   : > { %4321 = vmatmul.mubr.msk.bf16.gmra.mxu1 %vm1904_vm9, %v5376_v27  ;;  %v741_v31 = vpop.f32.mrf.mxu1 }
  0xe1   : > { %4324 = vmatprep.mubr.msk.bf16.mxu1 %vm1904_vm9, %v5404_v26 }
  0xe2   : > { %v4084_v47 = vpop.f32.mrf.mxu0  ;;  %v4107_v48 = vpop.f32.mrf.mxu1 }
  0xe3   : > { %v5459_v12 = vadd.f32 %v4102_v52, %v4084_v47 }
  0xe4   : > { %4299 = vmatmul.mubr.msk.bf16.vlgmr.msra.gmra.mxu0 %vm1904_vm9, %v5042_v53  ;;  %v561_v14 = vpop.f32.mrf.mxu0  ;;  %v744_v34 = vpop.f32.mrf.mxu1 }
  0xe5   : > { %4333 = vmatpush3.bf16.msra.mxu0 %v2925_v29  ;;  %v5468_v60 = vadd.f32 %v725_v57, %v561_v14  ;;  %4302 = vmatprep.mubr.msk.bf16.mxu0 %vm1904_vm9, %v5088_v28  ;;  %v5490_v57 = vcombine.low %v2773_v7, %v2783_v6  ;;  %v3199_v6 = vsel %vm1929_vm8, %v5464_v22, 0 }
  0xe6   : > { %v4085_v55 = vpop.f32.mrf.mxu0  ;;  %4420 = vmatprep.subr.msk.bf16.mxu0 %vm1929_vm8, %v5464_v22 }
  0xe7   : > { %v5474_v16 = vadd.f32 %v4103_v63, %v4085_v55  ;;  %v4110_v17 = vpop.f32.mrf.mxu1 }
  0xe8   : > { %v564_v32 = vpop.f32.mrf.mxu0  ;;  %4325 = vmatmul.mubr.msk.bf16.gmra.mxu1 %vm1904_vm9, %v5408_v9 }
  0xe9   : > { %v5478_v59 = vadd.f32 %v728_v4, %v564_v32  ;;  %v757_v1 = vpop.f32.mrf.mxu1  ;;  %4328 = vmatprep.mubr.msk.bf16.mxu1 %vm1904_vm9, %v5433_v21 }
  0xea   : > { %v4088_v20 = vpop.f32.mrf.mxu0 }
  0xeb   : > { %v5486_v50 = vadd.f32 %v4106_v13, %v4088_v20  ;;  %v4111_v52 = vpop.f32.mrf.mxu1 }
  0xec   : > { %4303 = vmatmul.mubr.msk.bf16.gmra.mxu0 %vm1904_vm9, %v5100_v37  ;;  %v577_v42 = vpop.f32.mrf.mxu0 }
  0xed   : > { %v5492_v63 = vadd.f32 %v741_v31, %v577_v42  ;;  %4306 = vmatprep.mubr.msk.bf16.mxu0 %vm1904_vm9, %v5112_v11  ;;  %v760_v45 = vpop.f32.mrf.mxu1 }
  0xee   : > { %v4089_v25 = vpop.f32.mrf.mxu0 }
  0xef   : > { %v5496_v51 = vadd.f32 %v4107_v48, %v4089_v25 }
  0xf0   : > { %v580_v35 = vpop.f32.mrf.mxu0  ;;  %v4114_v4 = vpop.f32.mrf.mxu1  ;;  %4329 = vmatmul.mubr.msk.bf16.gmra.mxu1 %vm1904_vm9, %v5490_v57 }
  0xf1   : > { %v5500_v61 = vadd.f32 %v744_v34, %v580_v35  ;;  %4352 = vmatprep.mubr.msk.bf16.mxu1 %vm1904_vm9, %v5042_v53  ;;  %v3821_v53 = vcombine.low %v5423_v3, %v5426_v40 }
  0xf2   : > { %v773_v23 = vpop.f32.mrf.mxu1 }
  0xf4   : > { %v4092_v15 = vpop.f32.mrf.mxu0  ;;  %4307 = vmatmul.mubr.msk.bf16.gmra.mxu0 %vm1904_vm9, %v5123_v46  ;;  %v4115_v8 = vpop.f32.mrf.mxu1 }
  0xf5   : > { %v5506_v13 = vadd.f32 %v4110_v17, %v4092_v15  ;;  %4310 = vmatprep.mubr.msk.bf16.mxu0 %vm1904_vm9, %v5168_v10  ;;  %v5557_v15 = vld [vmem:[%s4997_s27 + $0x70] sm:$0xf] }
  0xf6   : > { %v593_v31 = vpop.f32.mrf.mxu0  ;;  %v776_v33 = vpop.f32.mrf.mxu1 }
  0xf7   : > { %v5512_v0 = vadd.f32 %v757_v1, %v593_v31 }
  0xf8   : > { %v4093_v47 = vpop.f32.mrf.mxu0  ;;  %v4138_v29 = vpop.f32.mrf.mxu1  ;;  %4353 = vmatmul.mubr.msk.bf16.vlgmr.msra.gmra.mxu1 %vm1904_vm9, %v5088_v28 }
  0xf9   : > { %v5518_v48 = vadd.f32 %v4111_v52, %v4093_v47  ;;  %4387 = vmatpush3.bf16.msra.mxu1 %v3331_v2  ;;  %4356 = vmatprep.mubr.msk.bf16.mxu1 %vm1904_vm9, %v5100_v37 }
  0xfa   : > { %v596_v14 = vpop.f32.mrf.mxu0  ;;  %v1068_v34 = vpop.f32.mrf.mxu1 }
  0xfb   : > { %v5522_v56 = vadd.f32 %v760_v45, %v596_v14 }
  0xfc   : > { %v4096_v44 = vpop.f32.mrf.mxu0  ;;  %4311 = vmatmul.mubr.msk.bf16.gmra.mxu0 %vm1904_vm9, %v3821_v53  ;;  %v4139_v38 = vpop.f32.mrf.mxu1 }
  0xfd   : > { %v5525_v24 = vadd.f32 %v4114_v4, %v4096_v44  ;;  %4334 = vmatprep.mubr.msk.bf16.mxu0 %vm1904_vm9, %v5210_v30 }
  0xfe   : > { %v609_v28 = vpop.f32.mrf.mxu0  ;;  %v1071_v55 = vpop.f32.mrf.mxu1 }
  0xff   : > { %v5529_v17 = vadd.f32 %v773_v23, %v609_v28  ;;  %v2914_v28 = vrot.slane %v5450_v18, 5 }
 0x100   : > { %v4097_v32 = vpop.f32.mrf.mxu0  ;;  %v4142_v1 = vpop.f32.mrf.mxu1  ;;  %4357 = vmatmul.mubr.msk.bf16.gmra.mxu1 %vm1904_vm9, %v5112_v11 }
 0x101   : > { %v5533_v37 = vadd.f32 %v4115_v8, %v4097_v32  ;;  %4360 = vmatprep.mubr.msk.bf16.mxu1 %vm1904_vm9, %v5123_v46 }
 0x102   : > { %v612_v7 = vpop.f32.mrf.mxu0  ;;  %v1084_v20 = vpop.f32.mrf.mxu1 }
 0x103   : > { %v5539_v30 = vadd.f32 %v776_v33, %v612_v7 }
 0x104   : > { %v4120_v52 = vpop.f32.mrf.mxu0  ;;  %4335 = vmatmul.mubr.msk.bf16.vlgmr.msra.gmra.mxu0 %vm1904_vm9, %v5247_v41  ;;  %v4143_v42 = vpop.f32.mrf.mxu1 }
 0x105   : > { %v1007_v11 = vadd.f32 %v4120_v52, %v5459_v12  ;;  %4369 = vmatpush3.bf16.msra.mxu0 %v3199_v6  ;;  %4338 = vmatprep.mubr.msk.bf16.mxu0 %vm1904_vm9, %v5259_v5  ;;  %v5554_v12 = vld [vmem:[%s4997_s27 + $0x6c] sm:$0xf]  ;;  %v3840_v6 = vrot.slane %v5423_v3, 9 }
 0x106   : > { %v942_v46 = vpop.f32.mrf.mxu0  ;;  %v1087_v45 = vpop.f32.mrf.mxu1 }
 0x107   : > { %v1005_v22 = vadd.f32 %v942_v46, %v5468_v60  ;;  %v5547_v25 = vadd.f32 %v4138_v29, %v1007_v11  ;;  %v2911_v29 = vrot.slane %v5426_v40, 5 }
 0x108   : > { %v4121_v35 = vpop.f32.mrf.mxu0  ;;  %v4146_v4 = vpop.f32.mrf.mxu1  ;;  %4361 = vmatmul.mubr.msk.bf16.gmra.mxu1 %vm1904_vm9, %v5168_v10 }
 0x109   : > { %v1008_v23 = vadd.f32 %v4121_v35, %v5474_v16  ;;  %4364 = vmatprep.mubr.msk.bf16.mxu1 %vm1904_vm9, %v3821_v53  ;;  %v5559_v8 = vadd.f32 %v1068_v34, %v1005_v22  ;;  %v3852_v16 = vcombine.low %v5554_v12, %v5557_v15  ;;  %v2913_v52 = vrot.slane %v2911_v29, 4 }
 0x10a   : > { %v945_v31 = vpop.f32.mrf.mxu0  ;;  %v1100_v33 = vpop.f32.mrf.mxu1 }
 0x10b   : > { %v1006_v60 = vadd.f32 %v945_v31, %v5478_v59  ;;  %v5562_v2 = vadd.f32 %v4139_v38, %v1008_v23  ;;  %v2915_v3 = vsel %vm4761_vm7, %v2913_v52, %v2914_v28 }
 0x10c   : > { %v4124_v47 = vpop.f32.mrf.mxu0  ;;  %4339 = vmatmul.mubr.msk.bf16.gmra.mxu0 %vm1904_vm9, %v5312_v39  ;;  %v4147_v10 = vpop.f32.mrf.mxu1 }
 0x10d   : > { %v1011_v53 = vadd.f32 %v4124_v47, %v5486_v50  ;;  %4342 = vmatprep.mubr.msk.bf16.mxu0 %vm1904_vm9, %v5348_v49  ;;  %v5572_v14 = vadd.f32 %v1071_v55, %v1006_v60 }
 0x10e   : > { %v958_v59 = vpop.f32.mrf.mxu0  ;;  %v1103_v34 = vpop.f32.mrf.mxu1 }
 0x10f   : > { %v1009_v44 = vadd.f32 %v958_v59, %v5492_v63  ;;  %v5575_v38 = vadd.f32 %v4142_v1, %v1011_v53 }
 0x110   : > { %v4125_v32 = vpop.f32.mrf.mxu0  ;;  %v4150_v7 = vpop.f32.mrf.mxu1  ;;  %4365 = vmatmul.mubr.msk.bf16.gmra.mxu1 %vm1904_vm9, %v3852_v16 }
 0x111   : > { %v1012_v50 = vadd.f32 %v4125_v32, %v5496_v51  ;;  %4388 = vmatprep.mubr.msk.bf16.mxu1 %vm1904_vm9, %v5247_v41  ;;  %v5583_v40 = vadd.f32 %v1084_v20, %v1009_v44  ;;  %v2912_v41 = vsel %vm4761_vm7, %v3840_v6, %v2911_v29 }
 0x112   : > { %v961_v55 = vpop.f32.mrf.mxu0  ;;  %v1116_v63 = vpop.f32.mrf.mxu1  ;;  %v3842_v31 = vcombine.low %v2912_v41, %v2915_v3 }
 0x113   : > { %v1010_v1 = vadd.f32 %v961_v55, %v5500_v61  ;;  %v5586_v11 = vadd.f32 %v4143_v42, %v1012_v50  ;;  %v1862_v50 = vld [vmem:[%s4997_s27 + $0x74] sm:$0x1]  ;;  %v3871_v55 = vrot.slane %v5554_v12, 9 }
 0x114   : > { %v4128_v18 = vpop.f32.mrf.mxu0  ;;  %4343 = vmatmul.mubr.msk.bf16.gmra.mxu0 %vm1904_vm9, %v5366_v58  ;;  %v4151_v46 = vpop.f32.mrf.mxu1 }
 0x115   : > { %v1015_v51 = vadd.f32 %v4128_v18, %v5506_v13  ;;  %4346 = vmatprep.mubr.msk.bf16.mxu0 %vm1904_vm9, %v5394_v19  ;;  %v5597_v20 = vadd.f32 %v1087_v45, %v1010_v1  ;;  %v3320_v18 = vrot.slane %v1862_v50, 5 }
 0x116   : > { %v974_v61 = vpop.f32.mrf.mxu0  ;;  %v1119_v42 = vpop.f32.mrf.mxu1 }
 0x117   : > { %v1013_v22 = vadd.f32 %v974_v61, %v5512_v0  ;;  %v5600_v35 = vadd.f32 %v4146_v4, %v1015_v51 }
 0x118   : > { %v4129_v23 = vpop.f32.mrf.mxu0  ;;  %v4174_v13 = vpop.f32.mrf.mxu1  ;;  %4389 = vmatmul.mubr.msk.bf16.vlgmr.msra.gmra.mxu1 %vm1904_vm9, %v5259_v5 }
 0x119   : > { %v1016_v60 = vadd.f32 %v4129_v23, %v5518_v48  ;;  %4392 = vmatprep.mubr.msk.bf16.mxu1 %vm1904_vm9, %v5312_v39  ;;  %v5607_v47 = vadd.f32 %v1100_v33, %v1013_v22 }
 0x11a   : > { %v977_v45 = vpop.f32.mrf.mxu0  ;;  %v1348_v16 = vpop.f32.mrf.mxu1 }
 0x11b   : > { %v1014_v53 = vadd.f32 %v977_v45, %v5522_v56  ;;  %v5610_v0 = vadd.f32 %v4147_v10, %v1016_v60 }
 0x11c   : > { %v4132_v4 = vpop.f32.mrf.mxu0  ;;  %4347 = vmatmul.mubr.msk.bf16.gmra.mxu0 %vm1904_vm9, %v3842_v31  ;;  %v4175_v29 = vpop.f32.mrf.mxu1 }
 0x11d   : > { %v1019_v59 = vadd.f32 %v4132_v4, %v5525_v24  ;;  %4370 = vmatprep.mubr.msk.bf16.mxu0 %vm1904_vm9, %v5310_v62  ;;  %v5616_v5 = vadd.f32 %v1103_v34, %v1014_v53  ;;  %v3317_v62 = vrot.slane %v5557_v15, 5 }
 0x11e   : > { %v990_v39 = vpop.f32.mrf.mxu0  ;;  %v1351_v48 = vpop.f32.mrf.mxu1 }
 0x11f   : > { %v1017_v33 = vadd.f32 %v990_v39, %v5529_v17  ;;  %v5619_v44 = vadd.f32 %v4150_v7, %v1019_v59  ;;  %v3167_v17 = vshrl.u32 %v5554_v12, 16  ;;  %v3186_v59 = vshll.u32 %v1862_v50, 16 }
 0x120   : > { %v4133_v56 = vpop.f32.mrf.mxu0  ;;  %v4178_v10 = vpop.f32.mrf.mxu1  ;;  %4393 = vmatmul.mubr.msk.bf16.gmra.mxu1 %vm1904_vm9, %v5348_v49  ;;  %v3170_v49 = vshll.u32 %v5554_v12, 16 }
 0x121   : > { %v1020_v28 = vadd.f32 %v4133_v56, %v5533_v37  ;;  %4396 = vmatprep.mubr.msk.bf16.mxu1 %vm1904_vm9, %v5366_v58  ;;  %v5627_v24 = vadd.f32 %v1116_v63, %v1017_v33  ;;  %v3180_v37 = vshrl.u32 %v5557_v15, 16  ;;  %v3176_v63 = vshll.u32 %v5557_v15, 16 }
 0x122   : > { %v993_v34 = vpop.f32.mrf.mxu0  ;;  %v1364_v32 = vpop.f32.mrf.mxu1  ;;  %v3169_v12 = vrot.slane %v3167_v17, 4 }
 0x123   : > { %v1018_v7 = vadd.f32 %v993_v34, %v5539_v30  ;;  %v5632_v6 = vadd.f32 %v4151_v46, %v1020_v28  ;;  %v3319_v30 = vrot.slane %v3317_v62, 4  ;;  %v3178_v15 = vrot.slane %v3176_v63, 5 }
 0x124   : > { %v4156_v52 = vpop.f32.mrf.mxu0  ;;  %4371 = vmatmul.mubr.msk.bf16.vlgmr.msra.gmra.mxu0 %vm1904_vm9, %v5372_v43  ;;  %v4179_v58 = vpop.f32.mrf.mxu1  ;;  %v3182_v23 = vrot.slane %v3180_v37, 4  ;;  %v3188_v34 = vrot.slane %v3186_v59, 5 }
 0x125   : > { %v1281_v1 = vadd.f32 %v4156_v52, %v5547_v25  ;;  %4374 = vmatprep.mubr.msk.bf16.mxu0 %vm1904_vm9, %v5376_v27  ;;  %v5643_v46 = vadd.f32 %v1119_v42, %v1018_v7  ;;  %v3172_v25 = vrot.slane %v3170_v49, 5  ;;  %v3318_v42 = vsel %vm4761_vm7, %v3871_v55, %v3317_v62 }
 0x126   : > { %v1216_v51 = vpop.f32.mrf.mxu0  ;;  %v1367_v41 = vpop.f32.mrf.mxu1 }
 0x127   : > { %v1279_v3 = vadd.f32 %v1216_v51, %v5559_v8  ;;  %v5646_v61 = vadd.f32 %v4174_v13, %v1281_v1  ;;  %v3321_v8 = vsel %vm4761_vm7, %v3319_v30, %v3320_v18  ;;  %v3173_v54 = vor.u32 %v3172_v25, %v3169_v12 }
 0x128   : > { %v4157_v43 = vpop.f32.mrf.mxu0  ;;  %v4182_v22 = vpop.f32.mrf.mxu1  ;;  %4397 = vmatmul.mubr.msk.bf16.gmra.mxu1 %vm1904_vm9, %v5394_v19 }
 0x129   : > { %v1282_v27 = vadd.f32 %v4157_v43, %v5562_v2  ;;  %4400 = vmatprep.mubr.msk.bf16.mxu1 %vm1904_vm9, %v3842_v31  ;;  %v5656_v13 = vadd.f32 %v1348_v16, %v1279_v3  ;;  %v3873_v31 = vcombine.low %v3318_v42, %v3321_v8  ;;  %v3183_v16 = vor.u32 %v3182_v23, %v3178_v15 }
 0x12a   : > { %v1219_v60 = vpop.f32.mrf.mxu0  ;;  %v1380_v45 = vpop.f32.mrf.mxu1  ;;  %v3174_v50 = vrot.slane %v3173_v54, 4 }
 0x12b   : > { %v1280_v19 = vadd.f32 %v1219_v60, %v5572_v14  ;;  %v5659_v53 = vadd.f32 %v4175_v29, %v1282_v27  ;;  %v3184_v17 = vrot.slane %v3183_v16, 4 }
 0x12c   : > { %v4160_v4 = vpop.f32.mrf.mxu0  ;;  %4375 = vmatmul.mubr.msk.bf16.gmra.mxu0 %vm1904_vm9, %v5404_v26  ;;  %v4183_v2 = vpop.f32.mrf.mxu1 }
 0x12d   : > { %v1285_v39 = vadd.f32 %v4160_v4, %v5575_v38  ;;  %4378 = vmatprep.mubr.msk.bf16.mxu0 %vm1904_vm9, %v5408_v9  ;;  %v5666_v33 = vadd.f32 %v1351_v48, %v1280_v19 }
 0x12e   : > { %v1232_v56 = vpop.f32.mrf.mxu0  ;;  %v1383_v14 = vpop.f32.mrf.mxu1 }
 0x12f   : > { %v1283_v29 = vadd.f32 %v1232_v56, %v5583_v40  ;;  %v5669_v28 = vadd.f32 %v4178_v10, %v1285_v39 }
 0x130   : > { %v4161_v62 = vpop.f32.mrf.mxu0  ;;  %v4186_v26 = vpop.f32.mrf.mxu1  ;;  %4401 = vmatmul.mubr.msk.bf16.gmra.mxu1 %vm1904_vm9, %v3873_v31 }
 0x131   : > { %v1286_v38 = vadd.f32 %v4161_v62, %v5586_v11  ;;  %v5673_v9 = vadd.f32 %v1364_v32, %v1283_v29  ;;  %v3179_v11 = vsel %vm4580_vm4, %v3174_v50, %v3178_v15  ;;  %v3189_v32 = vsel %vm4580_vm4, %v3184_v17, %v3188_v34 }
 0x132   : > { %v1235_v7 = vpop.f32.mrf.mxu0  ;;  %v1396_v48 = vpop.f32.mrf.mxu1 }
 0x133   : > { %v1284_v49 = vadd.f32 %v1235_v7, %v5597_v20  ;;  %v5676_v37 = vadd.f32 %v4179_v58, %v1286_v38 }
 0x134   : > { %v4164_v40 = vpop.f32.mrf.mxu0  ;;  %4379 = vmatmul.mubr.msk.bf16.gmra.mxu0 %vm1904_vm9, %v5433_v21  ;;  %v4187_v10 = vpop.f32.mrf.mxu1  ;;  %v3862_v21 = vcombine.low %v3179_v11, %v3189_v32 }
 0x135   : > { %v1289_v52 = vadd.f32 %v4164_v40, %v5600_v35  ;;  %4382 = vmatprep.mubr.msk.bf16.mxu0 %vm1904_vm9, %v5490_v57  ;;  %v1416_v55 = vadd.f32 %v1367_v41, %v1284_v49 }
 0x136   : > { %v1248_v20 = vpop.f32.mrf.mxu0  ;;  %v1399_v58 = vpop.f32.mrf.mxu1 }
 0x137   : > { %v1287_v63 = vadd.f32 %v1248_v20, %v5607_v47  ;;  %v1421_v1 = vadd.f32 %v4182_v22, %v1289_v52 }
 0x138   : > { %v4165_v30 = vpop.f32.mrf.mxu0  ;;  %v4210_v18 = vpop.f32.mrf.mxu1 }
 0x139   : > { %v1290_v35 = vadd.f32 %v4165_v30, %v5610_v0  ;;  %v1419_v51 = vadd.f32 %v1380_v45, %v1287_v63 }
 0x13a   : > { %v1251_v3 = vpop.f32.mrf.mxu0  ;;  %v1622_v57 = vpop.f32.mrf.mxu1 }
 0x13b   : > { %v1288_v43 = vadd.f32 %v1251_v3, %v5616_v5  ;;  %v1422_v12 = vadd.f32 %v4183_v2, %v1290_v35 }
 0x13c   : > { %v4168_v25 = vpop.f32.mrf.mxu0  ;;  %4383 = vmatmul.mubr.msk.bf16.gmra.mxu0 %vm1904_vm9, %v3862_v21  ;;  %v4211_v36 = vpop.f32.mrf.mxu1 }
 0x13d   : > { %v1293_v41 = vadd.f32 %v4168_v25, %v5619_v44  ;;  %v1420_v15 = vadd.f32 %v1383_v14, %v1288_v43 }
 0x13e   : > { %v1264_v47 = vpop.f32.mrf.mxu0  ;;  %v1625_v22 = vpop.f32.mrf.mxu1 }
 0x13f   : > { %v1291_v23 = vadd.f32 %v1264_v47, %v5627_v24  ;;  %v1425_v27 = vadd.f32 %v4186_v26, %v1293_v41 }
 0x140   : > { %v4169_v42 = vpop.f32.mrf.mxu0  ;;  %v4214_v0 = vpop.f32.mrf.mxu1 }
 0x141   : > { %v1294_v8 = vadd.f32 %v4169_v42, %v5632_v6  ;;  %v1423_v60 = vadd.f32 %v1396_v48, %v1291_v23 }
 0x142   : > { %v1267_v45 = vpop.f32.mrf.mxu0  ;;  %v1638_v5 = vpop.f32.mrf.mxu1 }
 0x143   : > { %v1292_v19 = vadd.f32 %v1267_v45, %v5643_v46  ;;  %v1426_v4 = vadd.f32 %v4187_v10, %v1294_v8 }
 0x144   : > { %v4192_v2 = vpop.f32.mrf.mxu0  ;;  %v4215_v31 = vpop.f32.mrf.mxu1 }
 0x145   : > { %v1539_v44 = vadd.f32 %v4192_v2, %v5646_v61  ;;  %v1424_v59 = vadd.f32 %v1399_v58, %v1292_v19 }
 0x146   : > { %v1474_v39 = vpop.f32.mrf.mxu0  ;;  %v1641_v54 = vpop.f32.mrf.mxu1 }
 0x147   : > { %v1537_v24 = vadd.f32 %v1474_v39, %v5656_v13  ;;  %v1687_v16 = vadd.f32 %v4210_v18, %v1539_v44 }
 0x148   : > { %v4193_v56 = vpop.f32.mrf.mxu0  ;;  %v4218_v14 = vpop.f32.mrf.mxu1 }
 0x149   : > { %v1540_v6 = vadd.f32 %v4193_v56, %v5659_v53  ;;  %v1685_v29 = vadd.f32 %v1622_v57, %v1537_v24 }
 0x14a   : > { %v1477_v62 = vpop.f32.mrf.mxu0  ;;  %v1654_v26 = vpop.f32.mrf.mxu1 }
 0x14b   : > { %v1538_v46 = vadd.f32 %v1477_v62, %v5666_v33  ;;  %v1688_v34 = vadd.f32 %v4211_v36, %v1540_v6 }
 0x14c   : > { %v4196_v38 = vpop.f32.mrf.mxu0  ;;  %v4219_v50 = vpop.f32.mrf.mxu1 }
 0x14d   : > { %v1543_v61 = vadd.f32 %v4196_v38, %v5669_v28  ;;  %v1686_v17 = vadd.f32 %v1625_v22, %v1538_v46 }
 0x14e   : > { %v1490_v7 = vpop.f32.mrf.mxu0  ;;  %v1657_v48 = vpop.f32.mrf.mxu1 }
 0x14f   : > { %v1541_v13 = vadd.f32 %v1490_v7, %v5673_v9  ;;  %v1691_v49 = vadd.f32 %v4214_v0, %v1543_v61 }
 0x150   : > { %v4197_v40 = vpop.f32.mrf.mxu0  ;;  %v4222_v10 = vpop.f32.mrf.mxu1 }
 0x151   : > { %v1544_v53 = vadd.f32 %v4197_v40, %v5676_v37  ;;  %v1689_v52 = vadd.f32 %v1638_v5, %v1541_v13 }
 0x152   : > { %v1493_v11 = vpop.f32.mrf.mxu0  ;;  %v1670_v32 = vpop.f32.mrf.mxu1 }
 0x153   : > { %v1542_v20 = vadd.f32 %v1493_v11, %v1416_v55  ;;  %v1692_v33 = vadd.f32 %v4215_v31, %v1544_v53 }
 0x154   : > { %v4200_v58 = vpop.f32.mrf.mxu0  ;;  %v4223_v63 = vpop.f32.mrf.mxu1 }
 0x155   : > { %v1547_v30 = vadd.f32 %v4200_v58, %v1421_v1  ;;  %v1690_v21 = vadd.f32 %v1641_v54, %v1542_v20 }
 0x156   : > { %v1506_v28 = vpop.f32.mrf.mxu0  ;;  %v1673_v18 = vpop.f32.mrf.mxu1 }
 0x157   : > { %v1545_v35 = vadd.f32 %v1506_v28, %v1419_v51  ;;  %v1695_v3 = vadd.f32 %v4218_v14, %v1547_v30 }
 0x158   : > { %v4201_v57 = vpop.f32.mrf.mxu0  ;;  %v4246_v9 = vpop.f32.mrf.mxu1 }
 0x159   : > { %v1548_v43 = vadd.f32 %v4201_v57, %v1422_v12  ;;  %v1693_v25 = vadd.f32 %v1654_v26, %v1545_v35 }
 0x15a   : > { %v1509_v36 = vpop.f32.mrf.mxu0  ;;  %v1967_v41 = vpop.f32.mrf.mxu1 }
 0x15b   : > { %v1546_v37 = vadd.f32 %v1509_v36, %v1420_v15  ;;  %v1696_v47 = vadd.f32 %v4219_v50, %v1548_v43 }
 0x15c   : > { %v4204_v22 = vpop.f32.mrf.mxu0  ;;  %v4247_v23 = vpop.f32.mrf.mxu1 }
 0x15d   : > { %v1551_v55 = vadd.f32 %v4204_v22, %v1425_v27  ;;  %v1694_v42 = vadd.f32 %v1657_v48, %v1546_v37 }
 0x15e   : > { %v1522_v0 = vpop.f32.mrf.mxu0  ;;  %v1970_v8 = vpop.f32.mrf.mxu1 }
 0x15f   : > { %v1549_v1 = vadd.f32 %v1522_v0, %v1423_v60  ;;  %v1699_v45 = vadd.f32 %v4222_v10, %v1551_v55 }
 0x160   : > { %v4205_v5 = vpop.f32.mrf.mxu0  ;;  %v4250_v19 = vpop.f32.mrf.mxu1 }
 0x161   : > { %v1552_v51 = vadd.f32 %v4205_v5, %v1426_v4  ;;  %v1697_v2 = vadd.f32 %v1670_v32, %v1549_v1 }
 0x162   : > { %v1525_v31 = vpop.f32.mrf.mxu0  ;;  %v1983_v44 = vpop.f32.mrf.mxu1 }
 0x163   : > { %v1550_v12 = vadd.f32 %v1525_v31, %v1424_v59  ;;  %v1700_v39 = vadd.f32 %v4223_v63, %v1552_v51 }
 0x164   : > { %v4228_v54 = vpop.f32.mrf.mxu0  ;;  %v4251_v24 = vpop.f32.mrf.mxu1 }
 0x165   : > { %v1819_v15 = vadd.f32 %v4228_v54, %v1687_v16  ;;  %v1698_v56 = vadd.f32 %v1673_v18, %v1550_v12 }
 0x166   : > { %v1754_v14 = vpop.f32.mrf.mxu0  ;;  %v1986_v6 = vpop.f32.mrf.mxu1 }
 0x167   : > { %v1817_v27 = vadd.f32 %v1754_v14, %v1685_v29  ;;  %v2032_v62 = vadd.f32 %v4246_v9, %v1819_v15 }
 0x168   : > { %v4229_v26 = vpop.f32.mrf.mxu0  ;;  %v4254_v46 = vpop.f32.mrf.mxu1 }
 0x169   : > { %v1820_v60 = vadd.f32 %v4229_v26, %v1688_v34  ;;  %v2030_v38 = vadd.f32 %v1967_v41, %v1817_v27 }
 0x16a   : > { %v1757_v50 = vpop.f32.mrf.mxu0  ;;  %v1999_v61 = vpop.f32.mrf.mxu1 }
 0x16b   : > { %v1818_v4 = vadd.f32 %v1757_v50, %v1686_v17  ;;  %v2033_v7 = vadd.f32 %v4247_v23, %v1820_v60 }
 0x16c   : > { %v4232_v48 = vpop.f32.mrf.mxu0  ;;  %v4255_v13 = vpop.f32.mrf.mxu1 }
 0x16d   : > { %v1823_v59 = vadd.f32 %v4232_v48, %v1691_v49  ;;  %v2031_v40 = vadd.f32 %v1970_v8, %v1818_v4 }
 0x16e   : > { %v1770_v10 = vpop.f32.mrf.mxu0  ;;  %v2002_v53 = vpop.f32.mrf.mxu1 }
 0x16f   : > { %v1821_v16 = vadd.f32 %v1770_v10, %v1689_v52  ;;  %v2036_v11 = vadd.f32 %v4250_v19, %v1823_v59 }
 0x170   : > { %v4233_v32 = vpop.f32.mrf.mxu0  ;;  %v4258_v20 = vpop.f32.mrf.mxu1 }
 0x171   : > { %v1824_v29 = vadd.f32 %v4233_v32, %v1692_v33  ;;  %v2034_v58 = vadd.f32 %v1983_v44, %v1821_v16 }
 0x172   : > { %v1773_v63 = vpop.f32.mrf.mxu0  ;;  %v2015_v30 = vpop.f32.mrf.mxu1 }
 0x173   : > { %v1822_v34 = vadd.f32 %v1773_v63, %v1690_v21  ;;  %v2037_v28 = vadd.f32 %v4251_v24, %v1824_v29 }
 0x174   : > { %v4236_v18 = vpop.f32.mrf.mxu0  ;;  %v4259_v35 = vpop.f32.mrf.mxu1 }
 0x175   : > { %v1827_v17 = vadd.f32 %v4236_v18, %v1695_v3  ;;  %v2035_v57 = vadd.f32 %v1986_v6, %v1822_v34 }
 0x176   : > { %v1786_v9 = vpop.f32.mrf.mxu0  ;;  %v2018_v43 = vpop.f32.mrf.mxu1 }
 0x177   : > { %v1825_v49 = vadd.f32 %v1786_v9, %v1693_v25  ;;  %v2040_v36 = vadd.f32 %v4254_v46, %v1827_v17 }
 0x178   : > { %v4237_v41 = vpop.f32.mrf.mxu0  ;;  %v4282_v37 = vpop.f32.mrf.mxu1 }
 0x179   : > { %v1828_v52 = vadd.f32 %v4237_v41, %v1696_v47  ;;  %v2038_v22 = vadd.f32 %v1999_v61, %v1825_v49 }
 0x17a   : > { %v1789_v23 = vpop.f32.mrf.mxu0  ;;  %v2555_v55 = vpop.f32.mrf.mxu1 }
 0x17b   : > { %v1826_v33 = vadd.f32 %v1789_v23, %v1694_v42  ;;  %v2041_v0 = vadd.f32 %v4255_v13, %v1828_v52 }
 0x17c   : > { %v4240_v8 = vpop.f32.mrf.mxu0  ;;  %v4283_v1 = vpop.f32.mrf.mxu1 }
 0x17d   : > { %v1831_v21 = vadd.f32 %v4240_v8, %v1699_v45  ;;  %v2039_v5 = vadd.f32 %v2002_v53, %v1826_v33 }
 0x17e   : > { %v1802_v19 = vpop.f32.mrf.mxu0  ;;  %v2558_v51 = vpop.f32.mrf.mxu1 }
 0x17f   : > { %v1829_v3 = vadd.f32 %v1802_v19, %v1697_v2  ;;  %v2044_v31 = vadd.f32 %v4258_v20, %v1831_v21 }
 0x180   : > { %v4241_v44 = vpop.f32.mrf.mxu0  ;;  %v4286_v12 = vpop.f32.mrf.mxu1 }
 0x181   : > { %v1832_v25 = vadd.f32 %v4241_v44, %v1700_v39  ;;  %v2042_v54 = vadd.f32 %v2015_v30, %v1829_v3 }
 0x182   : > { %v1805_v24 = vpop.f32.mrf.mxu0  ;;  %v2571_v15 = vpop.f32.mrf.mxu1 }
 0x183   : > { %v1830_v47 = vadd.f32 %v1805_v24, %v1698_v56  ;;  %v2045_v14 = vadd.f32 %v4259_v35, %v1832_v25 }
 0x184   : > { %v4264_v6 = vpop.f32.mrf.mxu0  ;;  %v4287_v27 = vpop.f32.mrf.mxu1 }
 0x185   : > { %v2390_v42 = vadd.f32 %v4264_v6, %v2032_v62  ;;  %v2043_v26 = vadd.f32 %v2018_v43, %v1830_v47 }
 0x186   : > { %v2325_v46 = vpop.f32.mrf.mxu0  ;;  %v2574_v60 = vpop.f32.mrf.mxu1 }
 0x187   : > { %v2388_v45 = vadd.f32 %v2325_v46, %v2030_v38  ;;  %v5702_v50 = vadd.f32 %v4282_v37, %v2390_v42 }
 0x188   : > { %v4265_v61 = vpop.f32.mrf.mxu0  ;;  %v4290_v2 = vpop.f32.mrf.mxu1 }
 0x189   : > { %v2391_v4 = vadd.f32 %v4265_v61, %v2033_v7  ;;  %v5704_v48 = vadd.f32 %v2555_v55, %v2388_v45 }
 0x18a   : > { %v2328_v39 = vpop.f32.mrf.mxu0  ;;  %v2587_v13 = vpop.f32.mrf.mxu1 }
 0x18b   : > { %v2389_v59 = vadd.f32 %v2328_v39, %v2031_v40  ;;  %v5706_v10 = vadd.f32 %v4283_v1, %v2391_v4 }
 0x18c   : > { %v4268_v56 = vpop.f32.mrf.mxu0  ;;  %v4291_v53 = vpop.f32.mrf.mxu1 }
 0x18d   : > { %v2394_v16 = vadd.f32 %v4268_v56, %v2036_v11  ;;  %v5708_v62 = vadd.f32 %v2558_v51, %v2389_v59 }
 0x18e   : > { %v2341_v32 = vpop.f32.mrf.mxu0  ;;  %v2590_v20 = vpop.f32.mrf.mxu1 }
 0x18f   : > { %v2392_v38 = vadd.f32 %v2341_v32, %v2034_v58  ;;  %v5710_v29 = vadd.f32 %v4286_v12, %v2394_v16 }
 0x190   : > { %v4269_v63 = vpop.f32.mrf.mxu0  ;;  %v4294_v30 = vpop.f32.mrf.mxu1 }
 0x191   : > { %v2395_v7 = vadd.f32 %v4269_v63, %v2037_v28  ;;  %v5712_v34 = vadd.f32 %v2571_v15, %v2392_v38 }
 0x192   : > { %v2344_v18 = vpop.f32.mrf.mxu0  ;;  %v2603_v35 = vpop.f32.mrf.mxu1 }
 0x193   : > { %v2393_v40 = vadd.f32 %v2344_v18, %v2035_v57  ;;  %v5714_v17 = vadd.f32 %v4287_v27, %v2395_v7 }
 0x194   : > { %v4272_v9 = vpop.f32.mrf.mxu0  ;;  %v4295_v43 = vpop.f32.mrf.mxu1 }
 0x195   : > { %v2398_v11 = vadd.f32 %v4272_v9, %v2040_v36  ;;  %v5716_v49 = vadd.f32 %v2574_v60, %v2393_v40 }
 0x196   : > { %v2357_v41 = vpop.f32.mrf.mxu0  ;;  %v2606_v37 = vpop.f32.mrf.mxu1 }
 0x197   : > { %v2396_v58 = vadd.f32 %v2357_v41, %v2038_v22  ;;  %v5718_v52 = vadd.f32 %v4290_v2, %v2398_v11 }
 0x198   : > { %v4273_v23 = vpop.f32.mrf.mxu0  ;;  %v5720_v55 = vpop.f32.mrf.mxu1 }
 0x199   : > { %v2399_v28 = vadd.f32 %v4273_v23, %v2041_v0  ;;  %v5722_v33 = vadd.f32 %v2587_v13, %v2396_v58 }
 0x19a   : > { %v2360_v8 = vpop.f32.mrf.mxu0  ;;  %v5724_v57 = vpop.f32.mrf.mxu1 }
 0x19b   : > { %v2397_v1 = vadd.f32 %v2360_v8, %v2039_v5  ;;  %v5726_v21 = vadd.f32 %v4291_v53, %v2399_v28 }
 0x19c   : > { %v4276_v36 = vpop.f32.mrf.mxu0  ;;  %v5728_v19 = vpop.f32.mrf.mxu1 }
 0x19d   : > { %v2402_v51 = vadd.f32 %v4276_v36, %v2044_v31  ;;  %v5730_v3 = vadd.f32 %v2590_v20, %v2397_v1 }
 0x19e   : > { %v2373_v22 = vpop.f32.mrf.mxu0  ;;  %v5732_v44 = vpop.f32.mrf.mxu1 }
 0x19f   : > { %v2400_v12 = vadd.f32 %v2373_v22, %v2042_v54  ;;  %v5734_v25 = vadd.f32 %v4294_v30, %v2402_v51 }
 0x1a0   : > { %v4277_v0 = vpop.f32.mrf.mxu0  ;;  %v5736_v24 = vpop.f32.mrf.mxu1 }
 0x1a1   : > { %v2403_v15 = vadd.f32 %v4277_v0, %v2045_v14  ;;  %v5738_v47 = vadd.f32 %v2603_v35, %v2400_v12 }
 0x1a2   : > { %v2376_v5 = vpop.f32.mrf.mxu0  ;;  %v5740_v6 = vpop.f32.mrf.mxu1 }
 0x1a3   : > { %5999 = vst [vmem:[#allocation2_spill] sm:$0xff] %v5738_v47  ;;  %v2401_v27 = vadd.f32 %v2376_v5, %v2043_v26  ;;  %v5742_v42 = vadd.f32 %v4295_v43, %v2403_v15 }
 0x1a4   : > { %v4300_v31 = vpop.f32.mrf.mxu0  ;;  %v5744_v46 = vpop.f32.mrf.mxu1 }
 0x1a5   : > { %6000 = vst [vmem:[#allocation3_spill] sm:$0xff] %v5742_v42  ;;  %v5746_v60 = vadd.f32 %v2606_v37, %v2401_v27 }
 0x1a6   : > { %v2681_v54 = vpop.f32.mrf.mxu0  ;;  %v5748_v45 = vpop.f32.mrf.mxu1 }
 0x1a7   : > { %6001 = vst [vmem:[#allocation4_spill] sm:$0xff] %v5746_v60 }
 0x1a8   : > { %v4301_v61 = vpop.f32.mrf.mxu0  ;;  %v5750_v2 = vpop.f32.mrf.mxu1 }
 0x1aa   : > { %v2684_v14 = vpop.f32.mrf.mxu0  ;;  %v5752_v4 = vpop.f32.mrf.mxu1 }
 0x1ac   : > { %v4304_v39 = vpop.f32.mrf.mxu0  ;;  %v5754_v13 = vpop.f32.mrf.mxu1 }
 0x1ae   : > { %v2697_v26 = vpop.f32.mrf.mxu0  ;;  %v5756_v59 = vpop.f32.mrf.mxu1 }
 0x1b0   : > { %v4305_v56 = vpop.f32.mrf.mxu0  ;;  %v5758_v53 = vpop.f32.mrf.mxu1 }
 0x1b1   : > { %6002 = vst [vmem:[#allocation5_spill] sm:$0xff] %v5758_v53 }
 0x1b2   : > { %v2700_v16 = vpop.f32.mrf.mxu0  ;;  %v5760_v32 = vpop.f32.mrf.mxu1 }
 0x1b3   : > { %6003 = vst [vmem:[#allocation6_spill] sm:$0xff] %v5760_v32 }
 0x1b4   : > { %v5762_v20 = vpop.f32.mrf.mxu0  ;;  %v5764_v38 = vpop.f32.mrf.mxu1 }
 0x1b5   : > { %6004 = vst [vmem:[#allocation7_spill] sm:$0xff] %v5764_v38 }
 0x1b6   : > { %v5766_v63 = vpop.f32.mrf.mxu0  ;;  %v5768_v30 = vpop.f32.mrf.mxu1 }
 0x1b7   : > { %6005 = vst [vmem:[#allocation8_spill] sm:$0xff] %v5768_v30 }
 0x1b8   : > { %v5770_v7 = vpop.f32.mrf.mxu0  ;;  %v4354_v18 = vpop.f32.mrf.mxu1 }
 0x1ba   : > { %v5772_v35 = vpop.f32.mrf.mxu0  ;;  %v5774_v40 = vpop.f32.mrf.mxu1 }
 0x1bc   : > { %v5776_v9 = vpop.f32.mrf.mxu0  ;;  %v5778_v43 = vpop.f32.mrf.mxu1 }
 0x1be   : > { %v5780_v11 = vpop.f32.mrf.mxu0  ;;  %v5782_v41 = vpop.f32.mrf.mxu1 }
 0x1bf   : > { %6006 = vst [vmem:[#allocation9_spill] sm:$0xff] %v5780_v11  ;;  %v2744_v11 = vadd.f32 %v2681_v54, %v5704_v48  ;;  %v2750_v48 = vadd.f32 %v4304_v39, %v5710_v29  ;;  %v2754_v29 = vadd.f32 %v5762_v20, %v5718_v52  ;;  %v5865_v20 = vld [vmem:[%s5984_s4] ss:$0 sm:$0xff] }
 0x1c0   : > { %v5784_v37 = vpop.f32.mrf.mxu0  ;;  %v5786_v58 = vpop.f32.mrf.mxu1 }
 0x1c1   : > { %6007 = vst [vmem:[#allocation10_spill] sm:$0xff] %v5784_v37 }
 0x1c2   : > { %v5788_v23 = vpop.f32.mrf.mxu0  ;;  %v5790_v28 = vpop.f32.mrf.mxu1 }
 0x1c3   : > { %6008 = vst [vmem:[#allocation11_spill] sm:$0xff] %v5788_v23  ;;  %6009 = vst [vmem:[#allocation12_spill] sm:$0xff] %v5790_v28 }
 0x1c4   : > { %v4336_v8 = vpop.f32.mrf.mxu0  ;;  %v5792_v1 = vpop.f32.mrf.mxu1 }
 0x1c5   : > { %6010 = vst [vmem:[#allocation13_spill] sm:$0xff] %v5792_v1 }
 0x1c6   : > { %v2961_v36 = vpop.f32.mrf.mxu0  ;;  %v5794_v51 = vpop.f32.mrf.mxu1 }
 0x1c7   : > { %6011 = vst [vmem:[#allocation14_spill] sm:$0xff] %v5794_v51 }
 0x1c8   : > { %v4337_v22 = vpop.f32.mrf.mxu0  ;;  %v5796_v12 = vpop.f32.mrf.mxu1 }
 0x1c9   : > { %6012 = vst [vmem:[#allocation15_spill] sm:$0xff] %v5796_v12 }
 0x1ca   : > { %v2964_v0 = vpop.f32.mrf.mxu0  ;;  %v5798_v15 = vpop.f32.mrf.mxu1 }
 0x1cb   : > { %6013 = vst [vmem:[#allocation16_spill] sm:$0xff] %v5798_v15 }
 0x1cc   : > { %v4340_v5 = vpop.f32.mrf.mxu0  ;;  %v5800_v27 = vpop.f32.mrf.mxu1 }
 0x1cd   : > { %6014 = vst [vmem:[#allocation17_spill] sm:$0xff] %v5800_v27 }
 0x1ce   : > { %v2977_v30 = vpop.f32.mrf.mxu0  ;;  %v5802_v38 = vpop.f32.mrf.mxu1 }
 0x1cf   : > { %6015 = vst [vmem:[#allocation18_spill] sm:$0xff] %v5802_v38  ;;  %v2746_v38 = vadd.f32 %v4300_v31, %v5702_v50  ;;  %v2892_v50 = vadd.f32 %v5724_v57, %v2744_v11 }
 0x1d0   : > { %v5804_v32 = vpop.f32.mrf.mxu0  ;;  %v5806_v23 = vpop.f32.mrf.mxu1 }
 0x1d1   : > { %6016 = vst [vmem:[#allocation19_spill] sm:$0xff] %v5806_v23  ;;  %v3024_v54 = vadd.f32 %v2961_v36, %v2892_v50 }
 0x1d2   : > { %v5808_v60 = vpop.f32.mrf.mxu0  ;;  %v5810_v53 = vpop.f32.mrf.mxu1 }
 0x1d3   : > { %6017 = vst [vmem:[#allocation20_spill] sm:$0xff] %v5810_v53 }
 0x1d4   : > { %v5812_v51 = vpop.f32.mrf.mxu0  ;;  %v5814_v12 = vpop.f32.mrf.mxu1 }
 0x1d5   : > { %6018 = vst [vmem:[#allocation21_spill] sm:$0xff] %v5812_v51  ;;  %6019 = vst [vmem:[#allocation22_spill] sm:$0xff] %v5814_v12  ;;  %v2747_v51 = vadd.f32 %v4301_v61, %v5706_v10  ;;  %v2894_v12 = vadd.f32 %v5720_v55, %v2746_v38  ;;  %v2748_v55 = vadd.f32 %v2697_v26, %v5712_v34 }
 0x1d6   : > { %v5816_v37 = vpop.f32.mrf.mxu0  ;;  %v5818_v15 = vpop.f32.mrf.mxu1  ;;  %v2751_v61 = vadd.f32 %v4305_v56, %v5714_v17  ;;  %v2898_v17 = vadd.f32 %v5736_v24, %v2750_v48  ;;  %v3150_v56 = vadd.f32 %v5774_v40, %v3024_v54  ;;  %v6027_v54 = vld [vmem:[#allocation9_spill] sm:$0xff] }
 0x1d7   : > { %6020 = vst [vmem:[#allocation23_spill] sm:$0xff] %v5816_v37  ;;  %6021 = vst [vmem:[#allocation24_spill] sm:$0xff] %v5818_v15  ;;  %v3026_v28 = vadd.f32 %v4336_v8, %v2894_v12  ;;  %v2895_v10 = vadd.f32 %v5728_v19, %v2747_v51 }
 0x1d8   : > { %v5820_v27 = vpop.f32.mrf.mxu0  ;;  %v4390_v42 = vpop.f32.mrf.mxu1  ;;  %v2899_v52 = vadd.f32 %v5744_v46, %v2751_v61  ;;  %v2902_v46 = vadd.f32 %v5750_v2, %v2754_v29 }
 0x1d9   : > { %6022 = vst [vmem:[#allocation25_spill] sm:$0xff] %v5820_v27  ;;  %v2745_v27 = vadd.f32 %v2684_v14, %v5708_v62  ;;  %v2749_v62 = vadd.f32 %v2700_v16, %v5716_v49  ;;  %v3027_v57 = vadd.f32 %v4337_v22, %v2895_v10  ;;  %v3152_v11 = vadd.f32 %v4354_v18, %v3026_v28 }
 0x1da   : > { %v5823_v1 = vpop.f32.mrf.mxu0  ;;  %v3367_v23 = vpop.f32.mrf.mxu1  ;;  %v2752_v49 = vadd.f32 %v5766_v63, %v5722_v33  ;;  %v2896_v16 = vadd.f32 %v5740_v6, %v2748_v55  ;;  %v3030_v6 = vadd.f32 %v4340_v5, %v2898_v17  ;;  %v6030_v17 = vld [vmem:[#allocation3_spill] sm:$0xff] }
 0x1db   : > { %6023 = vst [vmem:[#allocation26_spill] sm:$0xff] %v5823_v1  ;;  %v2893_v14 = vadd.f32 %v5732_v44, %v2745_v27  ;;  %v2755_v44 = vadd.f32 %v5770_v7, %v5726_v21  ;;  %v2897_v40 = vadd.f32 %v5748_v45, %v2749_v62  ;;  %v3153_v63 = vadd.f32 %v5778_v43, %v3027_v57 }
 0x1dc   : > { %v5826_v47 = vpop.f32.mrf.mxu0  ;;  %v4391_v53 = vpop.f32.mrf.mxu1  ;;  %v2753_v21 = vadd.f32 %v5772_v35, %v5730_v3  ;;  %v3028_v7 = vadd.f32 %v2977_v30, %v2896_v16  ;;  %v2758_v45 = vadd.f32 %v5776_v9, %v5734_v25  ;;  %v3031_v43 = vadd.f32 %v5804_v32, %v2899_v52  ;;  %v6028_v55 = vld [vmem:[#allocation21_spill] sm:$0xff]  ;;  %v6033_v52 = vld [vmem:[#allocation14_spill] sm:$0xff] }
 0x1dd   : > { %v3025_v34 = vadd.f32 %v2964_v0, %v2893_v14  ;;  %v2900_v3 = vadd.f32 %v5752_v4, %v2752_v49  ;;  %v2903_v30 = vadd.f32 %v5754_v13, %v2755_v44  ;;  %v3156_v25 = vadd.f32 %v5786_v58, %v3030_v6  ;;  %v6025_v13 = vld [vmem:[#allocation12_spill] sm:$0xff]  ;;  %v6029_v58 = vld [vmem:[#allocation13_spill] sm:$0xff] }
 0x1de   : > { %v5830_v37 = vpop.f32.mrf.mxu0  ;;  %v5832_v15 = vpop.f32.mrf.mxu1  ;;  %v2901_v50 = vadd.f32 %v5756_v59, %v2753_v21  ;;  %v3154_v32 = vadd.f32 %v6025_v13, %v3028_v7  ;;  %v6026_v59 = vld [vmem:[#allocation2_spill] sm:$0xff]  ;;  %v3034_v61 = vadd.f32 %v6028_v55, %v2902_v46  ;;  %v3157_v14 = vadd.f32 %v6029_v58, %v3031_v43  ;;  %v6034_v6 = vld [vmem:[#allocation23_spill] sm:$0xff] }
 0x1df   : > { %6024 = vst [vmem:[#allocation27_spill] sm:$0xff] %v5830_v37  ;;  %v2756_v10 = vadd.f32 %v6027_v54, %v6026_v59  ;;  %v3032_v7 = vadd.f32 %v6034_v6, %v2900_v3  ;;  %v6042_v54 = vld [vmem:[#allocation17_spill] sm:$0xff] }
 0x1e0   : > { %v5836_v31 = vpop.f32.mrf.mxu0  ;;  %v5838_v1 = vpop.f32.mrf.mxu1  ;;  %v6035_v46 = vld [vmem:[#allocation25_spill] sm:$0xff] }
 0x1e2   : > { %v5844_v38 = vpop.f32.mrf.mxu0  ;;  %v5846_v37 = vpop.f32.mrf.mxu1  ;;  %v6039_v3 = vld [vmem:[#allocation26_spill] sm:$0xff] }
 0x1e4   : > { %v4372_v39 = vpop.f32.mrf.mxu0  ;;  %v5852_v19 = vpop.f32.mrf.mxu1 }
 0x1e5   : > { %v3300_v26 = vadd.f32 %v4372_v39, %v3152_v11 }
 0x1e6   : > { %v3235_v24 = vpop.f32.mrf.mxu0  ;;  %v5867_v18 = vpop.f32.mrf.mxu1  ;;  %v6043_v58 = vld [vmem:[#allocation27_spill] sm:$0xff] }
 0x1e7   : > { %v3432_v28 = vadd.f32 %v4390_v42, %v3300_v26  ;;  %v3298_v33 = vadd.f32 %v3235_v24, %v3150_v56  ;;  %v3151_v42 = vadd.f32 %v5782_v41, %v3025_v34  ;;  %v6031_v26 = vld [vmem:[#allocation10_spill] sm:$0xff]  ;;  %v6032_v56 = vld [vmem:[#allocation5_spill] sm:$0xff] }
 0x1e8   : > { %v4373_v8 = vpop.f32.mrf.mxu0  ;;  %v5874_v36 = vpop.f32.mrf.mxu1  ;;  %v2906_v49 = vadd.f32 %v6032_v56, %v2758_v45 }
 0x1e9   : > { %v3455_v51 = vadd.f32 %v5865_v20, %v3432_v28  ;;  %v3430_v22 = vadd.f32 %v3367_v23, %v3298_v33  ;;  %v3301_v12 = vadd.f32 %v4373_v8, %v3153_v63  ;;  %v3029_v23 = vadd.f32 %v5808_v60, %v2897_v40 }
 0x1ea   : > { %v3238_v2 = vpop.f32.mrf.mxu0  ;;  %v5894_v9 = vpop.f32.mrf.mxu1  ;;  %v3035_v8 = vadd.f32 %v6035_v46, %v2903_v30 }
 0x1eb   : > { %v3471_v35 = vmax.f32 %v3455_v51, 0.0  ;;  %v3453_v0 = vadd.f32 %v5865_v20, %v3430_v22  ;;  %v3433_v5 = vadd.f32 %v4391_v53, %v3301_v12  ;;  %v3299_v27 = vadd.f32 %v3238_v2, %v3151_v42 }
 0x1ec   : > { %v4376_v4 = vpop.f32.mrf.mxu0  ;;  %v3155_v24 = vadd.f32 %v6033_v52, %v3029_v23  ;;  %v4399_v40 = vpop.f32.mrf.mxu1 }
 0x1ed   : > { %v3904_v41 = vpack.c.bf16 %v3471_v35, %v3471_v35  ;;  %v3469_v53 = vmax.f32 %v3453_v0, 0.0  ;;  %v3456_v48 = vadd.f32 %v5865_v20, %v3433_v5  ;;  %v3431_v60 = vadd.f32 %v5832_v15, %v3299_v27  ;;  %v6038_v35 = vld [vmem:[#allocation11_spill] sm:$0xff]  ;;  %v6040_v27 = vld [vmem:[#allocation6_spill] sm:$0xff] }
 0x1ee   : > { %v3304_v62 = vadd.f32 %v4376_v4, %v3156_v25  ;;  %v3251_v57 = vpop.f32.mrf.mxu0  ;;  %v2759_v15 = vadd.f32 %v6031_v26, %v6030_v17  ;;  %v3033_v5 = vadd.f32 %v6039_v3, %v2901_v50  ;;  %v2904_v30 = vadd.f32 %v6040_v27, %v2756_v10  ;;  %v3402_v4 = vpop.f32.mrf.mxu1 }
 0x1ef   : > { %3552 = vst.msk [vmem:[%s5890_s21 + $0x8] sm:$0xf] %vm3549_vm10, %v3904_v41  ;;  %v3902_v11 = vpack.c.bf16 %v3469_v53, %v3469_v53  ;;  %v3472_v29 = vmax.f32 %v3456_v48, 0.0  ;;  %v3454_v39 = vadd.f32 %v5865_v20, %v3431_v60  ;;  %v3302_v34 = vadd.f32 %v3251_v57, %v3154_v32  ;;  %v6041_v60 = vld [vmem:[#allocation16_spill] sm:$0xff] }
 0x1f0   : > { %v3436_v44 = vadd.f32 %v5838_v1, %v3304_v62  ;;  %v4377_v16 = vpop.f32.mrf.mxu0  ;;  %v6036_v1 = vld [vmem:[#allocation15_spill] sm:$0xff]  ;;  %v3038_v53 = vadd.f32 %v5826_v47, %v2906_v49  ;;  %v3158_v50 = vadd.f32 %v6041_v60, %v3032_v7  ;;  %v3161_v10 = vadd.f32 %v6042_v54, %v3035_v8  ;;  %v4402_v47 = vpop.f32.mrf.mxu1 }
 0x1f1   : > { %3550 = vst.msk [vmem:[%s5890_s21] sm:$0xf] %vm3549_vm10, %v3902_v11  ;;  %v3905_v28 = vpack.c.bf16 %v3472_v29, %v3472_v29  ;;  %v3470_v33 = vmax.f32 %v3454_v39, 0.0  ;;  %v3434_v63 = vadd.f32 %v5846_v37, %v3302_v34  ;;  %v3305_v21 = vadd.f32 %v4377_v16, %v3157_v14  ;;  %v6037_v37 = vld [vmem:[#allocation4_spill] sm:$0xff]  ;;  %v6044_v29 = vld [vmem:[#allocation18_spill] sm:$0xff]  ;;  %v6045_v49 = vld [vmem:[#allocation7_spill] sm:$0xff] }
 0x1f2   : > { %v3459_v51 = vadd.f32 %v5865_v20, %v3436_v44  ;;  %v3254_v22 = vpop.f32.mrf.mxu0  ;;  %v3160_v12 = vadd.f32 %v6036_v1, %v3034_v61  ;;  %v2757_v0 = vadd.f32 %v6038_v35, %v6037_v37  ;;  %v3036_v14 = vadd.f32 %v6043_v58, %v2904_v30  ;;  %v6048_v1 = vld [vmem:[#allocation20_spill] sm:$0xff] }
 0x1f3   : > { %3553 = vst.msk [vmem:[%s5890_s21 + $0xc] sm:$0xf] %vm3549_vm10, %v3905_v28  ;;  %v3903_v42 = vpack.c.bf16 %v3470_v33, %v3470_v33  ;;  %v3457_v45 = vadd.f32 %v5865_v20, %v3434_v63  ;;  %v3437_v43 = vadd.f32 %v5852_v19, %v3305_v21  ;;  %v3303_v2 = vadd.f32 %v3254_v22, %v3155_v24  ;;  %v6047_v28 = vld [vmem:[#allocation19_spill] sm:$0xff] }
 0x1f4   : > { %v3475_v23 = vmax.f32 %v3459_v51, 0.0  ;;  %v4380_v25 = vpop.f32.mrf.mxu0  ;;  %v3159_v39 = vadd.f32 %v6044_v29, %v3033_v5  ;;  %v2907_v44 = vadd.f32 %v6045_v49, %v2759_v15  ;;  %v3164_v33 = vadd.f32 %v6047_v28, %v3038_v53  ;;  %v3415_v51 = vpop.f32.mrf.mxu1  ;;  %v6049_v5 = vld [vmem:[#allocation22_spill] sm:$0xff] }
 0x1f5   : > { %3551 = vst.msk [vmem:[%s5890_s21 + $0x4] sm:$0xf] %vm3549_vm10, %v3903_v42  ;;  %v3473_v13 = vmax.f32 %v3457_v45, 0.0  ;;  %v3460_v32 = vadd.f32 %v5865_v20, %v3437_v43  ;;  %v3435_v41 = vadd.f32 %v5867_v18, %v3303_v2  ;;  %v3308_v19 = vadd.f32 %v4380_v25, %v3160_v12 }
 0x1f6   : > { %v3908_v48 = vpack.c.bf16 %v3475_v23, %v3475_v23  ;;  %v3267_v59 = vpop.f32.mrf.mxu0  ;;  %v3039_v46 = vadd.f32 %v5836_v31, %v2907_v44  ;;  %v4403_v3 = vpop.f32.mrf.mxu1  ;;  %v6050_v23 = vld [vmem:[#allocation24_spill] sm:$0xff] }
 0x1f7   : > { %v3906_v55 = vpack.c.bf16 %v3473_v13, %v3473_v13  ;;  %v3476_v61 = vmax.f32 %v3460_v32, 0.0  ;;  %v3458_v62 = vadd.f32 %v5865_v20, %v3435_v41  ;;  %v3440_v57 = vadd.f32 %v5874_v36, %v3308_v19  ;;  %v6046_v36 = vld [vmem:[#allocation8_spill] sm:$0xff] }
 0x1f8   : > { %3556 = vst.msk [vmem:[%s5890_s21 + $0x18] sm:$0xf] %vm3549_vm10, %v3908_v48  ;;  %v3306_v18 = vadd.f32 %v3267_v59, %v3158_v50  ;;  %v4381_v11 = vpop.f32.mrf.mxu0  ;;  %v2905_v16 = vadd.f32 %v6046_v36, %v2757_v0  ;;  %v3165_v27 = vadd.f32 %v6049_v5, %v3039_v46  ;;  %v3418_v54 = vpop.f32.mrf.mxu1 }
 0x1f9   : > { %3554 = vst.msk [vmem:[%s5890_s21 + $0x10] sm:$0xf] %vm3549_vm10, %v3906_v55  ;;  %v3909_v34 = vpack.c.bf16 %v3476_v61, %v3476_v61  ;;  %v3474_v17 = vmax.f32 %v3458_v62, 0.0  ;;  %v3463_v26 = vadd.f32 %v5865_v20, %v3440_v57  ;;  %v3309_v56 = vadd.f32 %v4381_v11, %v3161_v10 }
 0x1fa   : > { %v3438_v52 = vadd.f32 %v5894_v9, %v3306_v18  ;;  %v3270_v24 = vpop.f32.mrf.mxu0  ;;  %v3037_v8 = vadd.f32 %v5844_v38, %v2905_v16  ;;  %v3162_v9 = vadd.f32 %v6048_v1, %v3036_v14 }
 0x1fb   : > { %3557 = vst.msk [vmem:[%s5890_s21 + $0x1c] sm:$0xf] %vm3549_vm10, %v3909_v34  ;;  %v3907_v63 = vpack.c.bf16 %v3474_v17, %v3474_v17  ;;  %v3479_v21 = vmax.f32 %v3463_v26, 0.0  ;;  %v3441_v6 = vadd.f32 %v4399_v40, %v3309_v56  ;;  %v3307_v7 = vadd.f32 %v3270_v24, %v3159_v39 }
 0x1fc   : > { %v3461_v15 = vadd.f32 %v5865_v20, %v3438_v52  ;;  %v4384_v22 = vpop.f32.mrf.mxu0  ;;  %v3163_v25 = vadd.f32 %v6050_v23, %v3037_v8 }
 0x1fd   : > { %3555 = vst.msk [vmem:[%s5890_s21 + $0x14] sm:$0xf] %vm3549_vm10, %v3907_v63  ;;  %v3912_v12 = vpack.c.bf16 %v3479_v21, %v3479_v21  ;;  %v3464_v42 = vadd.f32 %v5865_v20, %v3441_v6  ;;  %v3439_v45 = vadd.f32 %v3402_v4, %v3307_v7  ;;  %v3312_v43 = vadd.f32 %v4384_v22, %v3164_v33 }
 0x1fe   : > { %v3477_v2 = vmax.f32 %v3461_v15, 0.0  ;;  %v3283_v40 = vpop.f32.mrf.mxu0 }
 0x1ff   : > { %3560 = vst.msk [vmem:[%s5890_s21 + $0x28] sm:$0xf] %vm3549_vm10, %v3912_v12  ;;  %v3480_v31 = vmax.f32 %v3464_v42, 0.0  ;;  %v3462_v38 = vadd.f32 %v5865_v20, %v3439_v45  ;;  %v3444_v37 = vadd.f32 %v4402_v47, %v3312_v43  ;;  %v3310_v35 = vadd.f32 %v3283_v40, %v3162_v9 }
 0x200   : > { %v3910_v0 = vpack.c.bf16 %v3477_v2, %v3477_v2  ;;  %v4385_v30 = vpop.f32.mrf.mxu0 }
 0x201   : > { %v3913_v4 = vpack.c.bf16 %v3480_v31, %v3480_v31  ;;  %v3478_v13 = vmax.f32 %v3462_v38, 0.0  ;;  %v3467_v32 = vadd.f32 %v5865_v20, %v3444_v37  ;;  %v3442_v41 = vadd.f32 %v3415_v51, %v3310_v35 }
 0x202   : > { %3558 = vst.msk [vmem:[%s5890_s21 + $0x20] sm:$0xf] %vm3549_vm10, %v3910_v0  ;;  %v3313_v19 = vadd.f32 %v4385_v30, %v3165_v27  ;;  %v3286_v53 = vpop.f32.mrf.mxu0 }
 0x203   : > { %3561 = vst.msk [vmem:[%s5890_s21 + $0x2c] sm:$0xf] %vm3549_vm10, %v3913_v4  ;;  %v3911_v48 = vpack.c.bf16 %v3478_v13, %v3478_v13  ;;  %v3483_v60 = vmax.f32 %v3467_v32, 0.0  ;;  %v3465_v50 = vadd.f32 %v5865_v20, %v3442_v41  ;;  %v3311_v59 = vadd.f32 %v3286_v53, %v3163_v25 }
 0x204   : > { %v3445_v10 = vadd.f32 %v4403_v3, %v3313_v19 }
 0x205   : > { %3559 = vst.msk [vmem:[%s5890_s21 + $0x24] sm:$0xf] %vm3549_vm10, %v3911_v48  ;;  %v3916_v55 = vpack.c.bf16 %v3483_v60, %v3483_v60  ;;  %v3481_v61 = vmax.f32 %v3465_v50, 0.0  ;;  %v3443_v62 = vadd.f32 %v3418_v54, %v3311_v59 }
 0x206   : > { %v3468_v57 = vadd.f32 %v5865_v20, %v3445_v10 }
 0x207   : > { %3564 = vst.msk [vmem:[%s5890_s21 + $0x38] sm:$0xf] %vm3549_vm10, %v3916_v55  ;;  %v3914_v58 = vpack.c.bf16 %v3481_v61, %v3481_v61  ;;  %v3466_v14 = vadd.f32 %v5865_v20, %v3443_v62 }
 0x208   : > { %v3484_v18 = vmax.f32 %v3468_v57, 0.0 }
 0x209   : > { %3562 = vst.msk [vmem:[%s5890_s21 + $0x30] sm:$0xf] %vm3549_vm10, %v3914_v58  ;;  %v3482_v11 = vmax.f32 %v3466_v14, 0.0 }
 0x20a   : > { %v3917_v47 = vpack.c.bf16 %v3484_v18, %v3484_v18 }
 0x20b   : > { %v3915_v29 = vpack.c.bf16 %v3482_v11, %v3482_v11 }
 0x20c   : > { %3565 = vst.msk [vmem:[%s5890_s21 + $0x3c] sm:$0xf] %vm3549_vm10, %v3917_v47 }
 0x20d   : > { %3563 = vst.msk [vmem:[%s5890_s21 + $0x34] sm:$0xf] %vm3549_vm10, %v3915_v29 }
 0x20e PF: > { %s15_s18 = sadd.s32 1, %s4457_s18  }
 0x20f   : > { %p12_p4 = scmp.ge.s32.totalorder %s15_s18, 6  }
 0x211   :  { %14 = sbr.rel (!%p12_p4) target bundleno = 1 (0x1), region = 89 }

</bundles_post_ra>
